<compile_context>
chip_gen: v6e
topology: v6e:2x2x1
jax: 0.10.0
libtpu: 0.0.40
codegen_flags: <defaults>
</compile_context>

<pallas_src>
import numpy as np
import jax
import jax.numpy as jnp
from jax.experimental import pallas as pl
from jax.experimental.pallas import tpu as pltpu


def _round_up(x, m):
    return -(-x // m) * m


# ----------------------------------------------------------------------------
# Generic tiled matmul (bf16 MXU operands, f32 accumulation).  Used for the
# hoisted att_src projection and the vocabulary readout.
# ----------------------------------------------------------------------------
def _matmul_kernel(a_ref, b_ref, o_ref):
    o_ref[...] = jnp.dot(a_ref[...], b_ref[...],
                         preferred_element_type=jnp.float32)


def matmul_pallas(a, b):
    """(M,K) @ (K,N) -> (M,N) f32.  N is the outer grid axis so each (K,tn)
    weight tile is fetched from HBM exactly once (weight-streaming order)."""
    M, K = a.shape
    K2, N = b.shape
    assert K == K2
    a = a.astype(jnp.bfloat16)
    b = b.astype(jnp.bfloat16)
    tm = min(_round_up(M, 8), 512)
    tn = min(_round_up(N, 128), 512)
    Mp, Np = _round_up(M, tm), _round_up(N, tn)
    if Mp != M:
        a = jnp.pad(a, ((0, Mp - M), (0, 0)))
    if Np != N:
        b = jnp.pad(b, ((0, 0), (0, Np - N)))
    out = pl.pallas_call(
        _matmul_kernel,
        out_shape=jax.ShapeDtypeStruct((Mp, Np), jnp.float32),
        grid=(Np // tn, Mp // tm),                 # N outer, M inner (fast)
        in_specs=[pl.BlockSpec((tm, K), lambda j, i: (i, 0)),
                  pl.BlockSpec((K, tn), lambda j, i: (0, j))],
        out_specs=pl.BlockSpec((tm, tn), lambda j, i: (i, j)),
        compiler_params=pltpu.CompilerParams(
            dimension_semantics=("parallel", "parallel")),
    )(a, b)
    return out[:M, :N]


# ----------------------------------------------------------------------------
# Encoder: both LSTM directions, grid=(2,), in-kernel time loop over S.
# PyTorch gate order: i, f, g, o.
# ----------------------------------------------------------------------------
def _bilstm_kernel(x_ref, wx_ref, wh_ref, b_ref, out_ref, cfin_ref):
    d = pl.program_id(0)                       # 0: forward, 1: backward
    S, B, _ = x_ref.shape
    H = out_ref.shape[-1]
    bf = jnp.bfloat16

    def step(s, carry):
        h, c = carry
        tau = d * (S - 1) + (1 - 2 * d) * s    # fwd: s ; bwd: S-1-s
        x = x_ref[tau]                         # (B, E) bf16
        gates = (jnp.dot(x, wx_ref[0], preferred_element_type=jnp.float32)
                 + jnp.dot(h.astype(bf), wh_ref[0],
                           preferred_element_type=jnp.float32)
                 + b_ref[0])                   # (B, 4H) f32
        i = jax.nn.sigmoid(gates[:, 0 * H:1 * H])
        f = jax.nn.sigmoid(gates[:, 1 * H:2 * H])
        g = jnp.tanh(gates[:, 2 * H:3 * H])
        o = jax.nn.sigmoid(gates[:, 3 * H:4 * H])
        c_new = f * c + i * g
        h_new = o * jnp.tanh(c_new)
        out_ref[tau] = h_new                   # written into the VMEM slab
        return (h_new, c_new)

    zeros = jnp.zeros((B, H), jnp.float32)
    _, c_fin = jax.lax.fori_loop(0, S, step, (zeros, zeros), unroll=True)
    cfin_ref[...] = c_fin


def run_encoder(x_bf16, params):
    """x_bf16: (S, B, E) -> enc_out (S, B, 2H) [fwd|bwd], last_cell (B, 2H)."""
    S, B, E = x_bf16.shape
    H = params["enc_w_hh_f"].shape[1]
    assert B % 8 == 0 and E % 128 == 0 and H % 128 == 0
    # TODO(synk): generic zero-padding of E/H to 128 multiples for odd sizes.
    bf = jnp.bfloat16
    wx = jnp.stack([params["enc_w_ih_f"].T,
                    params["enc_w_ih_b"].T], 0).astype(bf)        # (2, E, 4H)
    wh = jnp.stack([params["enc_w_hh_f"].T,
                    params["enc_w_hh_b"].T], 0).astype(bf)        # (2, H, 4H)
    b = jnp.stack([
        (params["enc_b_ih_f"] + params["enc_b_hh_f"]).reshape(1, 4 * H),
        (params["enc_b_ih_b"] + params["enc_b_hh_b"]).reshape(1, 4 * H)],
        axis=0)                                                    # (2, 1, 4H)

    enc_out, last_cell = pl.pallas_call(
        _bilstm_kernel,
        out_shape=(jax.ShapeDtypeStruct((S, B, 2 * H), jnp.float32),
                   jax.ShapeDtypeStruct((B, 2 * H), jnp.float32)),
        grid=(2,),
        in_specs=[pl.BlockSpec((S, B, E), lambda d: (0, 0, 0)),
                  pl.BlockSpec((1, E, 4 * H), lambda d: (d, 0, 0)),
                  pl.BlockSpec((1, H, 4 * H), lambda d: (d, 0, 0)),
                  pl.BlockSpec((1, 1, 4 * H), lambda d: (d, 0, 0))],
        out_specs=(pl.BlockSpec((S, B, H), lambda d: (0, 0, d)),
                   pl.BlockSpec((B, H), lambda d: (0, d))),
        compiler_params=pltpu.CompilerParams(
            dimension_semantics=("parallel",)),
    )(x_bf16, wx, wh, b)
    return enc_out, last_cell


# ----------------------------------------------------------------------------
# Decoder: batch-parallel grid, in-kernel time loop over T.
# Per step: LSTMCell (split-weight gate matmuls) + dot-product attention
# (VPU multiply + XLU reduce) + att_vec linear.  Readout is hoisted outside.
# ----------------------------------------------------------------------------
def _decoder_kernel(tgt_ref, src_enc_ref, src_att_ref, last_cell_ref,
                    w_dci_ref, b_dci_ref, w_x_ref, w_a_ref, w_h_ref,
                    b_dec_ref, w_avh_ref, w_avc_ref, att_out_ref):
    T, bt, _ = tgt_ref.shape
    H = w_h_ref.shape[0]
    bf = jnp.bfloat16

    cell0 = (jnp.dot(last_cell_ref[...].astype(bf), w_dci_ref[...],
                     preferred_element_type=jnp.float32)
             + b_dci_ref[...])                       # (bt, H)
    h0 = jnp.tanh(cell0)
    att0 = jnp.zeros((bt, H), jnp.float32)

    def step(t, carry):
        h, c, att = carry
        emb = tgt_ref[t]                             # (bt, E) bf16
        gates = (jnp.dot(emb, w_x_ref[...], preferred_element_type=jnp.float32)
                 + jnp.dot(att.astype(bf), w_a_ref[...],
                           preferred_element_type=jnp.float32)
                 + jnp.dot(h.astype(bf), w_h_ref[...],
                           preferred_element_type=jnp.float32)
                 + b_dec_ref[...])                   # (bt, 4H)
        i = jax.nn.sigmoid(gates[:, 0 * H:1 * H])
        f = jax.nn.sigmoid(gates[:, 1 * H:2 * H])
        g = jnp.tanh(gates[:, 2 * H:3 * H])
        o = jax.nn.sigmoid(gates[:, 3 * H:4 * H])
        c_t = f * c + i * g
        h_t = o * jnp.tanh(c_t)
        # h_t = dropout(h_t) -> identity in eval mode

        # q=1 dot-product attention on the VPU/XLU (MXU stays free)
        logits = jnp.sum(h_t[:, None, :] * src_att_ref[...], axis=-1)  # (bt,S)
        m = jnp.max(logits, axis=-1, keepdims=True)
        e = jnp.exp(logits - m)
        aw = e / jnp.sum(e, axis=-1, keepdims=True)                    # exact
        ctx = jnp.sum(aw[:, :, None] * src_enc_ref[...], axis=1)       # (bt,2H)

        att_t = jnp.tanh(
            jnp.dot(h_t.astype(bf), w_avh_ref[...],
                    preferred_element_type=jnp.float32)
            + jnp.dot(ctx.astype(bf), w_avc_ref[...],
                      preferred_element_type=jnp.float32))             # (bt,H)
        # att_t = dropout(att_t) -> identity in eval mode
        att_out_ref[t] = att_t
        return (h_t, c_t, att_t)

    jax.lax.fori_loop(0, T, step, (h0, cell0, att0), unroll=True)


def run_decoder(tgt_emb_bf16, src_enc, src_att, last_cell, params, bt=8):
    """tgt_emb (T,Bp,E) bf16, src_enc (Bp,S,2H), src_att (Bp,S,H) ->
    att_seq (T,Bp,H) f32."""
    T, Bp, E = tgt_emb_bf16.shape
    _, S, H2 = src_enc.shape
    H = H2 // 2
    assert Bp % bt == 0
    bf = jnp.bfloat16

    w_dci = params["w_dci"].T.astype(bf)                       # (2H, H)
    b_dci = params["b_dci"].reshape(1, H)
    w_ih_T = params["dec_w_ih"].T                              # (E+H, 4H)
    w_x = w_ih_T[:E].astype(bf)                                # (E, 4H)
    w_a = w_ih_T[E:].astype(bf)                                # (H, 4H)
    w_h = params["dec_w_hh"].T.astype(bf)                      # (H, 4H)
    b_dec = (params["dec_b_ih"] + params["dec_b_hh"]).reshape(1, 4 * H)
    w_av_T = params["w_att_vec"].T                             # (3H, H)
    w_avh = w_av_T[:H].astype(bf)                              # (H, H)
    w_avc = w_av_T[H:].astype(bf)                              # (2H, H)

    const2 = lambda b: (0, 0)
    att_seq = pl.pallas_call(
        _decoder_kernel,
        out_shape=jax.ShapeDtypeStruct((T, Bp, H), jnp.float32),
        grid=(Bp // bt,),                         # batch-parallel (v7x 2 TCs)
        in_specs=[pl.BlockSpec((T, bt, E), lambda b: (0, b, 0)),
                  pl.BlockSpec((bt, S, 2 * H), lambda b: (b, 0, 0)),
                  pl.BlockSpec((bt, S, H), lambda b: (b, 0, 0)),
                  pl.BlockSpec((bt, 2 * H), lambda b: (b, 0)),
                  pl.BlockSpec((2 * H, H), const2),
                  pl.BlockSpec((1, H), const2),
                  pl.BlockSpec((E, 4 * H), const2),
                  pl.BlockSpec((H, 4 * H), const2),
                  pl.BlockSpec((H, 4 * H), const2),
                  pl.BlockSpec((1, 4 * H), const2),
                  pl.BlockSpec((H, H), const2),
                  pl.BlockSpec((2 * H, H), const2)],
        out_specs=pl.BlockSpec((T, bt, H), lambda b: (0, b, 0)),
        compiler_params=pltpu.CompilerParams(
            dimension_semantics=("parallel",)),
    )(tgt_emb_bf16, src_enc, src_att, last_cell,
      w_dci, b_dci, w_x, w_a, w_h, b_dec, w_avh, w_avc)
    return att_seq


# ----------------------------------------------------------------------------
# Full NMT forward (encode + decode).  All source sentences assumed full
# length, so pack_padded_sequence is a no-op here.
# ----------------------------------------------------------------------------
def nmt_forward(params, src_sents, tgt_words, residual=False):
    S, B = src_sents.shape
    T = tgt_words.shape[0]
    H = params["enc_w_hh_f"].shape[1]
    Vt = params["w_readout"].shape[0]

    # pad batch to a multiple of 8 for sublane-dense tiles; padded columns use
    # token 0 (<pad>, zero embedding row) and are sliced off at the end.
    Bp = _round_up(B, 8)
    if Bp != B:
        src_sents = jnp.pad(src_sents, ((0, 0), (0, Bp - B)))
        tgt_words = jnp.pad(tgt_words, ((0, 0), (0, Bp - B)))

    # ---- encode ----
    src_emb = params["src_embed"][src_sents]                    # (S, Bp, E) f32
    enc_out, last_cell = run_encoder(src_emb.astype(jnp.bfloat16), params)
    if residual:
        enc_out = enc_out + jnp.concatenate([src_emb, src_emb], axis=2)

    # ---- decode ----
    src_enc_bsd = jnp.transpose(enc_out, (1, 0, 2))             # (Bp, S, 2H)
    # hoisted att_src projection: one weight-streaming matmul outside the loop
    src_att = matmul_pallas(src_enc_bsd.reshape(Bp * S, 2 * H),
                            params["w_att_src"].T).reshape(Bp, S, H)

    tgt_emb = params["tgt_embed"][tgt_words].astype(jnp.bfloat16)  # (T, Bp, E)
    att_seq = run_decoder(tgt_emb, src_enc_bsd, src_att, last_cell, params)

    # vocabulary readout: separate weight-streaming tiled matmul
    scores = matmul_pallas(att_seq.reshape(T * Bp, H),
                           params["w_readout"].T).reshape(T, Bp, Vt)
    return scores[:, :B, :]
    # TODO(synk): pack_padded_sequence with unequal source lengths (length
    # masking in the encoder / attention) is not modeled; full length S used.


# ----------------------------------------------------------------------------
# Pure-JAX f32 reference (mirrors the PyTorch forward) for correctness check.
# ----------------------------------------------------------------------------
def _lstm_ref(x, w_ih, w_hh, b_ih, b_hh):
    S, B, _ = x.shape
    H = w_hh.shape[1]
    h = jnp.zeros((B, H), jnp.float32)
    c = jnp.zeros((B, H), jnp.float32)
    outs = []
    for t in range(S):
        gates = x[t] @ w_ih.T + b_ih + h @ w_hh.T + b_hh
        i = jax.nn.sigmoid(gates[:, :H])
        f = jax.nn.sigmoid(gates[:, H:2 * H])
        g = jnp.tanh(gates[:, 2 * H:3 * H])
        o = jax.nn.sigmoid(gates[:, 3 * H:])
        c = f * c + i * g
        h = o * jnp.tanh(c)
        outs.append(h)
    return jnp.stack(outs), c


def nmt_forward_ref(params, src_sents, tgt_words, residual=False):
    emb = params["src_embed"][src_sents]
    fo, fc = _lstm_ref(emb, params["enc_w_ih_f"], params["enc_w_hh_f"],
                       params["enc_b_ih_f"], params["enc_b_hh_f"])
    bo_r, bc = _lstm_ref(emb[::-1], params["enc_w_ih_b"], params["enc_w_hh_b"],
                         params["enc_b_ih_b"], params["enc_b_hh_b"])
    enc_out = jnp.concatenate([fo, bo_r[::-1]], axis=2)
    if residual:
        enc_out = enc_out + jnp.concatenate([emb, emb], axis=2)
    last_cell = jnp.concatenate([fc, bc], axis=1)
    cell0 = last_cell @ params["w_dci"].T + params["b_dci"]
    h = jnp.tanh(cell0)
    c = cell0
    src_enc = jnp.transpose(enc_out, (1, 0, 2))                # (B, S, 2H)
    src_att = src_enc @ params["w_att_src"].T                  # (B, S, H)
    B = src_enc.shape[0]
    H = params["dec_w_hh"].shape[1]
    att = jnp.zeros((B, H), jnp.float32)
    tgt_emb = params["tgt_embed"][tgt_words]
    scores = []
    for t in range(tgt_emb.shape[0]):
        x = jnp.concatenate([tgt_emb[t], att], axis=1)
        gates = (x @ params["dec_w_ih"].T + params["dec_b_ih"]
                 + h @ params["dec_w_hh"].T + params["dec_b_hh"])
        i = jax.nn.sigmoid(gates[:, :H])
        f = jax.nn.sigmoid(gates[:, H:2 * H])
        g = jnp.tanh(gates[:, 2 * H:3 * H])
        o = jax.nn.sigmoid(gates[:, 3 * H:])
        c = f * c + i * g
        h = o * jnp.tanh(c)
        logits = jnp.einsum("bsh,bh->bs", src_att, h)
        aw = jax.nn.softmax(logits, axis=-1)
        ctx = jnp.einsum("bs,bsd->bd", aw, src_enc)
        att = jnp.tanh(jnp.concatenate([h, ctx], axis=1) @ params["w_att_vec"].T)
        scores.append(att @ params["w_readout"].T)
    return jnp.stack(scores)


# ----------------------------------------------------------------------------
# Deterministic parameter init (shapes match the PyTorch module __init__).
# ----------------------------------------------------------------------------
def init_params(key, V_src, V_tgt, E, H):
    keys = iter(jax.random.split(key, 32))
    u = lambda k, shape, s: jax.random.uniform(k, shape, jnp.float32, -s, s)
    s_h = 1.0 / np.sqrt(H)
    p = {}
    src_emb = jax.random.normal(next(keys), (V_src, E), jnp.float32)
    tgt_emb = jax.random.normal(next(keys), (V_tgt, E), jnp.float32)
    p["src_embed"] = src_emb.at[0].set(0.0)   # padding_idx = 0
    p["tgt_embed"] = tgt_emb.at[0].set(0.0)
    for d in ("f", "b"):
        p[f"enc_w_ih_{d}"] = u(next(keys), (4 * H, E), s_h)
        p[f"enc_w_hh_{d}"] = u(next(keys), (4 * H, H), s_h)
        p[f"enc_b_ih_{d}"] = u(next(keys), (4 * H,), s_h)
        p[f"enc_b_hh_{d}"] = u(next(keys), (4 * H,), s_h)
    p["dec_w_ih"] = u(next(keys), (4 * H, E + H), s_h)
    p["dec_w_hh"] = u(next(keys), (4 * H, H), s_h)
    p["dec_b_ih"] = u(next(keys), (4 * H,), s_h)
    p["dec_b_hh"] = u(next(keys), (4 * H,), s_h)
    p["w_att_src"] = u(next(keys), (H, 2 * H), 1.0 / np.sqrt(2 * H))
    p["w_att_vec"] = u(next(keys), (H, 3 * H), 1.0 / np.sqrt(3 * H))
    p["w_readout"] = u(next(keys), (V_tgt, H), 1.0 / np.sqrt(H))
    p["w_dci"] = u(next(keys), (H, 2 * H), 1.0 / np.sqrt(2 * H))
    p["b_dci"] = u(next(keys), (H,), 1.0 / np.sqrt(2 * H))
    return p


if __name__ == "__main__":
    # lane/sublane-dense sizes: B multiple of 8, E/H multiples of 128.
    V_src, V_tgt = 96, 256
    E, H = 128, 128
    S, T, B = 8, 6, 8

    key = jax.random.PRNGKey(0)
    kp, ks, kt = jax.random.split(key, 3)
    params = init_params(kp, V_src, V_tgt, E, H)

    # token ids in [1, V) so the <pad>=0 row is unused (all lengths == S)
    src_sents = jax.random.randint(ks, (S, B), 1, V_src, dtype=jnp.int32)
    tgt_words = jax.random.randint(kt, (T, B), 1, V_tgt, dtype=jnp.int32)

    scores = nmt_forward(params, src_sents, tgt_words, residual=False)
    scores = jax.block_until_ready(scores)
    assert scores.shape == (T, B, V_tgt)

    ref = nmt_forward_ref(params, src_sents, tgt_words, residual=False)
    # bf16 MXU operands -> slightly looser tolerance than an all-f32 compare
    np.testing.assert_allclose(np.asarray(scores), np.asarray(ref),
                               rtol=2e-2, atol=2e-2)
    print("KERNEL_OK")
</pallas_src>

<mosaic_0001>
module attributes {stable_mosaic.version = 11 : i64} {
  func.func @_bilstm_kernel(%arg0: i32, %arg1: memref<8x8x128xbf16, #tpu.memory_space<vmem>>, %arg2: memref<1x128x512xbf16, #tpu.memory_space<vmem>>, %arg3: memref<1x128x512xbf16, #tpu.memory_space<vmem>>, %arg4: memref<1x1x512xf32, #tpu.memory_space<vmem>>, %arg5: memref<8x8x128xf32, #tpu.memory_space<vmem>>, %arg6: memref<8x128xf32, #tpu.memory_space<vmem>>) attributes {dimension_semantics = [#tpu.dimension_semantics<parallel>], iteration_bounds = array<i64: 2>, scalar_prefetch = 0 : i64, scratch_operands = 0 : i64, tpu.core_type = #tpu.core_type<tc>, window_params = [{pipeline_mode = #tpu.pipeline_mode<synchronous>, transform_indices = @transform_0, window_bounds = array<i64: 8, 8, 128>}, {transform_indices = @transform_1, window_bounds = array<i64: 1, 128, 512>}, {transform_indices = @transform_2, window_bounds = array<i64: 1, 128, 512>}, {transform_indices = @transform_3, window_bounds = array<i64: 1, 1, 512>}, {transform_indices = @transform_4, window_bounds = array<i64: 8, 8, 128>}, {transform_indices = @transform_5, window_bounds = array<i64: 8, 128>}]} {
    %cst = arith.constant 0.000000e+00 : f32
    %0 = vector.broadcast %cst : f32 to vector<8x128xf32>
    %c0_i32 = arith.constant 0 : i32
    %c7_i32 = arith.constant 7 : i32
    %1 = arith.muli %arg0, %c7_i32 : i32
    %c2_i32 = arith.constant 2 : i32
    %2 = arith.muli %c2_i32, %arg0 : i32
    %c1_i32 = arith.constant 1 : i32
    %3 = arith.subi %c1_i32, %2 : i32
    %4 = arith.muli %3, %c0_i32 : i32
    %5 = arith.addi %1, %4 : i32
    %6 = arith.index_cast %5 : i32 to index
    %c0 = arith.constant 0 : index
    %c0_0 = arith.constant 0 : index
    %7 = vector.load %arg1[%6, %c0, %c0_0] : memref<8x8x128xbf16, #tpu.memory_space<vmem>>, vector<1x8x128xbf16>
    %8 = vector.shape_cast %7 : vector<1x8x128xbf16> to vector<8x128xbf16>
    %c0_1 = arith.constant 0 : index
    %c0_2 = arith.constant 0 : index
    %c0_3 = arith.constant 0 : index
    %9 = vector.load %arg2[%c0_1, %c0_2, %c0_3] : memref<1x128x512xbf16, #tpu.memory_space<vmem>>, vector<1x128x512xbf16>
    %10 = vector.shape_cast %9 : vector<1x128x512xbf16> to vector<128x512xbf16>
    %cst_4 = arith.constant dense<0.000000e+00> : vector<8x512xf32>
    %11 = tpu.matmul %8, %10, %cst_4 {dimension_numbers = #tpu.dot_dimension_numbers<[1], [0], [0], [1], [0, 0, 1, 1], [], []>} : vector<8x128xbf16>, vector<128x512xbf16>, vector<8x512xf32> -> vector<8x512xf32>
    %12 = arith.truncf %0 : vector<8x128xf32> to vector<8x128xbf16>
    %c0_5 = arith.constant 0 : index
    %c0_6 = arith.constant 0 : index
    %c0_7 = arith.constant 0 : index
    %13 = vector.load %arg3[%c0_5, %c0_6, %c0_7] : memref<1x128x512xbf16, #tpu.memory_space<vmem>>, vector<1x128x512xbf16>
    %14 = vector.shape_cast %13 : vector<1x128x512xbf16> to vector<128x512xbf16>
    %cst_8 = arith.constant dense<0.000000e+00> : vector<8x512xf32>
    %15 = tpu.matmul %12, %14, %cst_8 {dimension_numbers = #tpu.dot_dimension_numbers<[1], [0], [0], [1], [0, 0, 1, 1], [], []>} : vector<8x128xbf16>, vector<128x512xbf16>, vector<8x512xf32> -> vector<8x512xf32>
    %16 = arith.addf %11, %15 : vector<8x512xf32>
    %c0_9 = arith.constant 0 : index
    %c0_10 = arith.constant 0 : index
    %c0_11 = arith.constant 0 : index
    %17 = vector.load %arg4[%c0_9, %c0_10, %c0_11] : memref<1x1x512xf32, #tpu.memory_space<vmem>>, vector<1x1x512xf32>
    %18 = vector.shape_cast %17 : vector<1x1x512xf32> to vector<1x512xf32>
    %19 = vector.broadcast %18 : vector<1x512xf32> to vector<8x512xf32>
    %20 = arith.addf %16, %19 : vector<8x512xf32>
    %21 = vector.extract_strided_slice %20 {offsets = [0, 0], sizes = [8, 128], strides = [1, 1]} : vector<8x512xf32> to vector<8x128xf32>
    %22 = arith.negf %21 : vector<8x128xf32>
    %23 = math.exp %22 : vector<8x128xf32>
    %cst_12 = arith.constant 1.000000e+00 : f32
    %24 = vector.broadcast %cst_12 : f32 to vector<8x128xf32>
    %25 = arith.addf %24, %23 : vector<8x128xf32>
    %26 = arith.divf %24, %25 : vector<8x128xf32>
    %27 = vector.extract_strided_slice %20 {offsets = [0, 128], sizes = [8, 128], strides = [1, 1]} : vector<8x512xf32> to vector<8x128xf32>
    %28 = arith.negf %27 : vector<8x128xf32>
    %29 = math.exp %28 : vector<8x128xf32>
    %cst_13 = arith.constant 1.000000e+00 : f32
    %30 = vector.broadcast %cst_13 : f32 to vector<8x128xf32>
    %31 = arith.addf %30, %29 : vector<8x128xf32>
    %32 = arith.divf %30, %31 : vector<8x128xf32>
    %33 = vector.extract_strided_slice %20 {offsets = [0, 256], sizes = [8, 128], strides = [1, 1]} : vector<8x512xf32> to vector<8x128xf32>
    %34 = math.tanh %33 : vector<8x128xf32>
    %35 = vector.extract_strided_slice %20 {offsets = [0, 384], sizes = [8, 128], strides = [1, 1]} : vector<8x512xf32> to vector<8x128xf32>
    %36 = arith.negf %35 : vector<8x128xf32>
    %37 = math.exp %36 : vector<8x128xf32>
    %cst_14 = arith.constant 1.000000e+00 : f32
    %38 = vector.broadcast %cst_14 : f32 to vector<8x128xf32>
    %39 = arith.addf %38, %37 : vector<8x128xf32>
    %40 = arith.divf %38, %39 : vector<8x128xf32>
    %41 = arith.mulf %32, %0 : vector<8x128xf32>
    %42 = arith.mulf %26, %34 : vector<8x128xf32>
    %43 = arith.addf %41, %42 : vector<8x128xf32>
    %44 = math.tanh %43 : vector<8x128xf32>
    %45 = arith.mulf %40, %44 : vector<8x128xf32>
    %46 = arith.index_cast %5 : i32 to index
    %c0_15 = arith.constant 0 : index
    %c0_16 = arith.constant 0 : index
    %47 = vector.load %arg5[%46, %c0_15, %c0_16] : memref<8x8x128xf32, #tpu.memory_space<vmem>>, vector<1x8x128xf32>
    %48 = vector.shape_cast %47 : vector<1x8x128xf32> to vector<8x128xf32>
    %49 = vector.shape_cast %45 : vector<8x128xf32> to vector<1x8x128xf32>
    tpu.vector_store %arg5[%46, %c0_15, %c0_16], %49 {strides = array<i32>} : memref<8x8x128xf32, #tpu.memory_space<vmem>>, vector<1x8x128xf32>,
    %c1_i32_17 = arith.constant 1 : i32
    %c7_i32_18 = arith.constant 7 : i32
    %50 = arith.muli %arg0, %c7_i32_18 : i32
    %c2_i32_19 = arith.constant 2 : i32
    %51 = arith.muli %c2_i32_19, %arg0 : i32
    %c1_i32_20 = arith.constant 1 : i32
    %52 = arith.subi %c1_i32_20, %51 : i32
    %53 = arith.muli %52, %c1_i32_17 : i32
    %54 = arith.addi %50, %53 : i32
    %55 = arith.index_cast %54 : i32 to index
    %c0_21 = arith.constant 0 : index
    %c0_22 = arith.constant 0 : index
    %56 = vector.load %arg1[%55, %c0_21, %c0_22] : memref<8x8x128xbf16, #tpu.memory_space<vmem>>, vector<1x8x128xbf16>
    %57 = vector.shape_cast %56 : vector<1x8x128xbf16> to vector<8x128xbf16>
    %c0_23 = arith.constant 0 : index
    %c0_24 = arith.constant 0 : index
    %c0_25 = arith.constant 0 : index
    %58 = vector.load %arg2[%c0_23, %c0_24, %c0_25] : memref<1x128x512xbf16, #tpu.memory_space<vmem>>, vector<1x128x512xbf16>
    %59 = vector.shape_cast %58 : vector<1x128x512xbf16> to vector<128x512xbf16>
    %cst_26 = arith.constant dense<0.000000e+00> : vector<8x512xf32>
    %60 = tpu.matmul %57, %59, %cst_26 {dimension_numbers = #tpu.dot_dimension_numbers<[1], [0], [0], [1], [0, 0, 1, 1], [], []>} : vector<8x128xbf16>, vector<128x512xbf16>, vector<8x512xf32> -> vector<8x512xf32>
    %61 = arith.truncf %45 : vector<8x128xf32> to vector<8x128xbf16>
    %c0_27 = arith.constant 0 : index
    %c0_28 = arith.constant 0 : index
    %c0_29 = arith.constant 0 : index
    %62 = vector.load %arg3[%c0_27, %c0_28, %c0_29] : memref<1x128x512xbf16, #tpu.memory_space<vmem>>, vector<1x128x512xbf16>
    %63 = vector.shape_cast %62 : vector<1x128x512xbf16> to vector<128x512xbf16>
    %cst_30 = arith.constant dense<0.000000e+00> : vector<8x512xf32>
    %64 = tpu.matmul %61, %63, %cst_30 {dimension_numbers = #tpu.dot_dimension_numbers<[1], [0], [0], [1], [0, 0, 1, 1], [], []>} : vector<8x128xbf16>, vector<128x512xbf16>, vector<8x512xf32> -> vector<8x512xf32>
    %65 = arith.addf %60, %64 : vector<8x512xf32>
    %c0_31 = arith.constant 0 : index
    %c0_32 = arith.constant 0 : index
    %c0_33 = arith.constant 0 : index
    %66 = vector.load %arg4[%c0_31, %c0_32, %c0_33] : memref<1x1x512xf32, #tpu.memory_space<vmem>>, vector<1x1x512xf32>
    %67 = vector.shape_cast %66 : vector<1x1x512xf32> to vector<1x512xf32>
    %68 = vector.broadcast %67 : vector<1x512xf32> to vector<8x512xf32>
    %69 = arith.addf %65, %68 : vector<8x512xf32>
    %70 = vector.extract_strided_slice %69 {offsets = [0, 0], sizes = [8, 128], strides = [1, 1]} : vector<8x512xf32> to vector<8x128xf32>
    %71 = arith.negf %70 : vector<8x128xf32>
    %72 = math.exp %71 : vector<8x128xf32>
    %cst_34 = arith.constant 1.000000e+00 : f32
    %73 = vector.broadcast %cst_34 : f32 to vector<8x128xf32>
    %74 = arith.addf %73, %72 : vector<8x128xf32>
    %75 = arith.divf %73, %74 : vector<8x128xf32>
    %76 = vector.extract_strided_slice %69 {offsets = [0, 128], sizes = [8, 128], strides = [1, 1]} : vector<8x512xf32> to vector<8x128xf32>
    %77 = arith.negf %76 : vector<8x128xf32>
    %78 = math.exp %77 : vector<8x128xf32>
    %cst_35 = arith.constant 1.000000e+00 : f32
    %79 = vector.broadcast %cst_35 : f32 to vector<8x128xf32>
    %80 = arith.addf %79, %78 : vector<8x128xf32>
    %81 = arith.divf %79, %80 : vector<8x128xf32>
    %82 = vector.extract_strided_slice %69 {offsets = [0, 256], sizes = [8, 128], strides = [1, 1]} : vector<8x512xf32> to vector<8x128xf32>
    %83 = math.tanh %82 : vector<8x128xf32>
    %84 = vector.extract_strided_slice %69 {offsets = [0, 384], sizes = [8, 128], strides = [1, 1]} : vector<8x512xf32> to vector<8x128xf32>
    %85 = arith.negf %84 : vector<8x128xf32>
    %86 = math.exp %85 : vector<8x128xf32>
    %cst_36 = arith.constant 1.000000e+00 : f32
    %87 = vector.broadcast %cst_36 : f32 to vector<8x128xf32>
    %88 = arith.addf %87, %86 : vector<8x128xf32>
    %89 = arith.divf %87, %88 : vector<8x128xf32>
    %90 = arith.mulf %81, %43 : vector<8x128xf32>
    %91 = arith.mulf %75, %83 : vector<8x128xf32>
    %92 = arith.addf %90, %91 : vector<8x128xf32>
    %93 = math.tanh %92 : vector<8x128xf32>
    %94 = arith.mulf %89, %93 : vector<8x128xf32>
    %95 = arith.index_cast %54 : i32 to index
    %c0_37 = arith.constant 0 : index
    %c0_38 = arith.constant 0 : index
    %96 = vector.load %arg5[%95, %c0_37, %c0_38] : memref<8x8x128xf32, #tpu.memory_space<vmem>>, vector<1x8x128xf32>
    %97 = vector.shape_cast %96 : vector<1x8x128xf32> to vector<8x128xf32>
    %98 = vector.shape_cast %94 : vector<8x128xf32> to vector<1x8x128xf32>
    tpu.vector_store %arg5[%95, %c0_37, %c0_38], %98 {strides = array<i32>} : memref<8x8x128xf32, #tpu.memory_space<vmem>>, vector<1x8x128xf32>,
    %c2_i32_39 = arith.constant 2 : i32
    %c7_i32_40 = arith.constant 7 : i32
    %99 = arith.muli %arg0, %c7_i32_40 : i32
    %c2_i32_41 = arith.constant 2 : i32
    %100 = arith.muli %c2_i32_41, %arg0 : i32
    %c1_i32_42 = arith.constant 1 : i32
    %101 = arith.subi %c1_i32_42, %100 : i32
    %102 = arith.muli %101, %c2_i32_39 : i32
    %103 = arith.addi %99, %102 : i32
    %104 = arith.index_cast %103 : i32 to index
    %c0_43 = arith.constant 0 : index
    %c0_44 = arith.constant 0 : index
    %105 = vector.load %arg1[%104, %c0_43, %c0_44] : memref<8x8x128xbf16, #tpu.memory_space<vmem>>, vector<1x8x128xbf16>
    %106 = vector.shape_cast %105 : vector<1x8x128xbf16> to vector<8x128xbf16>
    %c0_45 = arith.constant 0 : index
    %c0_46 = arith.constant 0 : index
    %c0_47 = arith.constant 0 : index
    %107 = vector.load %arg2[%c0_45, %c0_46, %c0_47] : memref<1x128x512xbf16, #tpu.memory_space<vmem>>, vector<1x128x512xbf16>
    %108 = vector.shape_cast %107 : vector<1x128x512xbf16> to vector<128x512xbf16>
    %cst_48 = arith.constant dense<0.000000e+00> : vector<8x512xf32>
    %109 = tpu.matmul %106, %108, %cst_48 {dimension_numbers = #tpu.dot_dimension_numbers<[1], [0], [0], [1], [0, 0, 1, 1], [], []>} : vector<8x128xbf16>, vector<128x512xbf16>, vector<8x512xf32> -> vector<8x512xf32>
    %110 = arith.truncf %94 : vector<8x128xf32> to vector<8x128xbf16>
    %c0_49 = arith.constant 0 : index
    %c0_50 = arith.constant 0 : index
    %c0_51 = arith.constant 0 : index
    %111 = vector.load %arg3[%c0_49, %c0_50, %c0_51] : memref<1x128x512xbf16, #tpu.memory_space<vmem>>, vector<1x128x512xbf16>
    %112 = vector.shape_cast %111 : vector<1x128x512xbf16> to vector<128x512xbf16>
    %cst_52 = arith.constant dense<0.000000e+00> : vector<8x512xf32>
    %113 = tpu.matmul %110, %112, %cst_52 {dimension_numbers = #tpu.dot_dimension_numbers<[1], [0], [0], [1], [0, 0, 1, 1], [], []>} : vector<8x128xbf16>, vector<128x512xbf16>, vector<8x512xf32> -> vector<8x512xf32>
    %114 = arith.addf %109, %113 : vector<8x512xf32>
    %c0_53 = arith.constant 0 : index
    %c0_54 = arith.constant 0 : index
    %c0_55 = arith.constant 0 : index
    %115 = vector.load %arg4[%c0_53, %c0_54, %c0_55] : memref<1x1x512xf32, #tpu.memory_space<vmem>>, vector<1x1x512xf32>
    %116 = vector.shape_cast %115 : vector<1x1x512xf32> to vector<1x512xf32>
    %117 = vector.broadcast %116 : vector<1x512xf32> to vector<8x512xf32>
    %118 = arith.addf %114, %117 : vector<8x512xf32>
    %119 = vector.extract_strided_slice %118 {offsets = [0, 0], sizes = [8, 128], strides = [1, 1]} : vector<8x512xf32> to vector<8x128xf32>
    %120 = arith.negf %119 : vector<8x128xf32>
    %121 = math.exp %120 : vector<8x128xf32>
    %cst_56 = arith.constant 1.000000e+00 : f32
    %122 = vector.broadcast %cst_56 : f32 to vector<8x128xf32>
    %123 = arith.addf %122, %121 : vector<8x128xf32>
    %124 = arith.divf %122, %123 : vector<8x128xf32>
    %125 = vector.extract_strided_slice %118 {offsets = [0, 128], sizes = [8, 128], strides = [1, 1]} : vector<8x512xf32> to vector<8x128xf32>
    %126 = arith.negf %125 : vector<8x128xf32>
    %127 = math.exp %126 : vector<8x128xf32>
    %cst_57 = arith.constant 1.000000e+00 : f32
    %128 = vector.broadcast %cst_57 : f32 to vector<8x128xf32>
    %129 = arith.addf %128, %127 : vector<8x128xf32>
    %130 = arith.divf %128, %129 : vector<8x128xf32>
    %131 = vector.extract_strided_slice %118 {offsets = [0, 256], sizes = [8, 128], strides = [1, 1]} : vector<8x512xf32> to vector<8x128xf32>
    %132 = math.tanh %131 : vector<8x128xf32>
    %133 = vector.extract_strided_slice %118 {offsets = [0, 384], sizes = [8, 128], strides = [1, 1]} : vector<8x512xf32> to vector<8x128xf32>
    %134 = arith.negf %133 : vector<8x128xf32>
    %135 = math.exp %134 : vector<8x128xf32>
    %cst_58 = arith.constant 1.000000e+00 : f32
    %136 = vector.broadcast %cst_58 : f32 to vector<8x128xf32>
    %137 = arith.addf %136, %135 : vector<8x128xf32>
    %138 = arith.divf %136, %137 : vector<8x128xf32>
    %139 = arith.mulf %130, %92 : vector<8x128xf32>
    %140 = arith.mulf %124, %132 : vector<8x128xf32>
    %141 = arith.addf %139, %140 : vector<8x128xf32>
    %142 = math.tanh %141 : vector<8x128xf32>
    %143 = arith.mulf %138, %142 : vector<8x128xf32>
    %144 = arith.index_cast %103 : i32 to index
    %c0_59 = arith.constant 0 : index
    %c0_60 = arith.constant 0 : index
    %145 = vector.load %arg5[%144, %c0_59, %c0_60] : memref<8x8x128xf32, #tpu.memory_space<vmem>>, vector<1x8x128xf32>
    %146 = vector.shape_cast %145 : vector<1x8x128xf32> to vector<8x128xf32>
    %147 = vector.shape_cast %143 : vector<8x128xf32> to vector<1x8x128xf32>
    tpu.vector_store %arg5[%144, %c0_59, %c0_60], %147 {strides = array<i32>} : memref<8x8x128xf32, #tpu.memory_space<vmem>>, vector<1x8x128xf32>,
    %c3_i32 = arith.constant 3 : i32
    %c7_i32_61 = arith.constant 7 : i32
    %148 = arith.muli %arg0, %c7_i32_61 : i32
    %c2_i32_62 = arith.constant 2 : i32
    %149 = arith.muli %c2_i32_62, %arg0 : i32
    %c1_i32_63 = arith.constant 1 : i32
    %150 = arith.subi %c1_i32_63, %149 : i32
    %151 = arith.muli %150, %c3_i32 : i32
    %152 = arith.addi %148, %151 : i32
    %153 = arith.index_cast %152 : i32 to index
    %c0_64 = arith.constant 0 : index
    %c0_65 = arith.constant 0 : index
    %154 = vector.load %arg1[%153, %c0_64, %c0_65] : memref<8x8x128xbf16, #tpu.memory_space<vmem>>, vector<1x8x128xbf16>
    %155 = vector.shape_cast %154 : vector<1x8x128xbf16> to vector<8x128xbf16>
    %c0_66 = arith.constant 0 : index
    %c0_67 = arith.constant 0 : index
    %c0_68 = arith.constant 0 : index
    %156 = vector.load %arg2[%c0_66, %c0_67, %c0_68] : memref<1x128x512xbf16, #tpu.memory_space<vmem>>, vector<1x128x512xbf16>
    %157 = vector.shape_cast %156 : vector<1x128x512xbf16> to vector<128x512xbf16>
    %cst_69 = arith.constant dense<0.000000e+00> : vector<8x512xf32>
    %158 = tpu.matmul %155, %157, %cst_69 {dimension_numbers = #tpu.dot_dimension_numbers<[1], [0], [0], [1], [0, 0, 1, 1], [], []>} : vector<8x128xbf16>, vector<128x512xbf16>, vector<8x512xf32> -> vector<8x512xf32>
    %159 = arith.truncf %143 : vector<8x128xf32> to vector<8x128xbf16>
    %c0_70 = arith.constant 0 : index
    %c0_71 = arith.constant 0 : index
    %c0_72 = arith.constant 0 : index
    %160 = vector.load %arg3[%c0_70, %c0_71, %c0_72] : memref<1x128x512xbf16, #tpu.memory_space<vmem>>, vector<1x128x512xbf16>
    %161 = vector.shape_cast %160 : vector<1x128x512xbf16> to vector<128x512xbf16>
    %cst_73 = arith.constant dense<0.000000e+00> : vector<8x512xf32>
    %162 = tpu.matmul %159, %161, %cst_73 {dimension_numbers = #tpu.dot_dimension_numbers<[1], [0], [0], [1], [0, 0, 1, 1], [], []>} : vector<8x128xbf16>, vector<128x512xbf16>, vector<8x512xf32> -> vector<8x512xf32>
    %163 = arith.addf %158, %162 : vector<8x512xf32>
    %c0_74 = arith.constant 0 : index
    %c0_75 = arith.constant 0 : index
    %c0_76 = arith.constant 0 : index
    %164 = vector.load %arg4[%c0_74, %c0_75, %c0_76] : memref<1x1x512xf32, #tpu.memory_space<vmem>>, vector<1x1x512xf32>
    %165 = vector.shape_cast %164 : vector<1x1x512xf32> to vector<1x512xf32>
    %166 = vector.broadcast %165 : vector<1x512xf32> to vector<8x512xf32>
    %167 = arith.addf %163, %166 : vector<8x512xf32>
    %168 = vector.extract_strided_slice %167 {offsets = [0, 0], sizes = [8, 128], strides = [1, 1]} : vector<8x512xf32> to vector<8x128xf32>
    %169 = arith.negf %168 : vector<8x128xf32>
    %170 = math.exp %169 : vector<8x128xf32>
    %cst_77 = arith.constant 1.000000e+00 : f32
    %171 = vector.broadcast %cst_77 : f32 to vector<8x128xf32>
    %172 = arith.addf %171, %170 : vector<8x128xf32>
    %173 = arith.divf %171, %172 : vector<8x128xf32>
    %174 = vector.extract_strided_slice %167 {offsets = [0, 128], sizes = [8, 128], strides = [1, 1]} : vector<8x512xf32> to vector<8x128xf32>
    %175 = arith.negf %174 : vector<8x128xf32>
    %176 = math.exp %175 : vector<8x128xf32>
    %cst_78 = arith.constant 1.000000e+00 : f32
    %177 = vector.broadcast %cst_78 : f32 to vector<8x128xf32>
    %178 = arith.addf %177, %176 : vector<8x128xf32>
    %179 = arith.divf %177, %178 : vector<8x128xf32>
    %180 = vector.extract_strided_slice %167 {offsets = [0, 256], sizes = [8, 128], strides = [1, 1]} : vector<8x512xf32> to vector<8x128xf32>
    %181 = math.tanh %180 : vector<8x128xf32>
    %182 = vector.extract_strided_slice %167 {offsets = [0, 384], sizes = [8, 128], strides = [1, 1]} : vector<8x512xf32> to vector<8x128xf32>
    %183 = arith.negf %182 : vector<8x128xf32>
    %184 = math.exp %183 : vector<8x128xf32>
    %cst_79 = arith.constant 1.000000e+00 : f32
    %185 = vector.broadcast %cst_79 : f32 to vector<8x128xf32>
    %186 = arith.addf %185, %184 : vector<8x128xf32>
    %187 = arith.divf %185, %186 : vector<8x128xf32>
    %188 = arith.mulf %179, %141 : vector<8x128xf32>
    %189 = arith.mulf %173, %181 : vector<8x128xf32>
    %190 = arith.addf %188, %189 : vector<8x128xf32>
    %191 = math.tanh %190 : vector<8x128xf32>
    %192 = arith.mulf %187, %191 : vector<8x128xf32>
    %193 = arith.index_cast %152 : i32 to index
    %c0_80 = arith.constant 0 : index
    %c0_81 = arith.constant 0 : index
    %194 = vector.load %arg5[%193, %c0_80, %c0_81] : memref<8x8x128xf32, #tpu.memory_space<vmem>>, vector<1x8x128xf32>
    %195 = vector.shape_cast %194 : vector<1x8x128xf32> to vector<8x128xf32>
    %196 = vector.shape_cast %192 : vector<8x128xf32> to vector<1x8x128xf32>
    tpu.vector_store %arg5[%193, %c0_80, %c0_81], %196 {strides = array<i32>} : memref<8x8x128xf32, #tpu.memory_space<vmem>>, vector<1x8x128xf32>,
    %c4_i32 = arith.constant 4 : i32
    %c7_i32_82 = arith.constant 7 : i32
    %197 = arith.muli %arg0, %c7_i32_82 : i32
    %c2_i32_83 = arith.constant 2 : i32
    %198 = arith.muli %c2_i32_83, %arg0 : i32
    %c1_i32_84 = arith.constant 1 : i32
    %199 = arith.subi %c1_i32_84, %198 : i32
    %200 = arith.muli %199, %c4_i32 : i32
    %201 = arith.addi %197, %200 : i32
    %202 = arith.index_cast %201 : i32 to index
    %c0_85 = arith.constant 0 : index
    %c0_86 = arith.constant 0 : index
    %203 = vector.load %arg1[%202, %c0_85, %c0_86] : memref<8x8x128xbf16, #tpu.memory_space<vmem>>, vector<1x8x128xbf16>
    %204 = vector.shape_cast %203 : vector<1x8x128xbf16> to vector<8x128xbf16>
    %c0_87 = arith.constant 0 : index
    %c0_88 = arith.constant 0 : index
    %c0_89 = arith.constant 0 : index
    %205 = vector.load %arg2[%c0_87, %c0_88, %c0_89] : memref<1x128x512xbf16, #tpu.memory_space<vmem>>, vector<1x128x512xbf16>
    %206 = vector.shape_cast %205 : vector<1x128x512xbf16> to vector<128x512xbf16>
    %cst_90 = arith.constant dense<0.000000e+00> : vector<8x512xf32>
    %207 = tpu.matmul %204, %206, %cst_90 {dimension_numbers = #tpu.dot_dimension_numbers<[1], [0], [0], [1], [0, 0, 1, 1], [], []>} : vector<8x128xbf16>, vector<128x512xbf16>, vector<8x512xf32> -> vector<8x512xf32>
    %208 = arith.truncf %192 : vector<8x128xf32> to vector<8x128xbf16>
    %c0_91 = arith.constant 0 : index
    %c0_92 = arith.constant 0 : index
    %c0_93 = arith.constant 0 : index
    %209 = vector.load %arg3[%c0_91, %c0_92, %c0_93] : memref<1x128x512xbf16, #tpu.memory_space<vmem>>, vector<1x128x512xbf16>
    %210 = vector.shape_cast %209 : vector<1x128x512xbf16> to vector<128x512xbf16>
    %cst_94 = arith.constant dense<0.000000e+00> : vector<8x512xf32>
    %211 = tpu.matmul %208, %210, %cst_94 {dimension_numbers = #tpu.dot_dimension_numbers<[1], [0], [0], [1], [0, 0, 1, 1], [], []>} : vector<8x128xbf16>, vector<128x512xbf16>, vector<8x512xf32> -> vector<8x512xf32>
    %212 = arith.addf %207, %211 : vector<8x512xf32>
    %c0_95 = arith.constant 0 : index
    %c0_96 = arith.constant 0 : index
    %c0_97 = arith.constant 0 : index
    %213 = vector.load %arg4[%c0_95, %c0_96, %c0_97] : memref<1x1x512xf32, #tpu.memory_space<vmem>>, vector<1x1x512xf32>
    %214 = vector.shape_cast %213 : vector<1x1x512xf32> to vector<1x512xf32>
    %215 = vector.broadcast %214 : vector<1x512xf32> to vector<8x512xf32>
    %216 = arith.addf %212, %215 : vector<8x512xf32>
    %217 = vector.extract_strided_slice %216 {offsets = [0, 0], sizes = [8, 128], strides = [1, 1]} : vector<8x512xf32> to vector<8x128xf32>
    %218 = arith.negf %217 : vector<8x128xf32>
    %219 = math.exp %218 : vector<8x128xf32>
    %cst_98 = arith.constant 1.000000e+00 : f32
    %220 = vector.broadcast %cst_98 : f32 to vector<8x128xf32>
    %221 = arith.addf %220, %219 : vector<8x128xf32>
    %222 = arith.divf %220, %221 : vector<8x128xf32>
    %223 = vector.extract_strided_slice %216 {offsets = [0, 128], sizes = [8, 128], strides = [1, 1]} : vector<8x512xf32> to vector<8x128xf32>
    %224 = arith.negf %223 : vector<8x128xf32>
    %225 = math.exp %224 : vector<8x128xf32>
    %cst_99 = arith.constant 1.000000e+00 : f32
    %226 = vector.broadcast %cst_99 : f32 to vector<8x128xf32>
    %227 = arith.addf %226, %225 : vector<8x128xf32>
    %228 = arith.divf %226, %227 : vector<8x128xf32>
    %229 = vector.extract_strided_slice %216 {offsets = [0, 256], sizes = [8, 128], strides = [1, 1]} : vector<8x512xf32> to vector<8x128xf32>
    %230 = math.tanh %229 : vector<8x128xf32>
    %231 = vector.extract_strided_slice %216 {offsets = [0, 384], sizes = [8, 128], strides = [1, 1]} : vector<8x512xf32> to vector<8x128xf32>
    %232 = arith.negf %231 : vector<8x128xf32>
    %233 = math.exp %232 : vector<8x128xf32>
    %cst_100 = arith.constant 1.000000e+00 : f32
    %234 = vector.broadcast %cst_100 : f32 to vector<8x128xf32>
    %235 = arith.addf %234, %233 : vector<8x128xf32>
    %236 = arith.divf %234, %235 : vector<8x128xf32>
    %237 = arith.mulf %228, %190 : vector<8x128xf32>
    %238 = arith.mulf %222, %230 : vector<8x128xf32>
    %239 = arith.addf %237, %238 : vector<8x128xf32>
    %240 = math.tanh %239 : vector<8x128xf32>
    %241 = arith.mulf %236, %240 : vector<8x128xf32>
    %242 = arith.index_cast %201 : i32 to index
    %c0_101 = arith.constant 0 : index
    %c0_102 = arith.constant 0 : index
    %243 = vector.load %arg5[%242, %c0_101, %c0_102] : memref<8x8x128xf32, #tpu.memory_space<vmem>>, vector<1x8x128xf32>
    %244 = vector.shape_cast %243 : vector<1x8x128xf32> to vector<8x128xf32>
    %245 = vector.shape_cast %241 : vector<8x128xf32> to vector<1x8x128xf32>
    tpu.vector_store %arg5[%242, %c0_101, %c0_102], %245 {strides = array<i32>} : memref<8x8x128xf32, #tpu.memory_space<vmem>>, vector<1x8x128xf32>,
    %c5_i32 = arith.constant 5 : i32
    %c7_i32_103 = arith.constant 7 : i32
    %246 = arith.muli %arg0, %c7_i32_103 : i32
    %c2_i32_104 = arith.constant 2 : i32
    %247 = arith.muli %c2_i32_104, %arg0 : i32
    %c1_i32_105 = arith.constant 1 : i32
    %248 = arith.subi %c1_i32_105, %247 : i32
    %249 = arith.muli %248, %c5_i32 : i32
    %250 = arith.addi %246, %249 : i32
    %251 = arith.index_cast %250 : i32 to index
    %c0_106 = arith.constant 0 : index
    %c0_107 = arith.constant 0 : index
    %252 = vector.load %arg1[%251, %c0_106, %c0_107] : memref<8x8x128xbf16, #tpu.memory_space<vmem>>, vector<1x8x128xbf16>
    %253 = vector.shape_cast %252 : vector<1x8x128xbf16> to vector<8x128xbf16>
    %c0_108 = arith.constant 0 : index
    %c0_109 = arith.constant 0 : index
    %c0_110 = arith.constant 0 : index
    %254 = vector.load %arg2[%c0_108, %c0_109, %c0_110] : memref<1x128x512xbf16, #tpu.memory_space<vmem>>, vector<1x128x512xbf16>
    %255 = vector.shape_cast %254 : vector<1x128x512xbf16> to vector<128x512xbf16>
    %cst_111 = arith.constant dense<0.000000e+00> : vector<8x512xf32>
    %256 = tpu.matmul %253, %255, %cst_111 {dimension_numbers = #tpu.dot_dimension_numbers<[1], [0], [0], [1], [0, 0, 1, 1], [], []>} : vector<8x128xbf16>, vector<128x512xbf16>, vector<8x512xf32> -> vector<8x512xf32>
    %257 = arith.truncf %241 : vector<8x128xf32> to vector<8x128xbf16>
    %c0_112 = arith.constant 0 : index
    %c0_113 = arith.constant 0 : index
    %c0_114 = arith.constant 0 : index
    %258 = vector.load %arg3[%c0_112, %c0_113, %c0_114] : memref<1x128x512xbf16, #tpu.memory_space<vmem>>, vector<1x128x512xbf16>
    %259 = vector.shape_cast %258 : vector<1x128x512xbf16> to vector<128x512xbf16>
    %cst_115 = arith.constant dense<0.000000e+00> : vector<8x512xf32>
    %260 = tpu.matmul %257, %259, %cst_115 {dimension_numbers = #tpu.dot_dimension_numbers<[1], [0], [0], [1], [0, 0, 1, 1], [], []>} : vector<8x128xbf16>, vector<128x512xbf16>, vector<8x512xf32> -> vector<8x512xf32>
    %261 = arith.addf %256, %260 : vector<8x512xf32>
    %c0_116 = arith.constant 0 : index
    %c0_117 = arith.constant 0 : index
    %c0_118 = arith.constant 0 : index
    %262 = vector.load %arg4[%c0_116, %c0_117, %c0_118] : memref<1x1x512xf32, #tpu.memory_space<vmem>>, vector<1x1x512xf32>
    %263 = vector.shape_cast %262 : vector<1x1x512xf32> to vector<1x512xf32>
    %264 = vector.broadcast %263 : vector<1x512xf32> to vector<8x512xf32>
    %265 = arith.addf %261, %264 : vector<8x512xf32>
    %266 = vector.extract_strided_slice %265 {offsets = [0, 0], sizes = [8, 128], strides = [1, 1]} : vector<8x512xf32> to vector<8x128xf32>
    %267 = arith.negf %266 : vector<8x128xf32>
    %268 = math.exp %267 : vector<8x128xf32>
    %cst_119 = arith.constant 1.000000e+00 : f32
    %269 = vector.broadcast %cst_119 : f32 to vector<8x128xf32>
    %270 = arith.addf %269, %268 : vector<8x128xf32>
    %271 = arith.divf %269, %270 : vector<8x128xf32>
    %272 = vector.extract_strided_slice %265 {offsets = [0, 128], sizes = [8, 128], strides = [1, 1]} : vector<8x512xf32> to vector<8x128xf32>
    %273 = arith.negf %272 : vector<8x128xf32>
    %274 = math.exp %273 : vector<8x128xf32>
    %cst_120 = arith.constant 1.000000e+00 : f32
    %275 = vector.broadcast %cst_120 : f32 to vector<8x128xf32>
    %276 = arith.addf %275, %274 : vector<8x128xf32>
    %277 = arith.divf %275, %276 : vector<8x128xf32>
    %278 = vector.extract_strided_slice %265 {offsets = [0, 256], sizes = [8, 128], strides = [1, 1]} : vector<8x512xf32> to vector<8x128xf32>
    %279 = math.tanh %278 : vector<8x128xf32>
    %280 = vector.extract_strided_slice %265 {offsets = [0, 384], sizes = [8, 128], strides = [1, 1]} : vector<8x512xf32> to vector<8x128xf32>
    %281 = arith.negf %280 : vector<8x128xf32>
    %282 = math.exp %281 : vector<8x128xf32>
    %cst_121 = arith.constant 1.000000e+00 : f32
    %283 = vector.broadcast %cst_121 : f32 to vector<8x128xf32>
    %284 = arith.addf %283, %282 : vector<8x128xf32>
    %285 = arith.divf %283, %284 : vector<8x128xf32>
    %286 = arith.mulf %277, %239 : vector<8x128xf32>
    %287 = arith.mulf %271, %279 : vector<8x128xf32>
    %288 = arith.addf %286, %287 : vector<8x128xf32>
    %289 = math.tanh %288 : vector<8x128xf32>
    %290 = arith.mulf %285, %289 : vector<8x128xf32>
    %291 = arith.index_cast %250 : i32 to index
    %c0_122 = arith.constant 0 : index
    %c0_123 = arith.constant 0 : index
    %292 = vector.load %arg5[%291, %c0_122, %c0_123] : memref<8x8x128xf32, #tpu.memory_space<vmem>>, vector<1x8x128xf32>
    %293 = vector.shape_cast %292 : vector<1x8x128xf32> to vector<8x128xf32>
    %294 = vector.shape_cast %290 : vector<8x128xf32> to vector<1x8x128xf32>
    tpu.vector_store %arg5[%291, %c0_122, %c0_123], %294 {strides = array<i32>} : memref<8x8x128xf32, #tpu.memory_space<vmem>>, vector<1x8x128xf32>,
    %c6_i32 = arith.constant 6 : i32
    %c7_i32_124 = arith.constant 7 : i32
    %295 = arith.muli %arg0, %c7_i32_124 : i32
    %c2_i32_125 = arith.constant 2 : i32
    %296 = arith.muli %c2_i32_125, %arg0 : i32
    %c1_i32_126 = arith.constant 1 : i32
    %297 = arith.subi %c1_i32_126, %296 : i32
    %298 = arith.muli %297, %c6_i32 : i32
    %299 = arith.addi %295, %298 : i32
    %300 = arith.index_cast %299 : i32 to index
    %c0_127 = arith.constant 0 : index
    %c0_128 = arith.constant 0 : index
    %301 = vector.load %arg1[%300, %c0_127, %c0_128] : memref<8x8x128xbf16, #tpu.memory_space<vmem>>, vector<1x8x128xbf16>
    %302 = vector.shape_cast %301 : vector<1x8x128xbf16> to vector<8x128xbf16>
    %c0_129 = arith.constant 0 : index
    %c0_130 = arith.constant 0 : index
    %c0_131 = arith.constant 0 : index
    %303 = vector.load %arg2[%c0_129, %c0_130, %c0_131] : memref<1x128x512xbf16, #tpu.memory_space<vmem>>, vector<1x128x512xbf16>
    %304 = vector.shape_cast %303 : vector<1x128x512xbf16> to vector<128x512xbf16>
    %cst_132 = arith.constant dense<0.000000e+00> : vector<8x512xf32>
    %305 = tpu.matmul %302, %304, %cst_132 {dimension_numbers = #tpu.dot_dimension_numbers<[1], [0], [0], [1], [0, 0, 1, 1], [], []>} : vector<8x128xbf16>, vector<128x512xbf16>, vector<8x512xf32> -> vector<8x512xf32>
    %306 = arith.truncf %290 : vector<8x128xf32> to vector<8x128xbf16>
    %c0_133 = arith.constant 0 : index
    %c0_134 = arith.constant 0 : index
    %c0_135 = arith.constant 0 : index
    %307 = vector.load %arg3[%c0_133, %c0_134, %c0_135] : memref<1x128x512xbf16, #tpu.memory_space<vmem>>, vector<1x128x512xbf16>
    %308 = vector.shape_cast %307 : vector<1x128x512xbf16> to vector<128x512xbf16>
    %cst_136 = arith.constant dense<0.000000e+00> : vector<8x512xf32>
    %309 = tpu.matmul %306, %308, %cst_136 {dimension_numbers = #tpu.dot_dimension_numbers<[1], [0], [0], [1], [0, 0, 1, 1], [], []>} : vector<8x128xbf16>, vector<128x512xbf16>, vector<8x512xf32> -> vector<8x512xf32>
    %310 = arith.addf %305, %309 : vector<8x512xf32>
    %c0_137 = arith.constant 0 : index
    %c0_138 = arith.constant 0 : index
    %c0_139 = arith.constant 0 : index
    %311 = vector.load %arg4[%c0_137, %c0_138, %c0_139] : memref<1x1x512xf32, #tpu.memory_space<vmem>>, vector<1x1x512xf32>
    %312 = vector.shape_cast %311 : vector<1x1x512xf32> to vector<1x512xf32>
    %313 = vector.broadcast %312 : vector<1x512xf32> to vector<8x512xf32>
    %314 = arith.addf %310, %313 : vector<8x512xf32>
    %315 = vector.extract_strided_slice %314 {offsets = [0, 0], sizes = [8, 128], strides = [1, 1]} : vector<8x512xf32> to vector<8x128xf32>
    %316 = arith.negf %315 : vector<8x128xf32>
    %317 = math.exp %316 : vector<8x128xf32>
    %cst_140 = arith.constant 1.000000e+00 : f32
    %318 = vector.broadcast %cst_140 : f32 to vector<8x128xf32>
    %319 = arith.addf %318, %317 : vector<8x128xf32>
    %320 = arith.divf %318, %319 : vector<8x128xf32>
    %321 = vector.extract_strided_slice %314 {offsets = [0, 128], sizes = [8, 128], strides = [1, 1]} : vector<8x512xf32> to vector<8x128xf32>
    %322 = arith.negf %321 : vector<8x128xf32>
    %323 = math.exp %322 : vector<8x128xf32>
    %cst_141 = arith.constant 1.000000e+00 : f32
    %324 = vector.broadcast %cst_141 : f32 to vector<8x128xf32>
    %325 = arith.addf %324, %323 : vector<8x128xf32>
    %326 = arith.divf %324, %325 : vector<8x128xf32>
    %327 = vector.extract_strided_slice %314 {offsets = [0, 256], sizes = [8, 128], strides = [1, 1]} : vector<8x512xf32> to vector<8x128xf32>
    %328 = math.tanh %327 : vector<8x128xf32>
    %329 = vector.extract_strided_slice %314 {offsets = [0, 384], sizes = [8, 128], strides = [1, 1]} : vector<8x512xf32> to vector<8x128xf32>
    %330 = arith.negf %329 : vector<8x128xf32>
    %331 = math.exp %330 : vector<8x128xf32>
    %cst_142 = arith.constant 1.000000e+00 : f32
    %332 = vector.broadcast %cst_142 : f32 to vector<8x128xf32>
    %333 = arith.addf %332, %331 : vector<8x128xf32>
    %334 = arith.divf %332, %333 : vector<8x128xf32>
    %335 = arith.mulf %326, %288 : vector<8x128xf32>
    %336 = arith.mulf %320, %328 : vector<8x128xf32>
    %337 = arith.addf %335, %336 : vector<8x128xf32>
    %338 = math.tanh %337 : vector<8x128xf32>
    %339 = arith.mulf %334, %338 : vector<8x128xf32>
    %340 = arith.index_cast %299 : i32 to index
    %c0_143 = arith.constant 0 : index
    %c0_144 = arith.constant 0 : index
    %341 = vector.load %arg5[%340, %c0_143, %c0_144] : memref<8x8x128xf32, #tpu.memory_space<vmem>>, vector<1x8x128xf32>
    %342 = vector.shape_cast %341 : vector<1x8x128xf32> to vector<8x128xf32>
    %343 = vector.shape_cast %339 : vector<8x128xf32> to vector<1x8x128xf32>
    tpu.vector_store %arg5[%340, %c0_143, %c0_144], %343 {strides = array<i32>} : memref<8x8x128xf32, #tpu.memory_space<vmem>>, vector<1x8x128xf32>,
    %c7_i32_145 = arith.constant 7 : i32
    %c7_i32_146 = arith.constant 7 : i32
    %344 = arith.muli %arg0, %c7_i32_146 : i32
    %c2_i32_147 = arith.constant 2 : i32
    %345 = arith.muli %c2_i32_147, %arg0 : i32
    %c1_i32_148 = arith.constant 1 : i32
    %346 = arith.subi %c1_i32_148, %345 : i32
    %347 = arith.muli %346, %c7_i32_145 : i32
    %348 = arith.addi %344, %347 : i32
    %349 = arith.index_cast %348 : i32 to index
    %c0_149 = arith.constant 0 : index
    %c0_150 = arith.constant 0 : index
    %350 = vector.load %arg1[%349, %c0_149, %c0_150] : memref<8x8x128xbf16, #tpu.memory_space<vmem>>, vector<1x8x128xbf16>
    %351 = vector.shape_cast %350 : vector<1x8x128xbf16> to vector<8x128xbf16>
    %c0_151 = arith.constant 0 : index
    %c0_152 = arith.constant 0 : index
    %c0_153 = arith.constant 0 : index
    %352 = vector.load %arg2[%c0_151, %c0_152, %c0_153] : memref<1x128x512xbf16, #tpu.memory_space<vmem>>, vector<1x128x512xbf16>
    %353 = vector.shape_cast %352 : vector<1x128x512xbf16> to vector<128x512xbf16>
    %cst_154 = arith.constant dense<0.000000e+00> : vector<8x512xf32>
    %354 = tpu.matmul %351, %353, %cst_154 {dimension_numbers = #tpu.dot_dimension_numbers<[1], [0], [0], [1], [0, 0, 1, 1], [], []>} : vector<8x128xbf16>, vector<128x512xbf16>, vector<8x512xf32> -> vector<8x512xf32>
    %355 = arith.truncf %339 : vector<8x128xf32> to vector<8x128xbf16>
    %c0_155 = arith.constant 0 : index
    %c0_156 = arith.constant 0 : index
    %c0_157 = arith.constant 0 : index
    %356 = vector.load %arg3[%c0_155, %c0_156, %c0_157] : memref<1x128x512xbf16, #tpu.memory_space<vmem>>, vector<1x128x512xbf16>
    %357 = vector.shape_cast %356 : vector<1x128x512xbf16> to vector<128x512xbf16>
    %cst_158 = arith.constant dense<0.000000e+00> : vector<8x512xf32>
    %358 = tpu.matmul %355, %357, %cst_158 {dimension_numbers = #tpu.dot_dimension_numbers<[1], [0], [0], [1], [0, 0, 1, 1], [], []>} : vector<8x128xbf16>, vector<128x512xbf16>, vector<8x512xf32> -> vector<8x512xf32>
    %359 = arith.addf %354, %358 : vector<8x512xf32>
    %c0_159 = arith.constant 0 : index
    %c0_160 = arith.constant 0 : index
    %c0_161 = arith.constant 0 : index
    %360 = vector.load %arg4[%c0_159, %c0_160, %c0_161] : memref<1x1x512xf32, #tpu.memory_space<vmem>>, vector<1x1x512xf32>
    %361 = vector.shape_cast %360 : vector<1x1x512xf32> to vector<1x512xf32>
    %362 = vector.broadcast %361 : vector<1x512xf32> to vector<8x512xf32>
    %363 = arith.addf %359, %362 : vector<8x512xf32>
    %364 = vector.extract_strided_slice %363 {offsets = [0, 0], sizes = [8, 128], strides = [1, 1]} : vector<8x512xf32> to vector<8x128xf32>
    %365 = arith.negf %364 : vector<8x128xf32>
    %366 = math.exp %365 : vector<8x128xf32>
    %cst_162 = arith.constant 1.000000e+00 : f32
    %367 = vector.broadcast %cst_162 : f32 to vector<8x128xf32>
    %368 = arith.addf %367, %366 : vector<8x128xf32>
    %369 = arith.divf %367, %368 : vector<8x128xf32>
    %370 = vector.extract_strided_slice %363 {offsets = [0, 128], sizes = [8, 128], strides = [1, 1]} : vector<8x512xf32> to vector<8x128xf32>
    %371 = arith.negf %370 : vector<8x128xf32>
    %372 = math.exp %371 : vector<8x128xf32>
    %cst_163 = arith.constant 1.000000e+00 : f32
    %373 = vector.broadcast %cst_163 : f32 to vector<8x128xf32>
    %374 = arith.addf %373, %372 : vector<8x128xf32>
    %375 = arith.divf %373, %374 : vector<8x128xf32>
    %376 = vector.extract_strided_slice %363 {offsets = [0, 256], sizes = [8, 128], strides = [1, 1]} : vector<8x512xf32> to vector<8x128xf32>
    %377 = math.tanh %376 : vector<8x128xf32>
    %378 = vector.extract_strided_slice %363 {offsets = [0, 384], sizes = [8, 128], strides = [1, 1]} : vector<8x512xf32> to vector<8x128xf32>
    %379 = arith.negf %378 : vector<8x128xf32>
    %380 = math.exp %379 : vector<8x128xf32>
    %cst_164 = arith.constant 1.000000e+00 : f32
    %381 = vector.broadcast %cst_164 : f32 to vector<8x128xf32>
    %382 = arith.addf %381, %380 : vector<8x128xf32>
    %383 = arith.divf %381, %382 : vector<8x128xf32>
    %384 = arith.mulf %375, %337 : vector<8x128xf32>
    %385 = arith.mulf %369, %377 : vector<8x128xf32>
    %386 = arith.addf %384, %385 : vector<8x128xf32>
    %387 = math.tanh %386 : vector<8x128xf32>
    %388 = arith.mulf %383, %387 : vector<8x128xf32>
    %389 = arith.index_cast %348 : i32 to index
    %c0_165 = arith.constant 0 : index
    %c0_166 = arith.constant 0 : index
    %390 = vector.load %arg5[%389, %c0_165, %c0_166] : memref<8x8x128xf32, #tpu.memory_space<vmem>>, vector<1x8x128xf32>
    %391 = vector.shape_cast %390 : vector<1x8x128xf32> to vector<8x128xf32>
    %392 = vector.shape_cast %388 : vector<8x128xf32> to vector<1x8x128xf32>
    tpu.vector_store %arg5[%389, %c0_165, %c0_166], %392 {strides = array<i32>} : memref<8x8x128xf32, #tpu.memory_space<vmem>>, vector<1x8x128xf32>,
    %c8_i32 = arith.constant 8 : i32
    %c0_167 = arith.constant 0 : index
    %c0_168 = arith.constant 0 : index
    %393 = vector.load %arg6[%c0_167, %c0_168] : memref<8x128xf32, #tpu.memory_space<vmem>>, vector<8x128xf32>
    tpu.vector_store %arg6[%c0_167, %c0_168], %386 {strides = array<i32>} : memref<8x128xf32, #tpu.memory_space<vmem>>, vector<8x128xf32>,
    return
  }
  func.func @transform_0(%arg0: i32) -> (i32, i32, i32) {
    %c0_i32 = arith.constant 0 : i32
    %c0_i32_0 = arith.constant 0 : i32
    %c0_i32_1 = arith.constant 0 : i32
    %c0_i32_2 = arith.constant 0 : i32
    return %c0_i32, %c0_i32_0, %c0_i32_1 : i32, i32, i32
  }
  func.func @transform_1(%arg0: i32) -> (i32, i32, i32) {
    %c0_i32 = arith.constant 0 : i32
    %c0_i32_0 = arith.constant 0 : i32
    %c0_i32_1 = arith.constant 0 : i32
    return %arg0, %c0_i32, %c0_i32_0 : i32, i32, i32
  }
  func.func @transform_2(%arg0: i32) -> (i32, i32, i32) {
    %c0_i32 = arith.constant 0 : i32
    %c0_i32_0 = arith.constant 0 : i32
    %c0_i32_1 = arith.constant 0 : i32
    return %arg0, %c0_i32, %c0_i32_0 : i32, i32, i32
  }
  func.func @transform_3(%arg0: i32) -> (i32, i32, i32) {
    %c0_i32 = arith.constant 0 : i32
    %c0_i32_0 = arith.constant 0 : i32
    %c0_i32_1 = arith.constant 0 : i32
    return %arg0, %c0_i32, %c0_i32_0 : i32, i32, i32
  }
  func.func @transform_4(%arg0: i32) -> (i32, i32, i32) {
    %c0_i32 = arith.constant 0 : i32
    %c0_i32_0 = arith.constant 0 : i32
    %c0_i32_1 = arith.constant 0 : i32
    return %c0_i32, %c0_i32_0, %arg0 : i32, i32, i32
  }
  func.func @transform_5(%arg0: i32) -> (i32, i32) {
    %c0_i32 = arith.constant 0 : i32
    %c0_i32_0 = arith.constant 0 : i32
    return %c0_i32, %arg0 : i32, i32
  }
}

</mosaic_0001>

<bundles_post_ra>
// kernel: tpu_custom_call.1
= control target key start
LH: loop header
LB: loop body
LE: loop exit
PB: predicated region body
PF: predicated region fallthrough
CT: control target
= control target key end

     0   :  { %s8377_s0 = inlined_call_operand.hbm [shape: bf16[8,8,128], index: 0, kind: input, shape index: {}]   ;;  %s8378_s1 = inlined_call_operand.hbm [shape: bf16[2,128,512], index: 1, kind: input, shape index: {}]   ;;  %s8379_s2 = inlined_call_operand.hbm [shape: bf16[2,128,512], index: 2, kind: input, shape index: {}]   ;;  %s8380_s3 = inlined_call_operand.hbm [shape: f32[2,1,512], index: 3, kind: input, shape index: {}]   ;;  %s8381_s4 = inlined_call_operand.hbm [shape: f32[8,8,256], index: 4, kind: output, shape index: {0}]   ;;  %s8382_s5 = inlined_call_operand.hbm [shape: f32[8,256], index: 5, kind: output, shape index: {1}]  }
   0x1   :  { %8475 = sst [smem:[#allocation54_spill]] %s8378_s1 }
   0x2   :  { %8476 = sst [smem:[#allocation55_spill]] %s8379_s2 }
   0x3   :  { %11 = vsyncpa [#allocation3], 0 }
   0x4   :  { %12 = vsyncpa [#allocation6], 0 }
   0x5   :  { %14 = vsyncpa [#allocation6 + $0x1], 0 }
   0x6   :  { %15 = vsyncpa [#allocation9], 0 }
   0x7   :  { %17 = vsyncpa [#allocation9 + $0x1], 0 }
   0x8   :  { %18 = vsyncpa [#allocation4], 0 }
   0x9   :  { %20 = vsyncpa [#allocation4 + $0x1], 0 }
   0xa   :  { %21 = vsyncpa [#allocation12], 0 }
   0xb   :  { %23 = vsyncpa [#allocation12 + $0x1], 0  ;;  %s6803_s18 = smov 0   ;;  %s6805_s19 = smov 0  }
   0xc   :  { %s6807_s20 = smov 0   ;;  %s6809_s21 = smov 0  }
   0xd LB: > { %8477 = sst [smem:[#allocation18_spill]] %s6753_s20  ;;  %s6824_s22 = sadd.s32 1, %s6757_s21   ;;  %s6757_s21 = sphi %s6809_s21, %s8639_s21   ;;  %s6753_s20 = sphi %s6807_s20, %s8641_s20   ;;  %s6749_s19 = sphi %s6805_s19, %s8643_s19   ;;  %s6745_s18 = sphi %s6803_s18, %s8642_s18  }
   0xe   : > { %8478 = sst [smem:[#allocation19_spill]] %s6757_s21  ;;  %s57_s23 = sadd.s32 1, %s6753_s20 }
   0xf   : > { %8479 = sst [smem:[#allocation20_spill]] %s6824_s22  ;;  %s54_s24 = ssub.s32 %s6757_s21, %s6824_s22 }
  0x10   : > { %p8383_p0 = scmp.ne.s32.totalorder %s6753_s20, %s6749_s19  ;;  %p55_p1 = scmp.eq.s32.totalorder %s54_s24, 0 }
  0x11   : > { %p65_p2 = scmp.eq.s32.totalorder %s6757_s21, 0  ;;  %p6085_p4 = scmp.lt.s32.totalorder %s6757_s21, 2 }
  0x12   : > { %s6835_s25 = scalar_select %p55_p1, %s6753_s20, %s57_s23  }
  0x13   : > { %p66_p5 = por %p65_p2, %p8383_p0  ;;  %s211_s26 = sand.u32 1, %s6757_s21  }
  0x14   : > { %8480 = sst [smem:[#allocation21_spill]] %s6835_s25  ;;  %s6842_s27 = sand.u32 1, %s6753_s20  }
  0x15   : > { %s5468_s28 = sshll.u32 %s6842_s27, 8  ;;  %s6045_s29 = sshll.u32 %s6757_s21, 12 }
  0x16   : > { %s8481_s1 = sld [smem:[#allocation54_spill]]  ;;  %s215_s8 = scalar_lea.vmem [#allocation5], %s5468_s28 }
  0x17   : > { %s222_s9 = sshll.u32 %s215_s8, 4  ;;  %p6855_p6 = pnand %p6085_p4, %p66_p5  ;;  %s6859_s9 = int_to_ptr.vmem [resolvable:$true] %s222_s9 }
  0x18   : > { %s6861_s11 = scalar_lea.sflag [#allocation6], %s211_s26 }
  0x19   : > { %p6867_p8 = pneg %p6855_p6 }
  0x1c   : > { %s6851_s7 = scalar_lea.hbm %s8481_s1, %s6045_s29  ;;  %s6550_s16 = scalar_lea.hbm %s8481_s1, 8192 }
  0x1d   : > { %s6545_s12 = scalar_lea.hbm %s6851_s7, 4096  ;;  %p6551_p11 = scmp.lt.s32.totalorder %s6851_s7, %s8481_s1 }
  0x1e   : > { %p6546_p7 = scmp.ne.s32.totalorder %s6851_s7, %s6545_s12  ;;  %p6552_p12 = scmp.lt.s32.totalorder %s6550_s16, %s6545_s12 }
  0x20   : > { %p6548_p9 = pnand %p6867_p8, %p6546_p7  ;;  %p6553_p13 = por %p6552_p12, %p6551_p11 }
  0x22   : > { %p6549_p10 = pneg %p6548_p9 }
  0x24   : > { %p6554_p1 = pnand %p6553_p13, %p6549_p10 }
  0x26   : > { %6557 = shalt.err (!%p6554_p1)
}
  0x27   : > { %s6558_s24 = scalar_lea.vmem %s6859_s9, 4096  ;;  %s6759_s26 = smov [#allocation5]  }
  0x28   : > { %p6559_p2 = scmp.ne.s32.totalorder %s6859_s9, %s6558_s24  ;;  %s6563_s30 = sshll.u32 %s6759_s26, 4  ;;  %s6564_s30 = int_to_ptr.vmem [resolvable:$false] %s6563_s30 }
  0x29   : > { %s6565_s6 = scalar_lea.vmem %s6564_s30, 8192  ;;  %p6566_p7 = scmp.lt.s32.totalorder %s6859_s9, %s6564_s30 }
  0x2a   : > { %p6561_p4 = pnand %p6559_p2, %p6867_p8  ;;  %p6567_p9 = scmp.lt.s32.totalorder %s6565_s6, %s6558_s24 }
  0x2c   : > { %p6562_p5 = pneg %p6561_p4  ;;  %p6568_p3 = por %p6567_p9, %p6566_p7 }
  0x2e   : > { %p6569_p0 = pnand %p6568_p3, %p6562_p5 }
  0x30   : > { %6572 = shalt.err (!%p6569_p0)
}
  0x31   : > { %s8384_s8 = smov 256   ;;  %s8385_s12 = smov 16  }
  0x32   : > { %6070 = dma.hbm_to_vmem [thread:$0]  (!%p6855_p6), %s6851_s7, 4096, %s6859_s9, %s6861_s11, %s8384_s8, %s8384_s8, %s8385_s12  }
  0x33   : > { %s8484_s2 = sld [smem:[#allocation55_spill]]  ;;  %s236_s17 = scalar_lea.vmem [#allocation7], %s5468_s28 }
  0x34   : > { %s243_s23 = sshll.u32 %s236_s17, 4  ;;  %s6905_s24 = sadd.s32 4294967295, %s6757_s21   ;;  %s6902_s23 = int_to_ptr.vmem [resolvable:$true] %s243_s23 }
  0x35   : > { %s5464_s26 = sadd.s32 4294967294, %s6757_s21   ;;  %p70_p0 = scmp.ne.s32.totalorder %s6749_s19, %s6745_s18 }
  0x36   : > { %p8386_p3 = scmp.eq.s32.totalorder %s6905_s24, 0  ;;  %p146_p10 = scmp.eq.s32.totalorder %s6905_s24, 1 }
  0x37   : > { %p152_p11 = scmp.eq.s32.totalorder %s5464_s26, 1  ;;  %p5465_p13 = scmp.ge.s32.totalorder %s6757_s21, 1 }
  0x38   : > { %p6914_p12 = por %p8386_p3, %p70_p0  ;;  %p8486_p1 = scmp.ne.s32.totalorder %s6753_s20, %s6749_s19 }
  0x39   : > { %s6898_s16 = scalar_lea.hbm %s8484_s2, %s6045_s29  ;;  %p6926_p4 = por %p152_p11, %p70_p0 }
  0x3a   : > { %s8485_s28 = scalar_select %p6914_p12, 1, 0 }
  0x3b   : > { %p6922_p2 = por %p146_p10, %p8486_p1  ;;  %p185_p5 = scmp.lt.s32.totalorder %s6757_s21, 3 }
  0x3c   : > { %s8488_s7 = scalar_select %p6926_p4, 1, 0 }
  0x3d   : > { %s8487_s29 = scalar_select %p6922_p2, 1, 0 }
  0x3e   : > { %p6931_p7 = pnand %p5465_p13, %p185_p5  ;;  %s6762_s30 = smov [#allocation2]  }
  0x3f   : > { %s197_s6 = sshll.u32 %s6762_s30, 4  ;;  %s6573_s14 = scalar_lea.hbm %s6898_s16, 4096  ;;  %s6935_s6 = int_to_ptr.vmem [resolvable:$true] %s197_s6 }
  0x40   : > { %s8489_s9 = scalar_select %p6931_p7, 1, 0 }
  0x41   : > { %p6574_p10 = scmp.ne.s32.totalorder %s6898_s16, %s6573_s14  ;;  %s6578_s26 = scalar_lea.hbm %s8484_s2, 8192 }
  0x42   : > { %p6579_p11 = scmp.lt.s32.totalorder %s6898_s16, %s8484_s2  ;;  %p6580_p13 = scmp.lt.s32.totalorder %s6578_s26, %s6573_s14 }
  0x43   : > { %p6576_p1 = pnand %p6574_p10, %p6867_p8 }
  0x44   : > { %p6581_p5 = por %p6580_p13, %p6579_p11 }
  0x45   : > { %p6577_p0 = pneg %p6576_p1 }
  0x47   : > { %p6582_p3 = pnand %p6581_p5, %p6577_p0 }
  0x49   : > { %6585 = shalt.err (!%p6582_p3)
}
  0x4a   : > { %s6586_s30 = scalar_lea.vmem %s6902_s23, 4096  ;;  %s6763_s1 = smov [#allocation7]  }
  0x4b   : > { %p6587_p9 = scmp.ne.s32.totalorder %s6902_s23, %s6586_s30  ;;  %s6591_s15 = sshll.u32 %s6763_s1, 4  ;;  %s6592_s15 = int_to_ptr.vmem [resolvable:$false] %s6591_s15 }
  0x4c   : > { %s6593_s17 = scalar_lea.vmem %s6592_s15, 8192  ;;  %p6594_p4 = scmp.lt.s32.totalorder %s6902_s23, %s6592_s15 }
  0x4d   : > { %p6589_p10 = pnand %p6587_p9, %p6867_p8  ;;  %p6595_p2 = scmp.lt.s32.totalorder %s6593_s17, %s6586_s30 }
  0x4f   : > { %p6590_p1 = pneg %p6589_p10  ;;  %p6596_p12 = por %p6595_p2, %p6594_p4 }
  0x51   : > { %p6597_p7 = pnand %p6596_p12, %p6590_p1 }
  0x53   : > { %6600 = shalt.err (!%p6597_p7)
}
  0x54   : > { %s8490_s8 = smov 16   ;;  %s8491_s12 = smov 256  }
  0x55   : > { %6073 = dma.hbm_to_vmem [thread:$0]  (!%p6855_p6), %s6898_s16, 4096, %s6902_s23, %s6861_s11, %s8491_s12, %s8491_s12, %s8490_s8  }
  0x56   : > { %p8492_p3 = scmp.eq.s32.totalorder %s6905_s24, 0  ;;  %p8493_p2 = scmp.ne.s32.totalorder %s8489_s9, 0 }
  0x57   : > { %s5474_s14 = sshll.u32 %s6842_s27, 2  ;;  %s6047_s26 = sshll.u32 %s6757_s21, 6 }
  0x58   : > { %p8494_p12 = pneg %p8493_p2  ;;  %s6977_s17 = scalar_lea.hbm %s8380_s3, %s6047_s26 }
  0x59   : > { %s6612_s2 = scalar_lea.vmem %s6935_s6, 512  ;;  %p6620_p13 = scmp.lt.s32.totalorder %s6935_s6, %s6935_s6 }
  0x5a   : > { %p6968_p4 = pnand %p8494_p12, %p8492_p3  ;;  %p6613_p9 = scmp.ne.s32.totalorder %s6935_s6, %s6612_s2 }
  0x5b   : > { %p6621_p5 = scmp.lt.s32.totalorder %s6612_s2, %s6612_s2 }
  0x5c   : > { %p6603_p7 = pneg %p6968_p4 }
  0x5d   : > { %p6622_p10 = por %p6621_p5, %p6620_p13 }
  0x5e   : > { %p6615_p0 = pnand %p6613_p9, %p6603_p7 }
  0x60   : > { %p6616_p11 = pneg %p6615_p0 }
  0x62   : > { %p6623_p1 = pnand %p6622_p10, %p6616_p11 }
  0x64   : > { %6626 = shalt.err (!%p6623_p1)
}
  0x65   : > { %s6764_s11 = smov 64   ;;  %s6765_s16 = smov 4  }
  0x66   : > { %6066 = dma.hbm_to_vmem [thread:$0]  (!%p6968_p4), %s8377_s0, 512, %s6935_s6, [#allocation3], %s6764_s11, %s6764_s11, %s6765_s16  }
  0x67   : > { %s257_s12 = scalar_lea.vmem [#allocation8], %s5474_s14  ;;  %s254_s2 = scalar_lea.sflag [#allocation9], %s6842_s27 }
  0x68   : > { %s265_s26 = sshll.u32 %s257_s12, 4  ;;  %s6627_s30 = scalar_lea.hbm %s6977_s17, 64  ;;  %s266_s26 = int_to_ptr.vmem [resolvable:$true] %s265_s26 }
  0x69   : > { %p6628_p3 = scmp.ne.s32.totalorder %s6977_s17, %s6627_s30  ;;  %s6632_s20 = scalar_lea.hbm %s8380_s3, 128 }
  0x6a   : > { %p6633_p9 = scmp.lt.s32.totalorder %s6977_s17, %s8380_s3  ;;  %p6634_p0 = scmp.lt.s32.totalorder %s6632_s20, %s6627_s30 }
  0x6b   : > { %p6630_p12 = pnand %p6628_p3, %p6867_p8 }
  0x6c   : > { %p6635_p11 = por %p6634_p0, %p6633_p9 }
  0x6d   : > { %p6631_p7 = pneg %p6630_p12 }
  0x6f   : > { %p6636_p4 = pnand %p6635_p11, %p6631_p7 }
  0x71   : > { %6639 = shalt.err (!%p6636_p4)
}
  0x72   : > { %s6640_s6 = scalar_lea.vmem %s266_s26, 64  ;;  %s6766_s27 = smov [#allocation8]  }
  0x73   : > { %p6641_p13 = scmp.ne.s32.totalorder %s266_s26, %s6640_s6  ;;  %s6645_s1 = sshll.u32 %s6766_s27, 4  ;;  %s6646_s1 = int_to_ptr.vmem [resolvable:$false] %s6645_s1 }
  0x74   : > { %s6647_s14 = scalar_lea.vmem %s6646_s1, 128  ;;  %p6648_p1 = scmp.lt.s32.totalorder %s266_s26, %s6646_s1 }
  0x75   : > { %p6643_p5 = pnand %p6641_p13, %p6867_p8  ;;  %p6649_p3 = scmp.lt.s32.totalorder %s6647_s14, %s6640_s6 }
  0x77   : > { %p6644_p10 = pneg %p6643_p5  ;;  %p6650_p12 = por %p6649_p3, %p6648_p1 }
  0x79   : > { %p6651_p2 = pnand %p6650_p12, %p6644_p10 }
  0x7b   : > { %6654 = shalt.err (!%p6651_p2)
}
  0x7c   : > { %6076 = dma.hbm_to_vmem [thread:$0]  (!%p6855_p6), %s6977_s17, 64, %s266_s26, %s254_s2  }
  0x7d   : > { %p8496_p7 = scmp.ne.s32.totalorder %s8489_s9, 0 }
  0x7f   : > { %274 = sbr.rel (%p8496_p7) target bundleno = 2478 (0x9ae), region = 36 }
  0x84   : > { %p8497_p9 = scmp.eq.s32.totalorder %s6905_s24, 0 }
  0x86   : > { %6724 = dma.done.wait (%p8497_p9), [#allocation3], 512   ;;  %p8498_p8 = pmov %p8497_p9 }
  0x87   : > { %s280_s20 = sand.u32 1, %s6905_s24   ;;  %s7016_s21 = sand.u32 1, %s6749_s19  }
  0x88   : > { %6726 = vsyncadd (%p8498_p8), [#allocation3], 4294966784  ;;  %s5479_s22 = sshll.u32 %s7016_s21, 8  ;;  %s281_s25 = scalar_lea.sflag [#allocation6], %s280_s20 }
  0x89   : > { %s7019_s10 = scalar_lea.vmem [#allocation5], %s5479_s22  ;;  %p8499_p6 = scmp.ne.s32.totalorder %s8485_s28, 0 }
  0x8b   : > { %6728 = dma.done.wait (%p8499_p6), %s281_s25, 8192  }
  0x8c   : > { %6730 = vsyncadd (%p8499_p6), %s281_s25, 4294959104  ;;  %s5481_s13 = sshll.u32 %s7016_s21, 2  ;;  %s7026_s9 = scalar_lea.vmem [#allocation7], %s5479_s22 }
  0x8d   : > { %s299_s17 = scalar_lea.sflag [#allocation9], %s7016_s21  ;;  %s7029_s11 = scalar_lea.vmem [#allocation8], %s5481_s13 }
  0x8e   : > { %6732 = dma.done.wait (%p8499_p6), %s299_s17, 64  }
  0x8f   : > { %6734 = vsyncadd (%p8499_p6), %s299_s17, 4294967232  ;;  %v8395_v0 = vmov 0   ;;  %v7038_v1 = vld [vmem:[%s7026_s9 + $0xe4] ss:$16 sps:$4 sm:$0xff]   ;;  %v7041_v2 = vld [vmem:[%s7026_s9 + $0xec] ss:$16 sps:$4 sm:$0xff]  }
  0x90   : > { %605 = vmatprep.mubr.bf16.mxu0 %v8395_v0  ;;  %646 = vmatprep.mubr.bf16.mxu1 %v8395_v0  ;;  %v7045_v3 = vld [vmem:[%s7026_s9 + $0xe0] ss:$16 sps:$4 sm:$0xff]   ;;  %v7048_v4 = vld [vmem:[%s7026_s9 + $0xe8] ss:$16 sps:$4 sm:$0xff]   ;;  %v7052_v5 = vld [vmem:[%s7026_s9 + $0xc4] ss:$16 sps:$4 sm:$0xff]  }
  0x91   : > { %573 = vmatprep.subr.bf16.mxu0 %v7038_v1  ;;  %614 = vmatprep.subr.bf16.mxu1 %v7041_v2  ;;  %v7057_v6 = vld [vmem:[%s7026_s9 + $0xcc] ss:$16 sps:$4 sm:$0xff]   ;;  %v7060_v7 = vld [vmem:[%s7026_s9 + $0xc0] ss:$16 sps:$4 sm:$0xff]   ;;  %v7064_v8 = vld [vmem:[%s7026_s9 + $0xc8] ss:$16 sps:$4 sm:$0xff]  }
  0x92   : > { %574 = vmatpush1.bf16.msra.mxu0 %v7045_v3  ;;  %615 = vmatpush1.bf16.msra.mxu1 %v7048_v4  ;;  %v7068_v9 = vld [vmem:[%s7026_s9 + $0xa4] ss:$16 sps:$4 sm:$0xff]   ;;  %v7071_v10 = vld [vmem:[%s7026_s9 + $0xac] ss:$16 sps:$4 sm:$0xff]   ;;  %v7074_v11 = vld [vmem:[%s7026_s9 + $0xa0] ss:$16 sps:$4 sm:$0xff]  }
  0x93   : > { %575 = vmatprep.subr.bf16.mxu0 %v7052_v5  ;;  %616 = vmatprep.subr.bf16.mxu1 %v7057_v6  ;;  %v7077_v12 = vld [vmem:[%s7026_s9 + $0xa8] ss:$16 sps:$4 sm:$0xff]   ;;  %v7082_v13 = vld [vmem:[%s7026_s9 + $0x84] ss:$16 sps:$4 sm:$0xff]   ;;  %v7087_v14 = vld [vmem:[%s7026_s9 + $0x8c] ss:$16 sps:$4 sm:$0xff]  }
  0x94   : > { %v7090_v15 = vld [vmem:[%s7026_s9 + $0x80] ss:$16 sps:$4 sm:$0xff]   ;;  %v7095_v16 = vld [vmem:[%s7026_s9 + $0x88] ss:$16 sps:$4 sm:$0xff]   ;;  %v7098_v17 = vld [vmem:[%s7026_s9 + $0x64] ss:$16 sps:$4 sm:$0xff]  }
  0x95   : > { %v7103_v18 = vld [vmem:[%s7026_s9 + $0x6c] ss:$16 sps:$4 sm:$0xff]   ;;  %v7106_v19 = vld [vmem:[%s7026_s9 + $0x60] ss:$16 sps:$4 sm:$0xff]   ;;  %v7109_v20 = vld [vmem:[%s7026_s9 + $0x68] ss:$16 sps:$4 sm:$0xff]  }
  0x96   : > { %576 = vmatpush1.bf16.msra.mxu0 %v7060_v7  ;;  %617 = vmatpush1.bf16.msra.mxu1 %v7064_v8  ;;  %v7114_v21 = vld [vmem:[%s7026_s9 + $0x44] ss:$16 sps:$4 sm:$0xff]   ;;  %v7119_v22 = vld [vmem:[%s7026_s9 + $0x4c] ss:$16 sps:$4 sm:$0xff]   ;;  %v7122_v23 = vld [vmem:[%s7026_s9 + $0x40] ss:$16 sps:$4 sm:$0xff]  }
  0x97   : > { %577 = vmatprep.subr.bf16.mxu0 %v7068_v9  ;;  %618 = vmatprep.subr.bf16.mxu1 %v7071_v10  ;;  %v7127_v24 = vld [vmem:[%s7026_s9 + $0x48] ss:$16 sps:$4 sm:$0xff]   ;;  %v7130_v25 = vld [vmem:[%s7026_s9 + $0x24] ss:$16 sps:$4 sm:$0xff]   ;;  %v7135_v26 = vld [vmem:[%s7026_s9 + $0x2c] ss:$16 sps:$4 sm:$0xff]  }
  0x98   : > { %v7138_v27 = vld [vmem:[%s7026_s9 + $0x20] ss:$16 sps:$4 sm:$0xff]   ;;  %v7141_v28 = vld [vmem:[%s7026_s9 + $0x28] ss:$16 sps:$4 sm:$0xff]   ;;  %v7146_v29 = vld [vmem:[%s7026_s9 + $0x4] ss:$16 sps:$4 sm:$0xff]  }
  0x99   : > { %v7151_v30 = vld [vmem:[%s7026_s9 + $0xc] ss:$16 sps:$4 sm:$0xff]   ;;  %v7154_v31 = vld [vmem:[%s7026_s9] ss:$16 sps:$4 sm:$0xff]   ;;  %v7157_v32 = vld [vmem:[%s7026_s9 + $0x8] ss:$16 sps:$4 sm:$0xff]  }
  0x9a   : > { %578 = vmatpush1.bf16.msra.mxu0 %v7074_v11  ;;  %619 = vmatpush1.bf16.msra.mxu1 %v7077_v12  ;;  %v7162_v33 = vld [vmem:[%s7019_s10 + $0xe4] ss:$16 sps:$4 sm:$0xff]   ;;  %v7167_v34 = vld [vmem:[%s7019_s10 + $0xec] ss:$16 sps:$4 sm:$0xff]   ;;  %v7170_v35 = vld [vmem:[%s7019_s10 + $0xe0] ss:$16 sps:$4 sm:$0xff]  }
  0x9b   : > { %579 = vmatprep.subr.bf16.mxu0 %v7082_v13  ;;  %620 = vmatprep.subr.bf16.mxu1 %v7087_v14  ;;  %v7173_v36 = vld [vmem:[%s7019_s10 + $0xe8] ss:$16 sps:$4 sm:$0xff]   ;;  %v7178_v37 = vld [vmem:[%s7019_s10 + $0xc4] ss:$16 sps:$4 sm:$0xff]   ;;  %v7183_v38 = vld [vmem:[%s7019_s10 + $0xcc] ss:$16 sps:$4 sm:$0xff]  }
  0x9c   : > { %v7188_v39 = vld [vmem:[%s7019_s10 + $0xc0] ss:$16 sps:$4 sm:$0xff]   ;;  %v7191_v40 = vld [vmem:[%s7019_s10 + $0xc8] ss:$16 sps:$4 sm:$0xff]   ;;  %v7196_v41 = vld [vmem:[%s7019_s10 + $0xa4] ss:$16 sps:$4 sm:$0xff]  }
  0x9d   : > { %v7201_v42 = vld [vmem:[%s7019_s10 + $0xac] ss:$16 sps:$4 sm:$0xff]   ;;  %v7206_v43 = vld [vmem:[%s7019_s10 + $0xa0] ss:$16 sps:$4 sm:$0xff]   ;;  %v7209_v44 = vld [vmem:[%s7019_s10 + $0xa8] ss:$16 sps:$4 sm:$0xff]  }
  0x9e   : > { %580 = vmatpush1.bf16.msra.mxu0 %v7090_v15  ;;  %621 = vmatpush1.bf16.msra.mxu1 %v7095_v16  ;;  %v7214_v45 = vld [vmem:[%s7019_s10 + $0x84] ss:$16 sps:$4 sm:$0xff]   ;;  %v7219_v46 = vld [vmem:[%s7019_s10 + $0x8c] ss:$16 sps:$4 sm:$0xff]   ;;  %v7222_v47 = vld [vmem:[%s7019_s10 + $0x80] ss:$16 sps:$4 sm:$0xff]  }
  0x9f   : > { %581 = vmatprep.subr.bf16.mxu0 %v7098_v17  ;;  %622 = vmatprep.subr.bf16.mxu1 %v7103_v18  ;;  %v7225_v48 = vld [vmem:[%s7019_s10 + $0x88] ss:$16 sps:$4 sm:$0xff]   ;;  %v7228_v49 = vld [vmem:[%s7019_s10 + $0x64] ss:$16 sps:$4 sm:$0xff]   ;;  %v7231_v50 = vld [vmem:[%s7019_s10 + $0x6c] ss:$16 sps:$4 sm:$0xff]  }
  0xa0   : > { %v7238_v51 = vld [vmem:[%s7019_s10 + $0x60] ss:$16 sps:$4 sm:$0xff]   ;;  %v7241_v52 = vld [vmem:[%s7019_s10 + $0x68] ss:$16 sps:$4 sm:$0xff]   ;;  %v7244_v53 = vld [vmem:[%s7019_s10 + $0x44] ss:$16 sps:$4 sm:$0xff]  }
  0xa1   : > { %v7247_v54 = vld [vmem:[%s7019_s10 + $0x4c] ss:$16 sps:$4 sm:$0xff]   ;;  %v7254_v55 = vld [vmem:[%s7019_s10 + $0x40] ss:$16 sps:$4 sm:$0xff]   ;;  %v7257_v56 = vld [vmem:[%s7019_s10 + $0x48] ss:$16 sps:$4 sm:$0xff]  }
  0xa2   : > { %582 = vmatpush1.bf16.msra.mxu0 %v7106_v19  ;;  %623 = vmatpush1.bf16.msra.mxu1 %v7109_v20  ;;  %8500 = vst [vmem:[#allocation22_spill] sm:$0xff] %v7254_v55  ;;  %v7260_v57 = vld [vmem:[%s7019_s10 + $0x24] ss:$16 sps:$4 sm:$0xff]   ;;  %v7263_v58 = vld [vmem:[%s7019_s10 + $0x2c] ss:$16 sps:$4 sm:$0xff]   ;;  %s6048_s28 = smul.u32 28, %s6905_s24 }
  0xa3   : > { %583 = vmatprep.subr.bf16.mxu0 %v7114_v21  ;;  %624 = vmatprep.subr.bf16.mxu1 %v7119_v22  ;;  %v7270_v59 = vld [vmem:[%s7019_s10 + $0x20] ss:$16 sps:$4 sm:$0xff]   ;;  %v7273_v60 = vld [vmem:[%s7019_s10 + $0x28] ss:$16 sps:$4 sm:$0xff]   ;;  %v7276_v61 = vld [vmem:[%s7019_s10 + $0x4] ss:$16 sps:$4 sm:$0xff]  }
  0xa4   : > { %v7279_v62 = vld [vmem:[%s7019_s10 + $0xc] ss:$16 sps:$4 sm:$0xff]   ;;  %v7287_v63 = vld [vmem:[%s7019_s10] ss:$16 sps:$4 sm:$0xff]   ;;  %s347_s16 = scalar_lea.vmem [#allocation2], %s6048_s28  ;;  %s5482_s23 = sshll.u32 %s7016_s21, 6 }
  0xa5   : > { %8501 = vst [vmem:[#allocation23_spill] sm:$0xff] %v7279_v62  ;;  %s5552_s8 = smul.u32 56, %s6905_s24  ;;  %s7352_s12 = scalar_lea.vmem [#allocation10], %s5482_s23 }
  0xa6   : > { %584 = vmatpush1.bf16.msra.mxu0 %v7122_v23  ;;  %625 = vmatpush1.bf16.msra.mxu1 %v7127_v24  ;;  %s5553_s2 = sshll.u32 %s6905_s24, 1  ;;  %s7375_s30 = smul.u32 7, %s6905_s24 }
  0xa7   : > { %585 = vmatprep.subr.bf16.mxu0 %v7130_v25  ;;  %626 = vmatprep.subr.bf16.mxu1 %v7135_v26  ;;  %s948_s26 = scalar_lea.vmem %s7352_s12, %s5552_s8 [#allocation10]  ;;  %s7379_s15 = ssub.s32 1, %s5553_s2 }
  0xa8   : > { %s7385_s6 = sadd.s32 %s7379_s15, %s7375_s30  ;;  %s5623_s22 = sshll.u32 %s7379_s15, 1 }
  0xa9   : > { %s5554_s27 = sshll.u32 %s7385_s6, 2  ;;  %s5622_s14 = sshll.u32 %s7385_s6, 3 }
  0xaa   : > { %586 = vmatpush1.bf16.msra.mxu0 %v7138_v27  ;;  %627 = vmatpush1.bf16.msra.mxu1 %v7141_v28  ;;  %s954_s1 = scalar_lea.vmem [#allocation2], %s5554_s27  ;;  %s1556_s20 = scalar_lea.vmem %s7352_s12, %s5622_s14 [#allocation10] }
  0xab   : > { %587 = vmatprep.subr.bf16.mxu0 %v7146_v29  ;;  %628 = vmatprep.subr.bf16.mxu1 %v7151_v30  ;;  %s7643_s25 = sadd.s32 %s5623_s22, %s7375_s30  ;;  %s2165_s23 = smul.u32 3, %s7379_s15 }
  0xac   : > { %s5624_s13 = sshll.u32 %s7643_s25, 2  ;;  %s5692_s28 = sshll.u32 %s7643_s25, 3 }
  0xad   : > { %s1561_s17 = scalar_lea.vmem [#allocation2], %s5624_s13  ;;  %s7745_s8 = sadd.s32 %s2165_s23, %s7375_s30 }
  0xae   : > { %588 = vmatpush1.bf16.msra.mxu0 %v7154_v31  ;;  %629 = vmatpush1.bf16.msra.mxu1 %v7157_v32  ;;  %s5761_s6 = sshll.u32 %s7745_s8, 3  ;;  %s3379_s13 = smul.u32 5, %s7379_s15 }
  0xaf   : > { %815 = vmatprep.subr.bf16.mxu0 %v7162_v33  ;;  %856 = vmatprep.subr.bf16.mxu1 %v7167_v34  ;;  %s2770_s27 = scalar_lea.vmem %s7352_s12, %s5761_s6 [#allocation10]  ;;  %p8635_p0 = scmp.ne.s32.totalorder %s8487_s29, 0 }
  0xb1   : > { %606 = vmatmul.mubr.bf16.vlgmr.msra.gmra.mxu0 %v8395_v0  ;;  %647 = vmatmul.mubr.bf16.vlgmr.msra.gmra.mxu1 %v8395_v0 }
  0xb2   : > { %816 = vmatpush1.bf16.msra.mxu0 %v7170_v35  ;;  %857 = vmatpush1.bf16.msra.mxu1 %v7173_v36 }
  0xb3   : > { %817 = vmatprep.subr.bf16.mxu0 %v7178_v37  ;;  %858 = vmatprep.subr.bf16.mxu1 %v7183_v38 }
  0xb4   : > { %847 = vmatprep.mubr.bf16.mxu0 %v8395_v0  ;;  %888 = vmatprep.mubr.bf16.mxu1 %v8395_v0  ;;  %v7290_v0 = vld [vmem:[%s7019_s10 + $0x8] ss:$16 sps:$4 sm:$0xff]  }
  0xb6   : > { %818 = vmatpush1.bf16.msra.mxu0 %v7188_v39  ;;  %859 = vmatpush1.bf16.msra.mxu1 %v7191_v40 }
  0xb7   : > { %819 = vmatprep.subr.bf16.mxu0 %v7196_v41  ;;  %860 = vmatprep.subr.bf16.mxu1 %v7201_v42 }
  0xba   : > { %820 = vmatpush1.bf16.msra.mxu0 %v7206_v43  ;;  %861 = vmatpush1.bf16.msra.mxu1 %v7209_v44 }
  0xbb   : > { %821 = vmatprep.subr.bf16.mxu0 %v7214_v45  ;;  %862 = vmatprep.subr.bf16.mxu1 %v7219_v46 }
  0xbe   : > { %822 = vmatpush1.bf16.msra.mxu0 %v7222_v47  ;;  %863 = vmatpush1.bf16.msra.mxu1 %v7225_v48 }
  0xbf   : > { %823 = vmatprep.subr.bf16.mxu0 %v7228_v49  ;;  %864 = vmatprep.subr.bf16.mxu1 %v7231_v50 }
  0xc2   : > { %824 = vmatpush1.bf16.msra.mxu0 %v7238_v51  ;;  %865 = vmatpush1.bf16.msra.mxu1 %v7241_v52 }
  0xc3   : > { %825 = vmatprep.subr.bf16.mxu0 %v7244_v53  ;;  %866 = vmatprep.subr.bf16.mxu1 %v7247_v54 }
  0xc6   : > { %826 = vmatpush1.bf16.msra.mxu0 %v7254_v55  ;;  %867 = vmatpush1.bf16.msra.mxu1 %v7257_v56  ;;  %v348_v55 = vld [vmem:[%s347_s16] sm:$0xf]  ;;  %s2163_s16 = scalar_lea.vmem %s7352_s12, %s5692_s28 [#allocation10] }
  0xc7   : > { %827 = vmatprep.subr.bf16.mxu0 %v7260_v57  ;;  %868 = vmatprep.subr.bf16.mxu1 %v7263_v58 }
  0xca   : > { %828 = vmatpush1.bf16.msra.mxu0 %v7270_v59  ;;  %869 = vmatpush1.bf16.msra.mxu1 %v7273_v60 }
  0xcb   : > { %829 = vmatprep.subr.bf16.mxu0 %v7276_v61  ;;  %870 = vmatprep.subr.bf16.mxu1 %v7279_v62  ;;  %v8502_v62 = vmov 0  }
  0xce   : > { %830 = vmatpush1.bf16.msra.mxu0 %v7287_v63  ;;  %871 = vmatpush1.bf16.msra.mxu1 %v7290_v0 }
  0xcf   : > { %1181 = vmatprep.subr.bf16.mxu0 %v7038_v1  ;;  %1222 = vmatprep.subr.bf16.mxu1 %v7041_v2 }
  0xd1   : > { %848 = vmatmul.mubr.bf16.vlgmr.msra.gmra.mxu0 %v348_v55  ;;  %889 = vmatmul.mubr.bf16.vlgmr.msra.gmra.mxu1 %v348_v55 }
  0xd2   : > { %1182 = vmatpush1.bf16.msra.mxu0 %v7045_v3  ;;  %1223 = vmatpush1.bf16.msra.mxu1 %v7048_v4 }
  0xd3   : > { %1183 = vmatprep.subr.bf16.mxu0 %v7052_v5  ;;  %1224 = vmatprep.subr.bf16.mxu1 %v7057_v6 }
  0xd4   : > { %1213 = vmatprep.mubr.bf16.mxu0 %v8502_v62  ;;  %1254 = vmatprep.mubr.bf16.mxu1 %v8502_v62 }
  0xd6   : > { %1184 = vmatpush1.bf16.msra.mxu0 %v7060_v7  ;;  %1225 = vmatpush1.bf16.msra.mxu1 %v7064_v8 }
  0xd7   : > { %1185 = vmatprep.subr.bf16.mxu0 %v7068_v9  ;;  %1226 = vmatprep.subr.bf16.mxu1 %v7071_v10  ;;  %v899_v9 = vlaneseq }
  0xd9   : > { %v900_v10 = vshrl.u32 %v899_v9, 7 }
  0xda   : > { %1186 = vmatpush1.bf16.msra.mxu0 %v7074_v11  ;;  %1227 = vmatpush1.bf16.msra.mxu1 %v7077_v12  ;;  %v897_v12 = vld [vmem:[%s7029_s11] sm:$0xf] }
  0xdb   : > { %1187 = vmatprep.subr.bf16.mxu0 %v7082_v13  ;;  %1228 = vmatprep.subr.bf16.mxu1 %v7087_v14  ;;  %v7334_v11 = vsub.s32 0, %v900_v10  ;;  %v7337_v13 = vsub.s32 1, %v900_v10 }
  0xdd   : > { %8503 = vst [vmem:[#allocation24_spill] sm:$0xff] %v7334_v11  ;;  %8504 = vst [vmem:[#allocation25_spill] sm:$0xff] %v7337_v13  ;;  %v902_v14 = vrot.slane %v897_v12, %v7334_v11 }
  0xde   : > { %1188 = vmatpush1.bf16.msra.mxu0 %v7090_v15  ;;  %1229 = vmatpush1.bf16.msra.mxu1 %v7095_v16 }
  0xdf   : > { %1189 = vmatprep.subr.bf16.mxu0 %v7098_v17  ;;  %1230 = vmatprep.subr.bf16.mxu1 %v7103_v18  ;;  %v906_v18 = vrot.slane %v897_v12, %v7337_v13 }
  0xe2   : > { %1190 = vmatpush1.bf16.msra.mxu0 %v7106_v19  ;;  %1231 = vmatpush1.bf16.msra.mxu1 %v7109_v20 }
  0xe3   : > { %1191 = vmatprep.subr.bf16.mxu0 %v7114_v21  ;;  %1232 = vmatprep.subr.bf16.mxu1 %v7119_v22 }
  0xe6   : > { %1192 = vmatpush1.bf16.msra.mxu0 %v7122_v23  ;;  %1233 = vmatpush1.bf16.msra.mxu1 %v7127_v24 }
  0xe7   : > { %1193 = vmatprep.subr.bf16.mxu0 %v7130_v25  ;;  %1234 = vmatprep.subr.bf16.mxu1 %v7135_v26 }
  0xea   : > { %1194 = vmatpush1.bf16.msra.mxu0 %v7138_v27  ;;  %1235 = vmatpush1.bf16.msra.mxu1 %v7141_v28  ;;  %v7341_v27 = vsub.s32 3, %v900_v10 }
  0xeb   : > { %1195 = vmatprep.subr.bf16.mxu0 %v7146_v29  ;;  %1236 = vmatprep.subr.bf16.mxu1 %v7151_v30 }
  0xee   : > { %1196 = vmatpush1.bf16.msra.mxu0 %v7154_v31  ;;  %1237 = vmatpush1.bf16.msra.mxu1 %v7157_v32  ;;  %v914_v32 = vrot.slane %v897_v12, %v7341_v27 }
  0xef   : > { %1423 = vmatprep.subr.bf16.mxu0 %v7162_v33  ;;  %1464 = vmatprep.subr.bf16.mxu1 %v7167_v34  ;;  %v7344_v33 = vsub.s32 2, %v900_v10 }
 0x171   : > { %v607_v1 = vpop.f32.mrf.mxu0  ;;  %v648_v2 = vpop.f32.mrf.mxu1 }
 0x173   : > { %v609_v3 = vpop.f32.mrf.mxu0  ;;  %v650_v4 = vpop.f32.mrf.mxu1 }
 0x175   : > { %v611_v5 = vpop.f32.mrf.mxu0  ;;  %v652_v6 = vpop.f32.mrf.mxu1 }
 0x177   : > { %v612_v7 = vpop.f32.mrf.mxu0  ;;  %v653_v8 = vpop.f32.mrf.mxu1 }
 0x191   : > { %v849_v15 = vpop.f32.mrf.mxu0  ;;  %v890_v16 = vpop.f32.mrf.mxu1 }
 0x192   : > { %v850_v17 = vadd.f32 %v849_v15, %v607_v1  ;;  %v891_v55 = vadd.f32 %v890_v16, %v648_v2  ;;  %v910_v1 = vrot.slane %v897_v12, %v7344_v33 }
 0x193   : > { %v851_v19 = vpop.f32.mrf.mxu0  ;;  %v892_v20 = vpop.f32.mrf.mxu1 }
 0x194   : > { %v919_v21 = vadd.f32 %v902_v14, %v850_v17  ;;  %v852_v22 = vadd.f32 %v851_v19, %v609_v3  ;;  %v893_v31 = vadd.f32 %v892_v20, %v650_v4  ;;  %v921_v6 = vadd.f32 %v910_v1, %v891_v55 }
 0x195   : > { %v853_v23 = vpop.f32.mrf.mxu0  ;;  %v894_v24 = vpop.f32.mrf.mxu1 }
 0x196   : > { %v5549_v25 = vmul.f32 -1.442695, %v919_v21  ;;  %v920_v26 = vadd.f32 %v906_v18, %v852_v22  ;;  %v922_v34 = vadd.f32 %v914_v32, %v893_v31  ;;  %v7498_v22 = vld [vmem:[%s7026_s9 + $0x2c] ss:$16 sps:$4 sm:$0xff]   ;;  %v7503_v23 = vld [vmem:[%s7026_s9 + $0x20] ss:$16 sps:$4 sm:$0xff]  }
 0x197   : > { %v854_v28 = vpop.f32.mrf.mxu0  ;;  %v895_v29 = vpop.f32.mrf.mxu1  ;;  %8523 = vst [vmem:[#allocation40_spill] sm:$0xff] %v7498_v22  ;;  %8524 = vst [vmem:[#allocation41_spill] sm:$0xff] %v7503_v23  ;;  %v7506_v24 = vld [vmem:[%s7026_s9 + $0x28] ss:$16 sps:$4 sm:$0xff]   ;;  %v7530_v31 = vld [vmem:[%s7019_s10 + $0xec] ss:$16 sps:$4 sm:$0xff]  }
 0x198   : > { %6417 = vpow2.f32 %v5549_v25  ;;  %v5550_v30 = vmul.f32 -1.442695, %v920_v26  ;;  %v5551_v3 = vmul.f32 -1.442695, %v922_v34  ;;  %8525 = vst [vmem:[#allocation42_spill] sm:$0xff] %v7506_v24  ;;  %8531 = vst [vmem:[#allocation48_spill] sm:$0xff] %v7530_v31 }
 0x199   : > { %v7511_v25 = vld [vmem:[%s7026_s9 + $0x4] ss:$16 sps:$4 sm:$0xff]   ;;  %v7514_v26 = vld [vmem:[%s7026_s9 + $0xc] ss:$16 sps:$4 sm:$0xff]   ;;  %v7519_v28 = vld [vmem:[%s7026_s9] ss:$16 sps:$4 sm:$0xff]  }
 0x19a   : > { %6419 = vpow2.f32 %v5550_v30  ;;  %8526 = vst [vmem:[#allocation43_spill] sm:$0xff] %v7511_v25  ;;  %8527 = vst [vmem:[#allocation44_spill] sm:$0xff] %v7514_v26  ;;  %v7522_v29 = vld [vmem:[%s7026_s9 + $0x8] ss:$16 sps:$4 sm:$0xff]   ;;  %v7527_v30 = vld [vmem:[%s7019_s10 + $0xe4] ss:$16 sps:$4 sm:$0xff]  }
 0x19b   : > { %6421 = vpow2.f32 %v5551_v3  ;;  %8528 = vst [vmem:[#allocation45_spill] sm:$0xff] %v7519_v28  ;;  %8529 = vst [vmem:[#allocation46_spill] sm:$0xff] %v7522_v29 }
 0x19c   : > { %8530 = vst [vmem:[#allocation47_spill] sm:$0xff] %v7527_v30 }
 0x1a5   : > { %v6418_v5 = vpop.eup %6417 }
 0x1a6   : > { %v926_v7 = vadd.f32 1.0, %v6418_v5 }
 0x1a7   : > { %v6420_v8 = vpop.eup %6419 }
 0x1a8   : > { %6423 = vrcp.f32 %v926_v7  ;;  %v932_v9 = vadd.f32 1.0, %v6420_v8  ;;  %v6422_v4 = vpop.eup %6421  ;;  %v1505_v8 = vld [vmem:[%s7029_s11] sm:$0xf] }
 0x1a9   : > { %6425 = vtanh.f32 %v921_v6  ;;  %v939_v17 = vadd.f32 1.0, %v6422_v4 }
 0x1aa   : > { %6427 = vrcp.f32 %v932_v9  ;;  %v1510_v9 = vrot.slane %v1505_v8, %v7334_v11 }
 0x1ab   : > { %6429 = vrcp.f32 %v939_v17 }
 0x1b5   : > { %v6424_v14 = vpop.eup %6423 }
 0x1b6   : > { %v6426_v10 = vpop.eup %6425 }
 0x1b7   : > { %v6428_v15 = vpop.eup %6427  ;;  %v943_v16 = vmul.f32 %v6426_v10, %v6424_v14 }
 0x1b8   : > { %v942_v2 = vmul.f32 0.0, %v6428_v15  ;;  %v6430_v18 = vpop.eup %6429  ;;  %v1514_v15 = vrot.slane %v1505_v8, %v7337_v13 }
 0x1ba   : > { %v7347_v12 = vadd.f32 %v943_v16, %v942_v2 }
 0x1bc   : > { %6431 = vtanh.f32 %v7347_v12 }
 0x1c9   : > { %v6432_v19 = vpop.eup %6431 }
 0x1ca   : > { %v946_v20 = vmul.f32 %v6432_v19, %v6430_v18 }
 0x1cc   : > { %949 = vst [vmem:[%s948_s26] sm:$0xff] %v946_v20  ;;  %v988_v21 = vpack.c.bf16 %v946_v20, %v946_v20  ;;  %s5693_s26 = sshll.u32 %s7745_s8, 2  ;;  %s3986_s8 = smul.u32 6, %s7379_s15 }
 0x1cd   : > { %s2168_s2 = scalar_lea.vmem [#allocation2], %s5693_s26 }
 0x1ce   : > { %1214 = vmatmul.mubr.bf16.vlgmr.msra.gmra.mxu0 %v988_v21  ;;  %1255 = vmatmul.mubr.bf16.vlgmr.msra.gmra.mxu1 %v988_v21  ;;  %s8189_s26 = sadd.s32 %s3986_s8, %s7375_s30 }
 0x1cf   : > { %1424 = vmatpush1.bf16.msra.mxu0 %v7170_v35  ;;  %1465 = vmatpush1.bf16.msra.mxu1 %v7173_v36  ;;  %v8505_v35 = vld [vmem:[#allocation22_spill] sm:$0xff]  ;;  %v8506_v36 = vld [vmem:[#allocation23_spill] sm:$0xff] }
 0x1d0   : > { %1425 = vmatprep.subr.bf16.mxu0 %v7178_v37  ;;  %1466 = vmatprep.subr.bf16.mxu1 %v7183_v38  ;;  %v955_v37 = vld [vmem:[%s954_s1] sm:$0xf]  ;;  %v7401_v38 = vld [vmem:[%s7026_s9 + $0xe4] ss:$16 sps:$4 sm:$0xff]   ;;  %s5762_s1 = sshll.u32 %s7379_s15, 2 }
 0x1d1   : > { %1455 = vmatprep.mubr.bf16.mxu0 %v8502_v62  ;;  %1496 = vmatprep.mubr.bf16.mxu1 %v8502_v62  ;;  %s7829_s14 = sadd.s32 %s5762_s1, %s7375_s30 }
 0x1d3   : > { %1426 = vmatpush1.bf16.msra.mxu0 %v7188_v39  ;;  %1467 = vmatpush1.bf16.msra.mxu1 %v7191_v40  ;;  %v7404_v39 = vld [vmem:[%s7026_s9 + $0xec] ss:$16 sps:$4 sm:$0xff]   ;;  %v7407_v40 = vld [vmem:[%s7026_s9 + $0xe0] ss:$16 sps:$4 sm:$0xff]  }
 0x1d4   : > { %1427 = vmatprep.subr.bf16.mxu0 %v7196_v41  ;;  %1468 = vmatprep.subr.bf16.mxu1 %v7201_v42  ;;  %v7417_v41 = vld [vmem:[%s7026_s9 + $0xc4] ss:$16 sps:$4 sm:$0xff]   ;;  %v7420_v42 = vld [vmem:[%s7026_s9 + $0xcc] ss:$16 sps:$4 sm:$0xff]  }
 0x1d7   : > { %1428 = vmatpush1.bf16.msra.mxu0 %v7206_v43  ;;  %1469 = vmatpush1.bf16.msra.mxu1 %v7209_v44  ;;  %v7423_v43 = vld [vmem:[%s7026_s9 + $0xc0] ss:$16 sps:$4 sm:$0xff]   ;;  %v7426_v44 = vld [vmem:[%s7026_s9 + $0xc8] ss:$16 sps:$4 sm:$0xff]  }
 0x1d8   : > { %1429 = vmatprep.subr.bf16.mxu0 %v7214_v45  ;;  %1470 = vmatprep.subr.bf16.mxu1 %v7219_v46  ;;  %v7433_v45 = vld [vmem:[%s7026_s9 + $0xa4] ss:$16 sps:$4 sm:$0xff]   ;;  %v7436_v46 = vld [vmem:[%s7026_s9 + $0xac] ss:$16 sps:$4 sm:$0xff]  }
 0x1d9   : > { %8507 = vst [vmem:[#allocation22_spill] sm:$0xff] %v7436_v46 }
 0x1db   : > { %1430 = vmatpush1.bf16.msra.mxu0 %v7222_v47  ;;  %1471 = vmatpush1.bf16.msra.mxu1 %v7225_v48  ;;  %v7439_v47 = vld [vmem:[%s7026_s9 + $0xa0] ss:$16 sps:$4 sm:$0xff]   ;;  %v7442_v48 = vld [vmem:[%s7026_s9 + $0xa8] ss:$16 sps:$4 sm:$0xff]  }
 0x1dc   : > { %1431 = vmatprep.subr.bf16.mxu0 %v7228_v49  ;;  %1472 = vmatprep.subr.bf16.mxu1 %v7231_v50  ;;  %8508 = vst [vmem:[#allocation23_spill] sm:$0xff] %v7439_v47  ;;  %8509 = vst [vmem:[#allocation26_spill] sm:$0xff] %v7442_v48  ;;  %v7449_v49 = vld [vmem:[%s7026_s9 + $0x84] ss:$16 sps:$4 sm:$0xff]   ;;  %v7452_v50 = vld [vmem:[%s7026_s9 + $0x8c] ss:$16 sps:$4 sm:$0xff]  }
 0x1dd   : > { %8510 = vst [vmem:[#allocation27_spill] sm:$0xff] %v7449_v49  ;;  %8511 = vst [vmem:[#allocation28_spill] sm:$0xff] %v7452_v50 }
 0x1df   : > { %1432 = vmatpush1.bf16.msra.mxu0 %v7238_v51  ;;  %1473 = vmatpush1.bf16.msra.mxu1 %v7241_v52  ;;  %v7455_v51 = vld [vmem:[%s7026_s9 + $0x80] ss:$16 sps:$4 sm:$0xff]   ;;  %v7458_v52 = vld [vmem:[%s7026_s9 + $0x88] ss:$16 sps:$4 sm:$0xff]  }
 0x1e0   : > { %1433 = vmatprep.subr.bf16.mxu0 %v7244_v53  ;;  %1474 = vmatprep.subr.bf16.mxu1 %v7247_v54  ;;  %8512 = vst [vmem:[#allocation29_spill] sm:$0xff] %v7455_v51  ;;  %8513 = vst [vmem:[#allocation30_spill] sm:$0xff] %v7458_v52  ;;  %v7463_v53 = vld [vmem:[%s7026_s9 + $0x64] ss:$16 sps:$4 sm:$0xff]   ;;  %v7468_v54 = vld [vmem:[%s7026_s9 + $0x60] ss:$16 sps:$4 sm:$0xff]  }
 0x1e1   : > { %8514 = vst [vmem:[#allocation31_spill] sm:$0xff] %v7463_v53  ;;  %8515 = vst [vmem:[#allocation32_spill] sm:$0xff] %v7468_v54 }
 0x1e3   : > { %1434 = vmatpush1.bf16.msra.mxu0 %v8505_v35  ;;  %1475 = vmatpush1.bf16.msra.mxu1 %v7257_v56  ;;  %v7471_v56 = vld [vmem:[%s7026_s9 + $0x68] ss:$16 sps:$4 sm:$0xff]  }
 0x1e4   : > { %1435 = vmatprep.subr.bf16.mxu0 %v7260_v57  ;;  %1476 = vmatprep.subr.bf16.mxu1 %v7263_v58  ;;  %8516 = vst [vmem:[#allocation33_spill] sm:$0xff] %v7471_v56  ;;  %v7474_v57 = vld [vmem:[%s7026_s9 + $0x6c] ss:$16 sps:$4 sm:$0xff]   ;;  %v7478_v58 = vld [vmem:[%s7026_s9 + $0x44] ss:$16 sps:$4 sm:$0xff]  }
 0x1e5   : > { %8517 = vst [vmem:[#allocation34_spill] sm:$0xff] %v7474_v57  ;;  %8518 = vst [vmem:[#allocation35_spill] sm:$0xff] %v7478_v58 }
 0x1e7   : > { %1436 = vmatpush1.bf16.msra.mxu0 %v7270_v59  ;;  %1477 = vmatpush1.bf16.msra.mxu1 %v7273_v60  ;;  %v7481_v59 = vld [vmem:[%s7026_s9 + $0x4c] ss:$16 sps:$4 sm:$0xff]   ;;  %v7487_v60 = vld [vmem:[%s7026_s9 + $0x40] ss:$16 sps:$4 sm:$0xff]  }
 0x1e8   : > { %1437 = vmatprep.subr.bf16.mxu0 %v7276_v61  ;;  %1478 = vmatprep.subr.bf16.mxu1 %v8506_v36  ;;  %8519 = vst [vmem:[#allocation36_spill] sm:$0xff] %v7481_v59  ;;  %8520 = vst [vmem:[#allocation37_spill] sm:$0xff] %v7487_v60  ;;  %v7490_v61 = vld [vmem:[%s7026_s9 + $0x48] ss:$16 sps:$4 sm:$0xff]  }
 0x1e9   : > { %8521 = vst [vmem:[#allocation38_spill] sm:$0xff] %v7490_v61 }
 0x1eb   : > { %1438 = vmatpush1.bf16.msra.mxu0 %v7287_v63  ;;  %1479 = vmatpush1.bf16.msra.mxu1 %v7290_v0  ;;  %v7410_v0 = vld [vmem:[%s7026_s9 + $0xe8] ss:$16 sps:$4 sm:$0xff]   ;;  %v7495_v63 = vld [vmem:[%s7026_s9 + $0x24] ss:$16 sps:$4 sm:$0xff]  }
 0x1ec   : > { %1788 = vmatprep.subr.bf16.mxu0 %v7401_v38  ;;  %1829 = vmatprep.subr.bf16.mxu1 %v7404_v39  ;;  %8522 = vst [vmem:[#allocation39_spill] sm:$0xff] %v7495_v63 }
 0x1ee   : > { %1456 = vmatmul.mubr.bf16.vlgmr.msra.gmra.mxu0 %v955_v37  ;;  %1497 = vmatmul.mubr.bf16.vlgmr.msra.gmra.mxu1 %v955_v37 }
 0x1ef   : > { %1820 = vmatprep.mubr.bf16.mxu0 %v8502_v62  ;;  %1861 = vmatprep.mubr.bf16.mxu1 %v8502_v62 }
 0x1f0   : > { %1789 = vmatpush1.bf16.msra.mxu0 %v7407_v40  ;;  %1830 = vmatpush1.bf16.msra.mxu1 %v7410_v0 }
 0x1f1   : > { %1790 = vmatprep.subr.bf16.mxu0 %v7417_v41  ;;  %1831 = vmatprep.subr.bf16.mxu1 %v7420_v42 }
 0x1f4   : > { %1791 = vmatpush1.bf16.msra.mxu0 %v7423_v43  ;;  %1832 = vmatpush1.bf16.msra.mxu1 %v7426_v44 }
 0x1f5   : > { %1792 = vmatprep.subr.bf16.mxu0 %v7433_v45  ;;  %1833 = vmatprep.subr.bf16.mxu1 %v7436_v46 }
 0x1f8   : > { %1793 = vmatpush1.bf16.msra.mxu0 %v7439_v47  ;;  %1834 = vmatpush1.bf16.msra.mxu1 %v7442_v48 }
 0x1f9   : > { %1794 = vmatprep.subr.bf16.mxu0 %v7449_v49  ;;  %1835 = vmatprep.subr.bf16.mxu1 %v7452_v50 }
 0x1fc   : > { %1795 = vmatpush1.bf16.msra.mxu0 %v7455_v51  ;;  %1836 = vmatpush1.bf16.msra.mxu1 %v7458_v52 }
 0x1fd   : > { %1796 = vmatprep.subr.bf16.mxu0 %v7463_v53  ;;  %1837 = vmatprep.subr.bf16.mxu1 %v7474_v57 }
 0x200   : > { %1797 = vmatpush1.bf16.msra.mxu0 %v7468_v54  ;;  %1838 = vmatpush1.bf16.msra.mxu1 %v7471_v56 }
 0x201   : > { %1798 = vmatprep.subr.bf16.mxu0 %v7478_v58  ;;  %1839 = vmatprep.subr.bf16.mxu1 %v7481_v59 }
 0x204   : > { %1799 = vmatpush1.bf16.msra.mxu0 %v7487_v60  ;;  %1840 = vmatpush1.bf16.msra.mxu1 %v7490_v61 }
 0x205   : > { %1800 = vmatprep.subr.bf16.mxu0 %v7495_v63  ;;  %1841 = vmatprep.subr.bf16.mxu1 %v7498_v22 }
 0x208   : > { %1801 = vmatpush1.bf16.msra.mxu0 %v7503_v23  ;;  %1842 = vmatpush1.bf16.msra.mxu1 %v7506_v24 }
 0x209   : > { %1802 = vmatprep.subr.bf16.mxu0 %v7511_v25  ;;  %1843 = vmatprep.subr.bf16.mxu1 %v7514_v26 }
 0x20c   : > { %1803 = vmatpush1.bf16.msra.mxu0 %v7519_v28  ;;  %1844 = vmatpush1.bf16.msra.mxu1 %v7522_v29 }
 0x20d   : > { %2030 = vmatprep.subr.bf16.mxu0 %v7527_v30  ;;  %2071 = vmatprep.subr.bf16.mxu1 %v7530_v31 }
 0x28e   : > { %v1215_v32 = vpop.f32.mrf.mxu0  ;;  %v1256_v34 = vpop.f32.mrf.mxu1 }
 0x290   : > { %v1217_v55 = vpop.f32.mrf.mxu0  ;;  %v1258_v1 = vpop.f32.mrf.mxu1 }
 0x292   : > { %v1219_v3 = vpop.f32.mrf.mxu0  ;;  %v1260_v5 = vpop.f32.mrf.mxu1 }
 0x294   : > { %v1220_v6 = vpop.f32.mrf.mxu0  ;;  %v1261_v7 = vpop.f32.mrf.mxu1 }
 0x295   : > { %v1522_v6 = vrot.slane %v1505_v8, %v7341_v27 }
 0x2ae   : > { %v1457_v4 = vpop.f32.mrf.mxu0  ;;  %v1498_v14 = vpop.f32.mrf.mxu1 }
 0x2af   : > { %v1458_v10 = vadd.f32 %v1457_v4, %v1215_v32  ;;  %v1499_v32 = vadd.f32 %v1498_v14, %v1256_v34  ;;  %v1518_v4 = vrot.slane %v1505_v8, %v7344_v33 }
 0x2b0   : > { %v1459_v17 = vpop.f32.mrf.mxu0  ;;  %v1500_v2 = vpop.f32.mrf.mxu1 }
 0x2b1   : > { %v1527_v16 = vadd.f32 %v1510_v9, %v1458_v10  ;;  %v1460_v18 = vadd.f32 %v1459_v17, %v1217_v55  ;;  %v1501_v5 = vadd.f32 %v1500_v2, %v1258_v1  ;;  %v1529_v9 = vadd.f32 %v1518_v4, %v1499_v32  ;;  %v7583_v32 = vld [vmem:[%s7019_s10 + $0xa8] ss:$16 sps:$4 sm:$0xff]   ;;  %v7588_v4 = vld [vmem:[%s7019_s10 + $0x84] ss:$16 sps:$4 sm:$0xff]  }
 0x2b2   : > { %v1461_v19 = vpop.f32.mrf.mxu0  ;;  %v1502_v20 = vpop.f32.mrf.mxu1 }
 0x2b3   : > { %v5619_v21 = vmul.f32 -1.442695, %v1527_v16  ;;  %v1528_v35 = vadd.f32 %v1514_v15, %v1460_v18  ;;  %v1530_v7 = vadd.f32 %v1522_v6, %v1501_v5  ;;  %v7548_v20 = vld [vmem:[%s7019_s10 + $0xe0] ss:$16 sps:$4 sm:$0xff]   ;;  %v7570_v5 = vld [vmem:[%s7019_s10 + $0xa4] ss:$16 sps:$4 sm:$0xff]  }
 0x2b4   : > { %v1462_v36 = vpop.f32.mrf.mxu0  ;;  %v1503_v37 = vpop.f32.mrf.mxu1  ;;  %v7573_v6 = vld [vmem:[%s7019_s10 + $0xac] ss:$16 sps:$4 sm:$0xff]  }
 0x2b5   : > { %6433 = vpow2.f32 %v5619_v21  ;;  %v5620_v3 = vmul.f32 -1.442695, %v1528_v35  ;;  %v5621_v13 = vmul.f32 -1.442695, %v1530_v7  ;;  %v7551_v21 = vld [vmem:[%s7019_s10 + $0xe8] ss:$16 sps:$4 sm:$0xff]  }
 0x2b6   : > { %v7554_v35 = vld [vmem:[%s7019_s10 + $0xc4] ss:$16 sps:$4 sm:$0xff]   ;;  %v7557_v36 = vld [vmem:[%s7019_s10 + $0xcc] ss:$16 sps:$4 sm:$0xff]   ;;  %v7562_v37 = vld [vmem:[%s7019_s10 + $0xc0] ss:$16 sps:$4 sm:$0xff]  }
 0x2b7   : > { %6435 = vpow2.f32 %v5620_v3  ;;  %v7565_v3 = vld [vmem:[%s7019_s10 + $0xc8] ss:$16 sps:$4 sm:$0xff]   ;;  %v7580_v7 = vld [vmem:[%s7019_s10 + $0xa0] ss:$16 sps:$4 sm:$0xff]  }
 0x2b8   : > { %6437 = vpow2.f32 %v5621_v13 }
 0x2c2   : > { %v6434_v11 = vpop.eup %6433 }
 0x2c3   : > { %v1534_v55 = vadd.f32 1.0, %v6434_v11 }
 0x2c4   : > { %v6436_v10 = vpop.eup %6435 }
 0x2c5   : > { %6439 = vrcp.f32 %v1534_v55  ;;  %v1540_v15 = vadd.f32 1.0, %v6436_v10  ;;  %v6438_v1 = vpop.eup %6437  ;;  %v7596_v55 = vld [vmem:[%s7019_s10 + $0x80] ss:$16 sps:$4 sm:$0xff]   ;;  %v7599_v10 = vld [vmem:[%s7019_s10 + $0x88] ss:$16 sps:$4 sm:$0xff]  }
 0x2c6   : > { %6441 = vtanh.f32 %v1529_v9  ;;  %v1547_v8 = vadd.f32 1.0, %v6438_v1  ;;  %v7591_v9 = vld [vmem:[%s7019_s10 + $0x8c] ss:$16 sps:$4 sm:$0xff]  }
 0x2c7   : > { %6443 = vrcp.f32 %v1540_v15  ;;  %v7604_v15 = vld [vmem:[%s7019_s10 + $0x64] ss:$16 sps:$4 sm:$0xff]   ;;  %v7607_v1 = vld [vmem:[%s7019_s10 + $0x6c] ss:$16 sps:$4 sm:$0xff]  }
 0x2c8   : > { %6445 = vrcp.f32 %v1547_v8  ;;  %v7623_v8 = vld [vmem:[%s7019_s10 + $0x4c] ss:$16 sps:$4 sm:$0xff]  }
 0x2c9   : > { %8533 = vst [vmem:[#allocation50_spill] sm:$0xff] %v7623_v8 }
 0x2d2   : > { %v6440_v17 = vpop.eup %6439 }
 0x2d3   : > { %v6442_v2 = vpop.eup %6441 }
 0x2d4   : > { %v6444_v34 = vpop.eup %6443  ;;  %v1551_v14 = vmul.f32 %v6442_v2, %v6440_v17  ;;  %v7612_v17 = vld [vmem:[%s7019_s10 + $0x60] ss:$16 sps:$4 sm:$0xff]   ;;  %v7615_v2 = vld [vmem:[%s7019_s10 + $0x68] ss:$16 sps:$4 sm:$0xff]  }
 0x2d5   : > { %v1550_v11 = vmul.f32 %v6444_v34, %v7347_v12  ;;  %v6446_v13 = vpop.eup %6445  ;;  %v7620_v34 = vld [vmem:[%s7019_s10 + $0x44] ss:$16 sps:$4 sm:$0xff]  }
 0x2d6   : > { %8532 = vst [vmem:[#allocation49_spill] sm:$0xff] %v7620_v34 }
 0x2d7   : > { %v7542_v16 = vadd.f32 %v1551_v14, %v1550_v11  ;;  %v7628_v14 = vld [vmem:[%s7019_s10 + $0x40] ss:$16 sps:$4 sm:$0xff]   ;;  %v7631_v11 = vld [vmem:[%s7019_s10 + $0x48] ss:$16 sps:$4 sm:$0xff]  }
 0x2d8   : > { %8534 = vst [vmem:[#allocation51_spill] sm:$0xff] %v7628_v14  ;;  %8535 = vst [vmem:[#allocation52_spill] sm:$0xff] %v7631_v11 }
 0x2d9   : > { %6447 = vtanh.f32 %v7542_v16 }
 0x2e6   : > { %v6448_v18 = vpop.eup %6447 }
 0x2e7   : > { %v1554_v19 = vmul.f32 %v6448_v18, %v6446_v13  ;;  %v7637_v13 = vld [vmem:[%s7019_s10 + $0x24] ss:$16 sps:$4 sm:$0xff]   ;;  %v7640_v18 = vld [vmem:[%s7019_s10 + $0x2c] ss:$16 sps:$4 sm:$0xff]  }
 0x2e8   : > { %8536 = vst [vmem:[#allocation53_spill] sm:$0xff] %v7640_v18 }
 0x2e9   : > { %1557 = vst [vmem:[%s1556_s20] sm:$0xff] %v1554_v19  ;;  %v1595_v12 = vpack.c.bf16 %v1554_v19, %v1554_v19  ;;  %v7648_v19 = vld [vmem:[%s7019_s10 + $0x20] ss:$16 sps:$4 sm:$0xff]   ;;  %s5763_s20 = sshll.u32 %s7829_s14, 2 }
 0x2ea   : > { %s2775_s22 = scalar_lea.vmem [#allocation2], %s5763_s20 }
 0x2eb   : > { %1821 = vmatmul.mubr.bf16.vlgmr.msra.gmra.mxu0 %v1595_v12  ;;  %1862 = vmatmul.mubr.bf16.vlgmr.msra.gmra.mxu1 %v1595_v12  ;;  %v7651_v12 = vld [vmem:[%s7019_s10 + $0x28] ss:$16 sps:$4 sm:$0xff]  }
 0x2ec   : > { %2031 = vmatpush1.bf16.msra.mxu0 %v7548_v20  ;;  %2072 = vmatpush1.bf16.msra.mxu1 %v7551_v21 }
 0x2ed   : > { %2032 = vmatprep.subr.bf16.mxu0 %v7554_v35  ;;  %2073 = vmatprep.subr.bf16.mxu1 %v7557_v36 }
 0x2ee   : > { %2062 = vmatprep.mubr.bf16.mxu0 %v8502_v62  ;;  %2103 = vmatprep.mubr.bf16.mxu1 %v8502_v62 }
 0x2f0   : > { %2033 = vmatpush1.bf16.msra.mxu0 %v7562_v37  ;;  %2074 = vmatpush1.bf16.msra.mxu1 %v7565_v3 }
 0x2f1   : > { %2034 = vmatprep.subr.bf16.mxu0 %v7570_v5  ;;  %2075 = vmatprep.subr.bf16.mxu1 %v7573_v6 }
 0x2f4   : > { %2035 = vmatpush1.bf16.msra.mxu0 %v7580_v7  ;;  %2076 = vmatpush1.bf16.msra.mxu1 %v7583_v32 }
 0x2f5   : > { %2036 = vmatprep.subr.bf16.mxu0 %v7588_v4  ;;  %2077 = vmatprep.subr.bf16.mxu1 %v7591_v9 }
 0x2f8   : > { %2037 = vmatpush1.bf16.msra.mxu0 %v7596_v55  ;;  %2078 = vmatpush1.bf16.msra.mxu1 %v7599_v10 }
 0x2f9   : > { %2038 = vmatprep.subr.bf16.mxu0 %v7604_v15  ;;  %2079 = vmatprep.subr.bf16.mxu1 %v7607_v1 }
 0x2fc   : > { %2039 = vmatpush1.bf16.msra.mxu0 %v7612_v17  ;;  %2080 = vmatpush1.bf16.msra.mxu1 %v7615_v2 }
 0x2fd   : > { %2040 = vmatprep.subr.bf16.mxu0 %v7620_v34  ;;  %2081 = vmatprep.subr.bf16.mxu1 %v7623_v8  ;;  %v7656_v8 = vld [vmem:[%s7019_s10 + $0x4] ss:$16 sps:$4 sm:$0xff]   ;;  %v7659_v34 = vld [vmem:[%s7019_s10 + $0xc] ss:$16 sps:$4 sm:$0xff]  }
 0x300   : > { %2041 = vmatpush1.bf16.msra.mxu0 %v7628_v14  ;;  %2082 = vmatpush1.bf16.msra.mxu1 %v7631_v11  ;;  %v7665_v14 = vld [vmem:[%s7019_s10] ss:$16 sps:$4 sm:$0xff]   ;;  %v7668_v11 = vld [vmem:[%s7019_s10 + $0x8] ss:$16 sps:$4 sm:$0xff]  }
 0x301   : > { %2042 = vmatprep.subr.bf16.mxu0 %v7637_v13  ;;  %2083 = vmatprep.subr.bf16.mxu1 %v7640_v18  ;;  %v1562_v18 = vld [vmem:[%s1561_s17] sm:$0xf]  ;;  %s8087_s17 = sadd.s32 %s3379_s13, %s7375_s30 }
 0x302   : > { %s5832_s28 = sshll.u32 %s8087_s17, 2 }
 0x304   : > { %2043 = vmatpush1.bf16.msra.mxu0 %v7648_v19  ;;  %2084 = vmatpush1.bf16.msra.mxu1 %v7651_v12 }
 0x305   : > { %2044 = vmatprep.subr.bf16.mxu0 %v7656_v8  ;;  %2085 = vmatprep.subr.bf16.mxu1 %v7659_v34 }
 0x308   : > { %2045 = vmatpush1.bf16.msra.mxu0 %v7665_v14  ;;  %2086 = vmatpush1.bf16.msra.mxu1 %v7668_v11 }
 0x309   : > { %2395 = vmatprep.subr.bf16.mxu0 %v7401_v38  ;;  %2436 = vmatprep.subr.bf16.mxu1 %v7404_v39 }
 0x30b   : > { %2063 = vmatmul.mubr.bf16.vlgmr.msra.gmra.mxu0 %v1562_v18  ;;  %2104 = vmatmul.mubr.bf16.vlgmr.msra.gmra.mxu1 %v1562_v18 }
 0x30c   : > { %2396 = vmatpush1.bf16.msra.mxu0 %v7407_v40  ;;  %2437 = vmatpush1.bf16.msra.mxu1 %v7410_v0 }
 0x30d   : > { %2397 = vmatprep.subr.bf16.mxu0 %v7417_v41  ;;  %2438 = vmatprep.subr.bf16.mxu1 %v7420_v42 }
 0x30e   : > { %2427 = vmatprep.mubr.bf16.mxu0 %v8502_v62  ;;  %2468 = vmatprep.mubr.bf16.mxu1 %v8502_v62 }
 0x310   : > { %2398 = vmatpush1.bf16.msra.mxu0 %v7423_v43  ;;  %2439 = vmatpush1.bf16.msra.mxu1 %v7426_v44 }
 0x311   : > { %2399 = vmatprep.subr.bf16.mxu0 %v7433_v45  ;;  %2440 = vmatprep.subr.bf16.mxu1 %v7436_v46 }
 0x314   : > { %2400 = vmatpush1.bf16.msra.mxu0 %v7439_v47  ;;  %2441 = vmatpush1.bf16.msra.mxu1 %v7442_v48 }
 0x315   : > { %2401 = vmatprep.subr.bf16.mxu0 %v7449_v49  ;;  %2442 = vmatprep.subr.bf16.mxu1 %v7452_v50 }
 0x318   : > { %2402 = vmatpush1.bf16.msra.mxu0 %v7455_v51  ;;  %2443 = vmatpush1.bf16.msra.mxu1 %v7458_v52 }
 0x319   : > { %2403 = vmatprep.subr.bf16.mxu0 %v7463_v53  ;;  %2444 = vmatprep.subr.bf16.mxu1 %v7474_v57  ;;  %v8538_v57 = vld [vmem:[#allocation25_spill] sm:$0xff] }
 0x31c   : > { %2404 = vmatpush1.bf16.msra.mxu0 %v7468_v54  ;;  %2445 = vmatpush1.bf16.msra.mxu1 %v7471_v56 }
 0x31d   : > { %2405 = vmatprep.subr.bf16.mxu0 %v7478_v58  ;;  %2446 = vmatprep.subr.bf16.mxu1 %v7481_v59  ;;  %v2112_v58 = vld [vmem:[%s7029_s11] sm:$0xf] }
 0x320   : > { %2406 = vmatpush1.bf16.msra.mxu0 %v7487_v60  ;;  %2447 = vmatpush1.bf16.msra.mxu1 %v7490_v61 }
 0x321   : > { %2407 = vmatprep.subr.bf16.mxu0 %v7495_v63  ;;  %2448 = vmatprep.subr.bf16.mxu1 %v7498_v22 }
 0x324   : > { %2408 = vmatpush1.bf16.msra.mxu0 %v7503_v23  ;;  %2449 = vmatpush1.bf16.msra.mxu1 %v7506_v24 }
 0x325   : > { %2409 = vmatprep.subr.bf16.mxu0 %v7511_v25  ;;  %2450 = vmatprep.subr.bf16.mxu1 %v7514_v26  ;;  %v8537_v25 = vld [vmem:[#allocation24_spill] sm:$0xff] }
 0x326   : > { %v2117_v56 = vrot.slane %v2112_v58, %v8537_v25  ;;  %v2129_v25 = vrot.slane %v2112_v58, %v7341_v27 }
 0x328   : > { %2410 = vmatpush1.bf16.msra.mxu0 %v7519_v28  ;;  %2451 = vmatpush1.bf16.msra.mxu1 %v7522_v29  ;;  %v2121_v29 = vrot.slane %v2112_v58, %v8538_v57 }
 0x329   : > { %2637 = vmatprep.subr.bf16.mxu0 %v7527_v30  ;;  %2678 = vmatprep.subr.bf16.mxu1 %v7530_v31 }
 0x3ab   : > { %v1822_v18 = vpop.f32.mrf.mxu0  ;;  %v1863_v63 = vpop.f32.mrf.mxu1 }
 0x3ad   : > { %v1824_v22 = vpop.f32.mrf.mxu0  ;;  %v1865_v61 = vpop.f32.mrf.mxu1 }
 0x3af   : > { %v1826_v23 = vpop.f32.mrf.mxu0  ;;  %v1867_v60 = vpop.f32.mrf.mxu1 }
 0x3b1   : > { %v1827_v59 = vpop.f32.mrf.mxu0  ;;  %v1868_v24 = vpop.f32.mrf.mxu1 }
 0x3cb   : > { %v2064_v26 = vpop.f32.mrf.mxu0  ;;  %v2105_v54 = vpop.f32.mrf.mxu1 }
 0x3cc   : > { %v2065_v28 = vadd.f32 %v2064_v26, %v1822_v18  ;;  %v2106_v26 = vadd.f32 %v2105_v54, %v1863_v63  ;;  %v2125_v18 = vrot.slane %v2112_v58, %v7344_v33 }
 0x3cd   : > { %v2066_v53 = vpop.f32.mrf.mxu0  ;;  %v2107_v30 = vpop.f32.mrf.mxu1 }
 0x3ce   : > { %v2134_v52 = vadd.f32 %v2117_v56, %v2065_v28  ;;  %v2067_v31 = vadd.f32 %v2066_v53, %v1824_v22  ;;  %v2108_v24 = vadd.f32 %v2107_v30, %v1865_v61  ;;  %v2136_v56 = vadd.f32 %v2125_v18, %v2106_v26  ;;  %v8539_v28 = vld [vmem:[#allocation49_spill] sm:$0xff]  ;;  %v8541_v30 = vld [vmem:[#allocation51_spill] sm:$0xff]  ;;  %v8556_v26 = vld [vmem:[#allocation36_spill] sm:$0xff] }
 0x3cf   : > { %v2068_v51 = vpop.f32.mrf.mxu0  ;;  %v2109_v50 = vpop.f32.mrf.mxu1  ;;  %v8557_v18 = vld [vmem:[#allocation37_spill] sm:$0xff] }
 0x3d0   : > { %v5689_v49 = vmul.f32 -1.442695, %v2134_v52  ;;  %v2135_v48 = vadd.f32 %v2121_v29, %v2067_v31  ;;  %v2137_v47 = vadd.f32 %v2129_v25, %v2108_v24  ;;  %v8540_v29 = vld [vmem:[#allocation50_spill] sm:$0xff]  ;;  %v8542_v31 = vld [vmem:[#allocation52_spill] sm:$0xff]  ;;  %v8555_v24 = vld [vmem:[#allocation35_spill] sm:$0xff] }
 0x3d1   : > { %v2069_v23 = vpop.f32.mrf.mxu0  ;;  %v2110_v60 = vpop.f32.mrf.mxu1 }
 0x3d2   : > { %6449 = vpow2.f32 %v5689_v49  ;;  %v5690_v59 = vmul.f32 -1.442695, %v2135_v48  ;;  %v5691_v57 = vmul.f32 -1.442695, %v2137_v47  ;;  %v2169_v23 = vld [vmem:[%s2168_s2] sm:$0xf] }
 0x3d3   : > { %v8550_v60 = vld [vmem:[#allocation30_spill] sm:$0xff]  ;;  %s5901_s2 = sshll.u32 %s8189_s26, 2 }
 0x3d4   : > { %6451 = vpow2.f32 %v5690_v59  ;;  %v8551_v59 = vld [vmem:[#allocation31_spill] sm:$0xff]  ;;  %s3989_s6 = scalar_lea.vmem [#allocation2], %s5901_s2 }
 0x3d5   : > { %6453 = vpow2.f32 %v5691_v57 }
 0x3df   : > { %v6450_v46 = vpop.eup %6449 }
 0x3e0   : > { %v2141_v53 = vadd.f32 1.0, %v6450_v46 }
 0x3e1   : > { %v6452_v51 = vpop.eup %6451 }
 0x3e2   : > { %6455 = vrcp.f32 %v2141_v53  ;;  %v2147_v50 = vadd.f32 1.0, %v6452_v51  ;;  %v6454_v48 = vpop.eup %6453  ;;  %v8559_v53 = vld [vmem:[#allocation39_spill] sm:$0xff]  ;;  %v8560_v51 = vld [vmem:[#allocation40_spill] sm:$0xff] }
 0x3e3   : > { %6457 = vtanh.f32 %v2136_v56  ;;  %v2154_v22 = vadd.f32 1.0, %v6454_v48  ;;  %v8558_v56 = vld [vmem:[#allocation38_spill] sm:$0xff] }
 0x3e4   : > { %6459 = vrcp.f32 %v2147_v50  ;;  %v8561_v50 = vld [vmem:[#allocation41_spill] sm:$0xff]  ;;  %v8562_v48 = vld [vmem:[#allocation42_spill] sm:$0xff] }
 0x3e5   : > { %6461 = vrcp.f32 %v2154_v22  ;;  %v8566_v22 = vld [vmem:[#allocation46_spill] sm:$0xff] }
 0x3ef   : > { %v6456_v49 = vpop.eup %6455 }
 0x3f0   : > { %v6458_v52 = vpop.eup %6457 }
 0x3f1   : > { %v6460_v61 = vpop.eup %6459  ;;  %v2158_v54 = vmul.f32 %v6458_v52, %v6456_v49  ;;  %v8563_v49 = vld [vmem:[#allocation43_spill] sm:$0xff]  ;;  %v8564_v52 = vld [vmem:[#allocation44_spill] sm:$0xff] }
 0x3f2   : > { %v2157_v58 = vmul.f32 %v6460_v61, %v7542_v16  ;;  %v6462_v46 = vpop.eup %6461  ;;  %v8543_v16 = vld [vmem:[#allocation53_spill] sm:$0xff] }
 0x3f3   : > { %v8565_v61 = vld [vmem:[#allocation45_spill] sm:$0xff] }
 0x3f4   : > { %v7716_v47 = vadd.f32 %v2158_v54, %v2157_v58  ;;  %v8567_v54 = vld [vmem:[#allocation47_spill] sm:$0xff]  ;;  %v8568_v58 = vld [vmem:[#allocation48_spill] sm:$0xff] }
 0x3f6   : > { %6463 = vtanh.f32 %v7716_v47 }
 0x403   : > { %v6464_v57 = vpop.eup %6463 }
 0x404   : > { %v2161_v63 = vmul.f32 %v6464_v57, %v6462_v46 }
 0x406   : > { %2164 = vst [vmem:[%s2163_s16] sm:$0xff] %v2161_v63  ;;  %v2202_v25 = vpack.c.bf16 %v2161_v63, %v2161_v63  ;;  %s3382_s16 = scalar_lea.vmem [#allocation2], %s5832_s28 }
 0x408   : > { %2428 = vmatmul.mubr.bf16.vlgmr.msra.gmra.mxu0 %v2202_v25  ;;  %2469 = vmatmul.mubr.bf16.vlgmr.msra.gmra.mxu1 %v2202_v25 }
 0x409   : > { %2638 = vmatpush1.bf16.msra.mxu0 %v7548_v20  ;;  %2679 = vmatpush1.bf16.msra.mxu1 %v7551_v21 }
 0x40a   : > { %2639 = vmatprep.subr.bf16.mxu0 %v7554_v35  ;;  %2680 = vmatprep.subr.bf16.mxu1 %v7557_v36 }
 0x40b   : > { %2669 = vmatprep.mubr.bf16.mxu0 %v8502_v62  ;;  %2710 = vmatprep.mubr.bf16.mxu1 %v8502_v62 }
 0x40d   : > { %2640 = vmatpush1.bf16.msra.mxu0 %v7562_v37  ;;  %2681 = vmatpush1.bf16.msra.mxu1 %v7565_v3 }
 0x40e   : > { %2641 = vmatprep.subr.bf16.mxu0 %v7570_v5  ;;  %2682 = vmatprep.subr.bf16.mxu1 %v7573_v6 }
 0x411   : > { %2642 = vmatpush1.bf16.msra.mxu0 %v7580_v7  ;;  %2683 = vmatpush1.bf16.msra.mxu1 %v7583_v32 }
 0x412   : > { %2643 = vmatprep.subr.bf16.mxu0 %v7588_v4  ;;  %2684 = vmatprep.subr.bf16.mxu1 %v7591_v9 }
 0x415   : > { %2644 = vmatpush1.bf16.msra.mxu0 %v7596_v55  ;;  %2685 = vmatpush1.bf16.msra.mxu1 %v7599_v10 }
 0x416   : > { %2645 = vmatprep.subr.bf16.mxu0 %v7604_v15  ;;  %2686 = vmatprep.subr.bf16.mxu1 %v7607_v1 }
 0x419   : > { %2646 = vmatpush1.bf16.msra.mxu0 %v7612_v17  ;;  %2687 = vmatpush1.bf16.msra.mxu1 %v7615_v2 }
 0x41a   : > { %2647 = vmatprep.subr.bf16.mxu0 %v8539_v28  ;;  %2688 = vmatprep.subr.bf16.mxu1 %v8540_v29 }
 0x41d   : > { %2648 = vmatpush1.bf16.msra.mxu0 %v8541_v30  ;;  %2689 = vmatpush1.bf16.msra.mxu1 %v8542_v31 }
 0x41e   : > { %2649 = vmatprep.subr.bf16.mxu0 %v7637_v13  ;;  %2690 = vmatprep.subr.bf16.mxu1 %v8543_v16 }
 0x421   : > { %2650 = vmatpush1.bf16.msra.mxu0 %v7648_v19  ;;  %2691 = vmatpush1.bf16.msra.mxu1 %v7651_v12 }
 0x422   : > { %2651 = vmatprep.subr.bf16.mxu0 %v7656_v8  ;;  %2692 = vmatprep.subr.bf16.mxu1 %v7659_v34 }
 0x425   : > { %2652 = vmatpush1.bf16.msra.mxu0 %v7665_v14  ;;  %2693 = vmatpush1.bf16.msra.mxu1 %v7668_v11 }
 0x426   : > { %3002 = vmatprep.subr.bf16.mxu0 %v7401_v38  ;;  %3043 = vmatprep.subr.bf16.mxu1 %v7404_v39  ;;  %v8544_v38 = vld [vmem:[#allocation22_spill] sm:$0xff]  ;;  %v8545_v39 = vld [vmem:[#allocation23_spill] sm:$0xff] }
 0x428   : > { %2670 = vmatmul.mubr.bf16.vlgmr.msra.gmra.mxu0 %v2169_v23  ;;  %2711 = vmatmul.mubr.bf16.vlgmr.msra.gmra.mxu1 %v2169_v23 }
 0x429   : > { %3003 = vmatpush1.bf16.msra.mxu0 %v7407_v40  ;;  %3044 = vmatpush1.bf16.msra.mxu1 %v7410_v0  ;;  %v8546_v40 = vld [vmem:[#allocation26_spill] sm:$0xff]  ;;  %v8547_v0 = vld [vmem:[#allocation27_spill] sm:$0xff] }
 0x42a   : > { %3004 = vmatprep.subr.bf16.mxu0 %v7417_v41  ;;  %3045 = vmatprep.subr.bf16.mxu1 %v7420_v42  ;;  %v8548_v41 = vld [vmem:[#allocation28_spill] sm:$0xff]  ;;  %v8549_v42 = vld [vmem:[#allocation29_spill] sm:$0xff] }
 0x42b   : > { %3034 = vmatprep.mubr.bf16.mxu0 %v8502_v62  ;;  %3075 = vmatprep.mubr.bf16.mxu1 %v8502_v62 }
 0x42d   : > { %3005 = vmatpush1.bf16.msra.mxu0 %v7423_v43  ;;  %3046 = vmatpush1.bf16.msra.mxu1 %v7426_v44  ;;  %v8552_v43 = vld [vmem:[#allocation34_spill] sm:$0xff]  ;;  %v8553_v44 = vld [vmem:[#allocation32_spill] sm:$0xff] }
 0x42e   : > { %3006 = vmatprep.subr.bf16.mxu0 %v7433_v45  ;;  %3047 = vmatprep.subr.bf16.mxu1 %v8544_v38  ;;  %v8554_v45 = vld [vmem:[#allocation33_spill] sm:$0xff] }
 0x431   : > { %3007 = vmatpush1.bf16.msra.mxu0 %v8545_v39  ;;  %3048 = vmatpush1.bf16.msra.mxu1 %v8546_v40 }
 0x432   : > { %3008 = vmatprep.subr.bf16.mxu0 %v8547_v0  ;;  %3049 = vmatprep.subr.bf16.mxu1 %v8548_v41  ;;  %v2719_v0 = vld [vmem:[%s7029_s11] sm:$0xf]  ;;  %v8569_v41 = vld [vmem:[#allocation24_spill] sm:$0xff] }
 0x435   : > { %3009 = vmatpush1.bf16.msra.mxu0 %v8549_v42  ;;  %3050 = vmatpush1.bf16.msra.mxu1 %v8550_v60  ;;  %v2724_v42 = vrot.slane %v2719_v0, %v8569_v41 }
 0x436   : > { %3010 = vmatprep.subr.bf16.mxu0 %v8551_v59  ;;  %3051 = vmatprep.subr.bf16.mxu1 %v8552_v43 }
 0x439   : > { %3011 = vmatpush1.bf16.msra.mxu0 %v8553_v44  ;;  %3052 = vmatpush1.bf16.msra.mxu1 %v8554_v45  ;;  %v8570_v44 = vld [vmem:[#allocation25_spill] sm:$0xff] }
 0x43a   : > { %3012 = vmatprep.subr.bf16.mxu0 %v8555_v24  ;;  %3053 = vmatprep.subr.bf16.mxu1 %v8556_v26  ;;  %v2728_v45 = vrot.slane %v2719_v0, %v8570_v44 }
 0x43d   : > { %3013 = vmatpush1.bf16.msra.mxu0 %v8557_v18  ;;  %3054 = vmatpush1.bf16.msra.mxu1 %v8558_v56 }
 0x43e   : > { %3014 = vmatprep.subr.bf16.mxu0 %v8559_v53  ;;  %3055 = vmatprep.subr.bf16.mxu1 %v8560_v51 }
 0x441   : > { %3015 = vmatpush1.bf16.msra.mxu0 %v8561_v50  ;;  %3056 = vmatpush1.bf16.msra.mxu1 %v8562_v48 }
 0x442   : > { %3016 = vmatprep.subr.bf16.mxu0 %v8563_v49  ;;  %3057 = vmatprep.subr.bf16.mxu1 %v8564_v52 }
 0x445   : > { %3017 = vmatpush1.bf16.msra.mxu0 %v8565_v61  ;;  %3058 = vmatpush1.bf16.msra.mxu1 %v8566_v22 }
 0x446   : > { %3244 = vmatprep.subr.bf16.mxu0 %v8567_v54  ;;  %3285 = vmatprep.subr.bf16.mxu1 %v8568_v58  ;;  %v2736_v54 = vrot.slane %v2719_v0, %v7341_v27 }
 0x4c8   : > { %v2429_v46 = vpop.f32.mrf.mxu0  ;;  %v2470_v57 = vpop.f32.mrf.mxu1 }
 0x4ca   : > { %v2431_v63 = vpop.f32.mrf.mxu0  ;;  %v2472_v25 = vpop.f32.mrf.mxu1 }
 0x4cc   : > { %v2433_v23 = vpop.f32.mrf.mxu0  ;;  %v2474_v38 = vpop.f32.mrf.mxu1 }
 0x4cd   : > { %v2732_v23 = vrot.slane %v2719_v0, %v7344_v33 }
 0x4ce   : > { %v2434_v39 = vpop.f32.mrf.mxu0  ;;  %v2475_v40 = vpop.f32.mrf.mxu1 }
 0x4e8   : > { %v2671_v60 = vpop.f32.mrf.mxu0  ;;  %v2712_v59 = vpop.f32.mrf.mxu1 }
 0x4e9   : > { %v2672_v43 = vadd.f32 %v2671_v60, %v2429_v46  ;;  %v2713_v46 = vadd.f32 %v2712_v59, %v2470_v57 }
 0x4ea   : > { %v2673_v24 = vpop.f32.mrf.mxu0  ;;  %v2714_v26 = vpop.f32.mrf.mxu1 }
 0x4eb   : > { %v2741_v18 = vadd.f32 %v2724_v42, %v2672_v43  ;;  %v2674_v56 = vadd.f32 %v2673_v24, %v2431_v63  ;;  %v2715_v22 = vadd.f32 %v2714_v26, %v2472_v25  ;;  %v2743_v40 = vadd.f32 %v2732_v23, %v2713_v46 }
 0x4ec   : > { %v2675_v53 = vpop.f32.mrf.mxu0  ;;  %v2716_v51 = vpop.f32.mrf.mxu1 }
 0x4ed   : > { %v5758_v50 = vmul.f32 -1.442695, %v2741_v18  ;;  %v2742_v48 = vadd.f32 %v2728_v45, %v2674_v56  ;;  %v2744_v58 = vadd.f32 %v2736_v54, %v2715_v22 }
 0x4ee   : > { %v2676_v49 = vpop.f32.mrf.mxu0  ;;  %v2717_v52 = vpop.f32.mrf.mxu1 }
 0x4ef   : > { %6465 = vpow2.f32 %v5758_v50  ;;  %v5759_v61 = vmul.f32 -1.442695, %v2742_v48  ;;  %v5760_v38 = vmul.f32 -1.442695, %v2744_v58  ;;  %v7963_v50 = vld [vmem:[%s7026_s9] ss:$16 sps:$4 sm:$0xff]  }
 0x4f0   : > { %8592 = vst [vmem:[#allocation40_spill] sm:$0xff] %v7963_v50  ;;  %v7966_v48 = vld [vmem:[%s7026_s9 + $0x8] ss:$16 sps:$4 sm:$0xff]   ;;  %v7971_v49 = vld [vmem:[%s7019_s10 + $0xe4] ss:$16 sps:$4 sm:$0xff]  }
 0x4f1   : > { %6467 = vpow2.f32 %v5759_v61  ;;  %8593 = vst [vmem:[#allocation41_spill] sm:$0xff] %v7966_v48  ;;  %8594 = vst [vmem:[#allocation42_spill] sm:$0xff] %v7971_v49  ;;  %v7974_v52 = vld [vmem:[%s7019_s10 + $0xec] ss:$16 sps:$4 sm:$0xff]  }
 0x4f2   : > { %6469 = vpow2.f32 %v5760_v38  ;;  %8595 = vst [vmem:[#allocation43_spill] sm:$0xff] %v7974_v52 }
 0x4fc   : > { %v6466_v39 = vpop.eup %6465 }
 0x4fd   : > { %v2748_v63 = vadd.f32 1.0, %v6466_v39 }
 0x4fe   : > { %v6468_v42 = vpop.eup %6467 }
 0x4ff   : > { %6471 = vrcp.f32 %v2748_v63  ;;  %v2754_v60 = vadd.f32 1.0, %v6468_v42  ;;  %v6470_v43 = vpop.eup %6469 }
 0x500   : > { %6473 = vtanh.f32 %v2743_v40  ;;  %v2761_v26 = vadd.f32 1.0, %v6470_v43  ;;  %v3326_v40 = vld [vmem:[%s7029_s11] sm:$0xf] }
 0x501   : > { %6475 = vrcp.f32 %v2754_v60  ;;  %v3331_v63 = vrot.slane %v3326_v40, %v8569_v41 }
 0x502   : > { %6477 = vrcp.f32 %v2761_v26 }
 0x50c   : > { %v6472_v25 = vpop.eup %6471 }
 0x50d   : > { %v6474_v45 = vpop.eup %6473 }
 0x50e   : > { %v6476_v24 = vpop.eup %6475  ;;  %v2765_v57 = vmul.f32 %v6474_v45, %v6472_v25  ;;  %v3335_v25 = vrot.slane %v3326_v40, %v8570_v44 }
 0x50f   : > { %v2764_v0 = vmul.f32 %v6476_v24, %v7716_v47  ;;  %v6478_v18 = vpop.eup %6477  ;;  %v7939_v47 = vld [vmem:[%s7026_s9 + $0x24] ss:$16 sps:$4 sm:$0xff]  }
 0x510   : > { %8586 = vst [vmem:[#allocation33_spill] sm:$0xff] %v7939_v47 }
 0x511   : > { %v7800_v59 = vadd.f32 %v2765_v57, %v2764_v0 }
 0x513   : > { %6479 = vtanh.f32 %v7800_v59 }
 0x520   : > { %v6480_v56 = vpop.eup %6479 }
 0x521   : > { %v2768_v53 = vmul.f32 %v6480_v56, %v6478_v18 }
 0x523   : > { %2771 = vst [vmem:[%s2770_s27] sm:$0xff] %v2768_v53  ;;  %v2809_v51 = vpack.c.bf16 %v2768_v53, %v2768_v53  ;;  %s5969_s27 = sshll.u32 %s8189_s26, 3 }
 0x524   : > { %s4591_s1 = scalar_lea.vmem %s7352_s12, %s5969_s27 [#allocation10] }
 0x525   : > { %3035 = vmatmul.mubr.bf16.vlgmr.msra.gmra.mxu0 %v2809_v51  ;;  %3076 = vmatmul.mubr.bf16.vlgmr.msra.gmra.mxu1 %v2809_v51 }
 0x526   : > { %3245 = vmatpush1.bf16.msra.mxu0 %v7548_v20  ;;  %3286 = vmatpush1.bf16.msra.mxu1 %v7551_v21  ;;  %v2776_v20 = vld [vmem:[%s2775_s22] sm:$0xf]  ;;  %v7845_v21 = vld [vmem:[%s7026_s9 + $0xe4] ss:$16 sps:$4 sm:$0xff]   ;;  %s6041_s22 = sshll.u32 %s6905_s24, 7 }
 0x527   : > { %3246 = vmatprep.subr.bf16.mxu0 %v7554_v35  ;;  %3287 = vmatprep.subr.bf16.mxu1 %v7557_v36  ;;  %v7848_v35 = vld [vmem:[%s7026_s9 + $0xec] ss:$16 sps:$4 sm:$0xff]   ;;  %v7851_v36 = vld [vmem:[%s7026_s9 + $0xe0] ss:$16 sps:$4 sm:$0xff]   ;;  %s8299_s28 = scalar_lea.hbm %s8382_s5, %s6041_s22 }
 0x528   : > { %3276 = vmatprep.mubr.bf16.mxu0 %v8502_v62  ;;  %3317 = vmatprep.mubr.bf16.mxu1 %v8502_v62 }
 0x52a   : > { %3247 = vmatpush1.bf16.msra.mxu0 %v7562_v37  ;;  %3288 = vmatpush1.bf16.msra.mxu1 %v7565_v3  ;;  %v7854_v37 = vld [vmem:[%s7026_s9 + $0xe8] ss:$16 sps:$4 sm:$0xff]   ;;  %v7861_v3 = vld [vmem:[%s7026_s9 + $0xc4] ss:$16 sps:$4 sm:$0xff]  }
 0x52b   : > { %3248 = vmatprep.subr.bf16.mxu0 %v7570_v5  ;;  %3289 = vmatprep.subr.bf16.mxu1 %v7573_v6  ;;  %v7864_v5 = vld [vmem:[%s7026_s9 + $0xcc] ss:$16 sps:$4 sm:$0xff]   ;;  %v7867_v6 = vld [vmem:[%s7026_s9 + $0xc0] ss:$16 sps:$4 sm:$0xff]  }
 0x52e   : > { %3249 = vmatpush1.bf16.msra.mxu0 %v7580_v7  ;;  %3290 = vmatpush1.bf16.msra.mxu1 %v7583_v32  ;;  %v7870_v7 = vld [vmem:[%s7026_s9 + $0xc8] ss:$16 sps:$4 sm:$0xff]   ;;  %v7877_v32 = vld [vmem:[%s7026_s9 + $0xa4] ss:$16 sps:$4 sm:$0xff]  }
 0x52f   : > { %3250 = vmatprep.subr.bf16.mxu0 %v7588_v4  ;;  %3291 = vmatprep.subr.bf16.mxu1 %v7591_v9  ;;  %v7880_v4 = vld [vmem:[%s7026_s9 + $0xac] ss:$16 sps:$4 sm:$0xff]   ;;  %v7883_v9 = vld [vmem:[%s7026_s9 + $0xa0] ss:$16 sps:$4 sm:$0xff]  }
 0x530   : > { %8571 = vst [vmem:[#allocation49_spill] sm:$0xff] %v7880_v4  ;;  %8572 = vst [vmem:[#allocation50_spill] sm:$0xff] %v7883_v9 }
 0x532   : > { %3251 = vmatpush1.bf16.msra.mxu0 %v7596_v55  ;;  %3292 = vmatpush1.bf16.msra.mxu1 %v7599_v10  ;;  %v7886_v55 = vld [vmem:[%s7026_s9 + $0xa8] ss:$16 sps:$4 sm:$0xff]   ;;  %v7893_v10 = vld [vmem:[%s7026_s9 + $0x84] ss:$16 sps:$4 sm:$0xff]  }
 0x533   : > { %3252 = vmatprep.subr.bf16.mxu0 %v7604_v15  ;;  %3293 = vmatprep.subr.bf16.mxu1 %v7607_v1  ;;  %8573 = vst [vmem:[#allocation51_spill] sm:$0xff] %v7886_v55  ;;  %8574 = vst [vmem:[#allocation52_spill] sm:$0xff] %v7893_v10  ;;  %v7896_v15 = vld [vmem:[%s7026_s9 + $0x8c] ss:$16 sps:$4 sm:$0xff]   ;;  %v7899_v1 = vld [vmem:[%s7026_s9 + $0x80] ss:$16 sps:$4 sm:$0xff]  }
 0x534   : > { %8575 = vst [vmem:[#allocation53_spill] sm:$0xff] %v7896_v15  ;;  %8576 = vst [vmem:[#allocation22_spill] sm:$0xff] %v7899_v1 }
 0x536   : > { %3253 = vmatpush1.bf16.msra.mxu0 %v7612_v17  ;;  %3294 = vmatpush1.bf16.msra.mxu1 %v7615_v2  ;;  %v7902_v17 = vld [vmem:[%s7026_s9 + $0x88] ss:$16 sps:$4 sm:$0xff]   ;;  %v7907_v2 = vld [vmem:[%s7026_s9 + $0x64] ss:$16 sps:$4 sm:$0xff]  }
 0x537   : > { %3254 = vmatprep.subr.bf16.mxu0 %v8539_v28  ;;  %3295 = vmatprep.subr.bf16.mxu1 %v8540_v29  ;;  %8577 = vst [vmem:[#allocation23_spill] sm:$0xff] %v7902_v17  ;;  %8578 = vst [vmem:[#allocation26_spill] sm:$0xff] %v7907_v2  ;;  %v7942_v28 = vld [vmem:[%s7026_s9 + $0x2c] ss:$16 sps:$4 sm:$0xff]   ;;  %v7947_v29 = vld [vmem:[%s7026_s9 + $0x20] ss:$16 sps:$4 sm:$0xff]  }
 0x538   : > { %8587 = vst [vmem:[#allocation35_spill] sm:$0xff] %v7942_v28  ;;  %8588 = vst [vmem:[#allocation36_spill] sm:$0xff] %v7947_v29 }
 0x53a   : > { %3255 = vmatpush1.bf16.msra.mxu0 %v8541_v30  ;;  %3296 = vmatpush1.bf16.msra.mxu1 %v8542_v31  ;;  %v7950_v30 = vld [vmem:[%s7026_s9 + $0x28] ss:$16 sps:$4 sm:$0xff]   ;;  %v7955_v31 = vld [vmem:[%s7026_s9 + $0x4] ss:$16 sps:$4 sm:$0xff]  }
 0x53b   : > { %3256 = vmatprep.subr.bf16.mxu0 %v7637_v13  ;;  %3297 = vmatprep.subr.bf16.mxu1 %v8543_v16  ;;  %v7925_v13 = vld [vmem:[%s7026_s9 + $0x4c] ss:$16 sps:$4 sm:$0xff]   ;;  %8589 = vst [vmem:[#allocation37_spill] sm:$0xff] %v7950_v30  ;;  %8590 = vst [vmem:[#allocation38_spill] sm:$0xff] %v7955_v31 }
 0x53c   : > { %8583 = vst [vmem:[#allocation31_spill] sm:$0xff] %v7925_v13  ;;  %v7958_v16 = vld [vmem:[%s7026_s9 + $0xc] ss:$16 sps:$4 sm:$0xff]  }
 0x53d   : > { %8591 = vst [vmem:[#allocation39_spill] sm:$0xff] %v7958_v16 }
 0x53e   : > { %3257 = vmatpush1.bf16.msra.mxu0 %v7648_v19  ;;  %3298 = vmatpush1.bf16.msra.mxu1 %v7651_v12  ;;  %v7931_v19 = vld [vmem:[%s7026_s9 + $0x40] ss:$16 sps:$4 sm:$0xff]   ;;  %v7934_v12 = vld [vmem:[%s7026_s9 + $0x48] ss:$16 sps:$4 sm:$0xff]  }
 0x53f   : > { %3258 = vmatprep.subr.bf16.mxu0 %v7656_v8  ;;  %3299 = vmatprep.subr.bf16.mxu1 %v7659_v34  ;;  %v7912_v34 = vld [vmem:[%s7026_s9 + $0x60] ss:$16 sps:$4 sm:$0xff]   ;;  %v7915_v8 = vld [vmem:[%s7026_s9 + $0x68] ss:$16 sps:$4 sm:$0xff]   ;;  %8584 = vst [vmem:[#allocation34_spill] sm:$0xff] %v7931_v19  ;;  %8585 = vst [vmem:[#allocation32_spill] sm:$0xff] %v7934_v12 }
 0x540   : > { %8579 = vst [vmem:[#allocation27_spill] sm:$0xff] %v7912_v34  ;;  %8580 = vst [vmem:[#allocation28_spill] sm:$0xff] %v7915_v8 }
 0x542   : > { %3259 = vmatpush1.bf16.msra.mxu0 %v7665_v14  ;;  %3300 = vmatpush1.bf16.msra.mxu1 %v7668_v11  ;;  %v7918_v14 = vld [vmem:[%s7026_s9 + $0x6c] ss:$16 sps:$4 sm:$0xff]   ;;  %v7922_v11 = vld [vmem:[%s7026_s9 + $0x44] ss:$16 sps:$4 sm:$0xff]   ;;  %s5831_s9 = sshll.u32 %s7829_s14, 3  ;;  %s4593_s14 = smul.u32 7, %s7379_s15 }
 0x543   : > { %3609 = vmatprep.subr.bf16.mxu0 %v7845_v21  ;;  %3650 = vmatprep.subr.bf16.mxu1 %v7848_v35  ;;  %8581 = vst [vmem:[#allocation29_spill] sm:$0xff] %v7918_v14  ;;  %8582 = vst [vmem:[#allocation30_spill] sm:$0xff] %v7922_v11  ;;  %s3377_s25 = scalar_lea.vmem %s7352_s12, %s5831_s9 [#allocation10] }
 0x544   : > { %s8273_s20 = sadd.s32 %s4593_s14, %s7375_s30 }
 0x545   : > { %3277 = vmatmul.mubr.bf16.vlgmr.msra.gmra.mxu0 %v2776_v20  ;;  %3318 = vmatmul.mubr.bf16.vlgmr.msra.gmra.mxu1 %v2776_v20  ;;  %s5970_s15 = sshll.u32 %s8273_s20, 2 }
 0x546   : > { %3641 = vmatprep.mubr.bf16.mxu0 %v8502_v62  ;;  %3682 = vmatprep.mubr.bf16.mxu1 %v8502_v62  ;;  %s4596_s30 = scalar_lea.vmem [#allocation2], %s5970_s15 }
 0x547   : > { %3610 = vmatpush1.bf16.msra.mxu0 %v7851_v36  ;;  %3651 = vmatpush1.bf16.msra.mxu1 %v7854_v37 }
 0x548   : > { %3611 = vmatprep.subr.bf16.mxu0 %v7861_v3  ;;  %3652 = vmatprep.subr.bf16.mxu1 %v7864_v5 }
 0x54b   : > { %3612 = vmatpush1.bf16.msra.mxu0 %v7867_v6  ;;  %3653 = vmatpush1.bf16.msra.mxu1 %v7870_v7 }
 0x54c   : > { %3613 = vmatprep.subr.bf16.mxu0 %v7877_v32  ;;  %3654 = vmatprep.subr.bf16.mxu1 %v7880_v4 }
 0x54f   : > { %3614 = vmatpush1.bf16.msra.mxu0 %v7883_v9  ;;  %3655 = vmatpush1.bf16.msra.mxu1 %v7886_v55 }
 0x550   : > { %3615 = vmatprep.subr.bf16.mxu0 %v7893_v10  ;;  %3656 = vmatprep.subr.bf16.mxu1 %v7896_v15 }
 0x553   : > { %3616 = vmatpush1.bf16.msra.mxu0 %v7899_v1  ;;  %3657 = vmatpush1.bf16.msra.mxu1 %v7902_v17 }
 0x554   : > { %3617 = vmatprep.subr.bf16.mxu0 %v7907_v2  ;;  %3658 = vmatprep.subr.bf16.mxu1 %v7918_v14 }
 0x557   : > { %3618 = vmatpush1.bf16.msra.mxu0 %v7912_v34  ;;  %3659 = vmatpush1.bf16.msra.mxu1 %v7915_v8 }
 0x558   : > { %3619 = vmatprep.subr.bf16.mxu0 %v7922_v11  ;;  %3660 = vmatprep.subr.bf16.mxu1 %v7925_v13 }
 0x55b   : > { %3620 = vmatpush1.bf16.msra.mxu0 %v7931_v19  ;;  %3661 = vmatpush1.bf16.msra.mxu1 %v7934_v12 }
 0x55c   : > { %3621 = vmatprep.subr.bf16.mxu0 %v7939_v47  ;;  %3662 = vmatprep.subr.bf16.mxu1 %v7942_v28 }
 0x55f   : > { %3622 = vmatpush1.bf16.msra.mxu0 %v7947_v29  ;;  %3663 = vmatpush1.bf16.msra.mxu1 %v7950_v30 }
 0x560   : > { %3623 = vmatprep.subr.bf16.mxu0 %v7955_v31  ;;  %3664 = vmatprep.subr.bf16.mxu1 %v7958_v16 }
 0x563   : > { %3624 = vmatpush1.bf16.msra.mxu0 %v7963_v50  ;;  %3665 = vmatpush1.bf16.msra.mxu1 %v7966_v48 }
 0x564   : > { %3851 = vmatprep.subr.bf16.mxu0 %v7971_v49  ;;  %3892 = vmatprep.subr.bf16.mxu1 %v7974_v52 }
 0x5e5   : > { %v3036_v61 = vpop.f32.mrf.mxu0  ;;  %v3077_v22 = vpop.f32.mrf.mxu1 }
 0x5e7   : > { %v3038_v54 = vpop.f32.mrf.mxu0  ;;  %v3079_v58 = vpop.f32.mrf.mxu1 }
 0x5e9   : > { %v3040_v46 = vpop.f32.mrf.mxu0  ;;  %v3081_v23 = vpop.f32.mrf.mxu1 }
 0x5eb   : > { %v3041_v38 = vpop.f32.mrf.mxu0  ;;  %v3082_v39 = vpop.f32.mrf.mxu1 }
 0x5ec   : > { %v3343_v38 = vrot.slane %v3326_v40, %v7341_v27 }
 0x605   : > { %v3278_v42 = vpop.f32.mrf.mxu0  ;;  %v3319_v60 = vpop.f32.mrf.mxu1 }
 0x606   : > { %v3279_v43 = vadd.f32 %v3278_v42, %v3036_v61  ;;  %v3320_v61 = vadd.f32 %v3319_v60, %v3077_v22  ;;  %v3339_v42 = vrot.slane %v3326_v40, %v7344_v33 }
 0x607   : > { %v3280_v45 = vpop.f32.mrf.mxu0  ;;  %v3321_v24 = vpop.f32.mrf.mxu1 }
 0x608   : > { %v3348_v26 = vadd.f32 %v3331_v63, %v3279_v43  ;;  %v3281_v57 = vadd.f32 %v3280_v45, %v3038_v54  ;;  %v3322_v23 = vadd.f32 %v3321_v24, %v3079_v58  ;;  %v3350_v63 = vadd.f32 %v3339_v42, %v3320_v61  ;;  %v8027_v61 = vld [vmem:[%s7019_s10 + $0xa8] ss:$16 sps:$4 sm:$0xff]   ;;  %v8032_v42 = vld [vmem:[%s7019_s10 + $0x84] ss:$16 sps:$4 sm:$0xff]  }
 0x609   : > { %v3282_v0 = vpop.f32.mrf.mxu0  ;;  %v3323_v18 = vpop.f32.mrf.mxu1 }
 0x60a   : > { %v5828_v56 = vmul.f32 -1.442695, %v3348_v26  ;;  %v3349_v53 = vadd.f32 %v3335_v25, %v3281_v57  ;;  %v3351_v39 = vadd.f32 %v3343_v38, %v3322_v23  ;;  %v7992_v18 = vld [vmem:[%s7019_s10 + $0xe0] ss:$16 sps:$4 sm:$0xff]   ;;  %v8014_v23 = vld [vmem:[%s7019_s10 + $0xa4] ss:$16 sps:$4 sm:$0xff]  }
 0x60b   : > { %v3283_v51 = vpop.f32.mrf.mxu0  ;;  %v3324_v20 = vpop.f32.mrf.mxu1  ;;  %v8017_v38 = vld [vmem:[%s7019_s10 + $0xac] ss:$16 sps:$4 sm:$0xff]  }
 0x60c   : > { %6481 = vpow2.f32 %v5828_v56  ;;  %v5829_v46 = vmul.f32 -1.442695, %v3349_v53  ;;  %v5830_v44 = vmul.f32 -1.442695, %v3351_v39  ;;  %v7995_v56 = vld [vmem:[%s7019_s10 + $0xe8] ss:$16 sps:$4 sm:$0xff]  }
 0x60d   : > { %v7998_v53 = vld [vmem:[%s7019_s10 + $0xc4] ss:$16 sps:$4 sm:$0xff]   ;;  %v8001_v51 = vld [vmem:[%s7019_s10 + $0xcc] ss:$16 sps:$4 sm:$0xff]   ;;  %v8006_v20 = vld [vmem:[%s7019_s10 + $0xc0] ss:$16 sps:$4 sm:$0xff]  }
 0x60e   : > { %6483 = vpow2.f32 %v5829_v46  ;;  %v8009_v46 = vld [vmem:[%s7019_s10 + $0xc8] ss:$16 sps:$4 sm:$0xff]   ;;  %v8024_v39 = vld [vmem:[%s7019_s10 + $0xa0] ss:$16 sps:$4 sm:$0xff]  }
 0x60f   : > { %6485 = vpow2.f32 %v5830_v44 }
 0x619   : > { %v6482_v41 = vpop.eup %6481 }
 0x61a   : > { %v3355_v54 = vadd.f32 1.0, %v6482_v41 }
 0x61b   : > { %v6484_v43 = vpop.eup %6483 }
 0x61c   : > { %6487 = vrcp.f32 %v3355_v54  ;;  %v3361_v25 = vadd.f32 1.0, %v6484_v43  ;;  %v6486_v58 = vpop.eup %6485  ;;  %v8040_v54 = vld [vmem:[%s7019_s10 + $0x80] ss:$16 sps:$4 sm:$0xff]   ;;  %v8043_v43 = vld [vmem:[%s7019_s10 + $0x88] ss:$16 sps:$4 sm:$0xff]  }
 0x61d   : > { %6489 = vtanh.f32 %v3350_v63  ;;  %v3368_v40 = vadd.f32 1.0, %v6486_v58  ;;  %v8035_v63 = vld [vmem:[%s7019_s10 + $0x8c] ss:$16 sps:$4 sm:$0xff]  }
 0x61e   : > { %6491 = vrcp.f32 %v3361_v25  ;;  %v8048_v25 = vld [vmem:[%s7019_s10 + $0x64] ss:$16 sps:$4 sm:$0xff]   ;;  %v8051_v58 = vld [vmem:[%s7019_s10 + $0x6c] ss:$16 sps:$4 sm:$0xff]  }
 0x61f   : > { %6493 = vrcp.f32 %v3368_v40  ;;  %v8067_v40 = vld [vmem:[%s7019_s10 + $0x4c] ss:$16 sps:$4 sm:$0xff]  }
 0x620   : > { %8597 = vst [vmem:[#allocation45_spill] sm:$0xff] %v8067_v40 }
 0x629   : > { %v6488_v45 = vpop.eup %6487 }
 0x62a   : > { %v6490_v24 = vpop.eup %6489 }
 0x62b   : > { %v6492_v22 = vpop.eup %6491  ;;  %v3372_v60 = vmul.f32 %v6490_v24, %v6488_v45  ;;  %v8056_v45 = vld [vmem:[%s7019_s10 + $0x60] ss:$16 sps:$4 sm:$0xff]   ;;  %v8059_v24 = vld [vmem:[%s7019_s10 + $0x68] ss:$16 sps:$4 sm:$0xff]  }
 0x62c   : > { %v3371_v41 = vmul.f32 %v6492_v22, %v7800_v59  ;;  %v6494_v44 = vpop.eup %6493  ;;  %v8064_v22 = vld [vmem:[%s7019_s10 + $0x44] ss:$16 sps:$4 sm:$0xff]  }
 0x62d   : > { %8596 = vst [vmem:[#allocation44_spill] sm:$0xff] %v8064_v22 }
 0x62e   : > { %v7986_v26 = vadd.f32 %v3372_v60, %v3371_v41  ;;  %v8073_v60 = vld [vmem:[%s7019_s10 + $0x40] ss:$16 sps:$4 sm:$0xff]   ;;  %v8076_v41 = vld [vmem:[%s7019_s10 + $0x48] ss:$16 sps:$4 sm:$0xff]  }
 0x62f   : > { %8598 = vst [vmem:[#allocation46_spill] sm:$0xff] %v8073_v60  ;;  %8599 = vst [vmem:[#allocation47_spill] sm:$0xff] %v8076_v41 }
 0x630   : > { %6495 = vtanh.f32 %v7986_v26 }
 0x63d   : > { %v6496_v57 = vpop.eup %6495 }
 0x63e   : > { %v3375_v0 = vmul.f32 %v6496_v57, %v6494_v44  ;;  %v8081_v44 = vld [vmem:[%s7019_s10 + $0x24] ss:$16 sps:$4 sm:$0xff]   ;;  %v8084_v57 = vld [vmem:[%s7019_s10 + $0x2c] ss:$16 sps:$4 sm:$0xff]  }
 0x63f   : > { %8600 = vst [vmem:[#allocation48_spill] sm:$0xff] %v8084_v57 }
 0x640   : > { %3378 = vst [vmem:[%s3377_s25] sm:$0xff] %v3375_v0  ;;  %v3416_v59 = vpack.c.bf16 %v3375_v0, %v3375_v0  ;;  %v8092_v0 = vld [vmem:[%s7019_s10 + $0x20] ss:$16 sps:$4 sm:$0xff]  }
 0x642   : > { %3642 = vmatmul.mubr.bf16.vlgmr.msra.gmra.mxu0 %v3416_v59  ;;  %3683 = vmatmul.mubr.bf16.vlgmr.msra.gmra.mxu1 %v3416_v59  ;;  %v8095_v59 = vld [vmem:[%s7019_s10 + $0x28] ss:$16 sps:$4 sm:$0xff]  }
 0x643   : > { %3852 = vmatpush1.bf16.msra.mxu0 %v7992_v18  ;;  %3893 = vmatpush1.bf16.msra.mxu1 %v7995_v56 }
 0x644   : > { %3853 = vmatprep.subr.bf16.mxu0 %v7998_v53  ;;  %3894 = vmatprep.subr.bf16.mxu1 %v8001_v51 }
 0x645   : > { %3883 = vmatprep.mubr.bf16.mxu0 %v8502_v62  ;;  %3924 = vmatprep.mubr.bf16.mxu1 %v8502_v62 }
 0x647   : > { %3854 = vmatpush1.bf16.msra.mxu0 %v8006_v20  ;;  %3895 = vmatpush1.bf16.msra.mxu1 %v8009_v46 }
 0x648   : > { %3855 = vmatprep.subr.bf16.mxu0 %v8014_v23  ;;  %3896 = vmatprep.subr.bf16.mxu1 %v8017_v38 }
 0x64b   : > { %3856 = vmatpush1.bf16.msra.mxu0 %v8024_v39  ;;  %3897 = vmatpush1.bf16.msra.mxu1 %v8027_v61 }
 0x64c   : > { %3857 = vmatprep.subr.bf16.mxu0 %v8032_v42  ;;  %3898 = vmatprep.subr.bf16.mxu1 %v8035_v63 }
 0x64f   : > { %3858 = vmatpush1.bf16.msra.mxu0 %v8040_v54  ;;  %3899 = vmatpush1.bf16.msra.mxu1 %v8043_v43 }
 0x650   : > { %3859 = vmatprep.subr.bf16.mxu0 %v8048_v25  ;;  %3900 = vmatprep.subr.bf16.mxu1 %v8051_v58 }
 0x653   : > { %3860 = vmatpush1.bf16.msra.mxu0 %v8056_v45  ;;  %3901 = vmatpush1.bf16.msra.mxu1 %v8059_v24 }
 0x654   : > { %3861 = vmatprep.subr.bf16.mxu0 %v8064_v22  ;;  %3902 = vmatprep.subr.bf16.mxu1 %v8067_v40  ;;  %v8100_v40 = vld [vmem:[%s7019_s10 + $0x4] ss:$16 sps:$4 sm:$0xff]   ;;  %v8103_v22 = vld [vmem:[%s7019_s10 + $0xc] ss:$16 sps:$4 sm:$0xff]  }
 0x657   : > { %3862 = vmatpush1.bf16.msra.mxu0 %v8073_v60  ;;  %3903 = vmatpush1.bf16.msra.mxu1 %v8076_v41  ;;  %v8109_v60 = vld [vmem:[%s7019_s10] ss:$16 sps:$4 sm:$0xff]   ;;  %v8112_v41 = vld [vmem:[%s7019_s10 + $0x8] ss:$16 sps:$4 sm:$0xff]   ;;  %s5900_s10 = sshll.u32 %s8087_s17, 3 }
 0x658   : > { %3863 = vmatprep.subr.bf16.mxu0 %v8081_v44  ;;  %3904 = vmatprep.subr.bf16.mxu1 %v8084_v57  ;;  %v3383_v57 = vld [vmem:[%s3382_s16] sm:$0xf]  ;;  %s3984_s23 = scalar_lea.vmem %s7352_s12, %s5900_s10 [#allocation10]  ;;  %s5207_s16 = scalar_lea.sflag [#allocation12], %s7016_s21 }
 0x65b   : > { %3864 = vmatpush1.bf16.msra.mxu0 %v8092_v0  ;;  %3905 = vmatpush1.bf16.msra.mxu1 %v8095_v59 }
 0x65c   : > { %3865 = vmatprep.subr.bf16.mxu0 %v8100_v40  ;;  %3906 = vmatprep.subr.bf16.mxu1 %v8103_v22 }
 0x65f   : > { %3866 = vmatpush1.bf16.msra.mxu0 %v8109_v60  ;;  %3907 = vmatpush1.bf16.msra.mxu1 %v8112_v41 }
 0x660   : > { %4216 = vmatprep.subr.bf16.mxu0 %v7845_v21  ;;  %4257 = vmatprep.subr.bf16.mxu1 %v7848_v35 }
 0x662   : > { %3884 = vmatmul.mubr.bf16.vlgmr.msra.gmra.mxu0 %v3383_v57  ;;  %3925 = vmatmul.mubr.bf16.vlgmr.msra.gmra.mxu1 %v3383_v57 }
 0x663   : > { %4217 = vmatpush1.bf16.msra.mxu0 %v7851_v36  ;;  %4258 = vmatpush1.bf16.msra.mxu1 %v7854_v37 }
 0x664   : > { %4218 = vmatprep.subr.bf16.mxu0 %v7861_v3  ;;  %4259 = vmatprep.subr.bf16.mxu1 %v7864_v5 }
 0x665   : > { %4248 = vmatprep.mubr.bf16.mxu0 %v8502_v62  ;;  %4289 = vmatprep.mubr.bf16.mxu1 %v8502_v62 }
 0x667   : > { %4219 = vmatpush1.bf16.msra.mxu0 %v7867_v6  ;;  %4260 = vmatpush1.bf16.msra.mxu1 %v7870_v7 }
 0x668   : > { %4220 = vmatprep.subr.bf16.mxu0 %v7877_v32  ;;  %4261 = vmatprep.subr.bf16.mxu1 %v7880_v4 }
 0x66b   : > { %4221 = vmatpush1.bf16.msra.mxu0 %v7883_v9  ;;  %4262 = vmatpush1.bf16.msra.mxu1 %v7886_v55 }
 0x66c   : > { %4222 = vmatprep.subr.bf16.mxu0 %v7893_v10  ;;  %4263 = vmatprep.subr.bf16.mxu1 %v7896_v15 }
 0x66f   : > { %4223 = vmatpush1.bf16.msra.mxu0 %v7899_v1  ;;  %4264 = vmatpush1.bf16.msra.mxu1 %v7902_v17 }
 0x670   : > { %4224 = vmatprep.subr.bf16.mxu0 %v7907_v2  ;;  %4265 = vmatprep.subr.bf16.mxu1 %v7918_v14  ;;  %v8602_v14 = vld [vmem:[#allocation25_spill] sm:$0xff] }
 0x673   : > { %4225 = vmatpush1.bf16.msra.mxu0 %v7912_v34  ;;  %4266 = vmatpush1.bf16.msra.mxu1 %v7915_v8 }
 0x674   : > { %4226 = vmatprep.subr.bf16.mxu0 %v7922_v11  ;;  %4267 = vmatprep.subr.bf16.mxu1 %v7925_v13  ;;  %v3933_v11 = vld [vmem:[%s7029_s11] sm:$0xf] }
 0x677   : > { %4227 = vmatpush1.bf16.msra.mxu0 %v7931_v19  ;;  %4268 = vmatpush1.bf16.msra.mxu1 %v7934_v12 }
 0x678   : > { %4228 = vmatprep.subr.bf16.mxu0 %v7939_v47  ;;  %4269 = vmatprep.subr.bf16.mxu1 %v7942_v28 }
 0x67b   : > { %4229 = vmatpush1.bf16.msra.mxu0 %v7947_v29  ;;  %4270 = vmatpush1.bf16.msra.mxu1 %v7950_v30 }
 0x67c   : > { %4230 = vmatprep.subr.bf16.mxu0 %v7955_v31  ;;  %4271 = vmatprep.subr.bf16.mxu1 %v7958_v16  ;;  %v8601_v31 = vld [vmem:[#allocation24_spill] sm:$0xff] }
 0x67d   : > { %v3938_v8 = vrot.slane %v3933_v11, %v8601_v31  ;;  %v3950_v31 = vrot.slane %v3933_v11, %v7341_v27 }
 0x67f   : > { %4231 = vmatpush1.bf16.msra.mxu0 %v7963_v50  ;;  %4272 = vmatpush1.bf16.msra.mxu1 %v7966_v48  ;;  %v3942_v48 = vrot.slane %v3933_v11, %v8602_v14 }
 0x680   : > { %4458 = vmatprep.subr.bf16.mxu0 %v7971_v49  ;;  %4499 = vmatprep.subr.bf16.mxu1 %v7974_v52 }
 0x702   : > { %v3643_v57 = vpop.f32.mrf.mxu0  ;;  %v3684_v47 = vpop.f32.mrf.mxu1 }
 0x704   : > { %v3645_v28 = vpop.f32.mrf.mxu0  ;;  %v3686_v12 = vpop.f32.mrf.mxu1 }
 0x706   : > { %v3647_v29 = vpop.f32.mrf.mxu0  ;;  %v3688_v19 = vpop.f32.mrf.mxu1 }
 0x708   : > { %v3648_v13 = vpop.f32.mrf.mxu0  ;;  %v3689_v30 = vpop.f32.mrf.mxu1 }
 0x722   : > { %v3885_v16 = vpop.f32.mrf.mxu0  ;;  %v3926_v34 = vpop.f32.mrf.mxu1 }
 0x723   : > { %v3886_v50 = vadd.f32 %v3885_v16, %v3643_v57  ;;  %v3927_v16 = vadd.f32 %v3926_v34, %v3684_v47  ;;  %v3946_v57 = vrot.slane %v3933_v11, %v7344_v33 }
 0x724   : > { %v3887_v2 = vpop.f32.mrf.mxu0  ;;  %v3928_v49 = vpop.f32.mrf.mxu1 }
 0x725   : > { %v3955_v17 = vadd.f32 %v3938_v8, %v3886_v50  ;;  %v3888_v52 = vadd.f32 %v3887_v2, %v3645_v28  ;;  %v3929_v30 = vadd.f32 %v3928_v49, %v3686_v12  ;;  %v3957_v8 = vadd.f32 %v3946_v57, %v3927_v16  ;;  %v8603_v50 = vld [vmem:[#allocation44_spill] sm:$0xff]  ;;  %v8605_v49 = vld [vmem:[#allocation46_spill] sm:$0xff]  ;;  %v8620_v16 = vld [vmem:[#allocation31_spill] sm:$0xff] }
 0x726   : > { %v3889_v1 = vpop.f32.mrf.mxu0  ;;  %v3930_v15 = vpop.f32.mrf.mxu1  ;;  %v8621_v57 = vld [vmem:[#allocation34_spill] sm:$0xff] }
 0x727   : > { %v5897_v10 = vmul.f32 -1.442695, %v3955_v17  ;;  %v3956_v55 = vadd.f32 %v3942_v48, %v3888_v52  ;;  %v3958_v9 = vadd.f32 %v3950_v31, %v3929_v30  ;;  %v8604_v48 = vld [vmem:[#allocation45_spill] sm:$0xff]  ;;  %v8606_v52 = vld [vmem:[#allocation47_spill] sm:$0xff]  ;;  %v8619_v30 = vld [vmem:[#allocation30_spill] sm:$0xff] }
 0x728   : > { %v3890_v29 = vpop.f32.mrf.mxu0  ;;  %v3931_v19 = vpop.f32.mrf.mxu1 }
 0x729   : > { %6497 = vpow2.f32 %v5897_v10  ;;  %v5898_v13 = vmul.f32 -1.442695, %v3956_v55  ;;  %v5899_v14 = vmul.f32 -1.442695, %v3958_v9  ;;  %v3990_v29 = vld [vmem:[%s3989_s6] sm:$0xf] }
 0x72a   : > { %v8614_v19 = vld [vmem:[#allocation23_spill] sm:$0xff] }
 0x72b   : > { %6499 = vpow2.f32 %v5898_v13  ;;  %v8615_v13 = vld [vmem:[#allocation26_spill] sm:$0xff] }
 0x72c   : > { %6501 = vpow2.f32 %v5899_v14 }
 0x736   : > { %v6498_v4 = vpop.eup %6497 }
 0x737   : > { %v3962_v2 = vadd.f32 1.0, %v6498_v4 }
 0x738   : > { %v6500_v1 = vpop.eup %6499 }
 0x739   : > { %6503 = vrcp.f32 %v3962_v2  ;;  %v3968_v15 = vadd.f32 1.0, %v6500_v1  ;;  %v6502_v55 = vpop.eup %6501  ;;  %v8623_v2 = vld [vmem:[#allocation33_spill] sm:$0xff]  ;;  %v8624_v1 = vld [vmem:[#allocation35_spill] sm:$0xff] }
 0x73a   : > { %6505 = vtanh.f32 %v3957_v8  ;;  %v3975_v28 = vadd.f32 1.0, %v6502_v55  ;;  %v8622_v8 = vld [vmem:[#allocation32_spill] sm:$0xff]  ;;  %v8626_v55 = vld [vmem:[#allocation37_spill] sm:$0xff] }
 0x73b   : > { %6507 = vrcp.f32 %v3968_v15  ;;  %v8625_v15 = vld [vmem:[#allocation36_spill] sm:$0xff] }
 0x73c   : > { %6509 = vrcp.f32 %v3975_v28  ;;  %v8630_v28 = vld [vmem:[#allocation41_spill] sm:$0xff] }
 0x746   : > { %v6504_v10 = vpop.eup %6503 }
 0x747   : > { %v6506_v17 = vpop.eup %6505 }
 0x748   : > { %v6508_v12 = vpop.eup %6507  ;;  %v3979_v34 = vmul.f32 %v6506_v17, %v6504_v10  ;;  %v8627_v10 = vld [vmem:[#allocation38_spill] sm:$0xff]  ;;  %v8628_v17 = vld [vmem:[#allocation39_spill] sm:$0xff] }
 0x749   : > { %v3978_v11 = vmul.f32 %v6508_v12, %v7986_v26  ;;  %v6510_v4 = vpop.eup %6509  ;;  %v8607_v26 = vld [vmem:[#allocation48_spill] sm:$0xff] }
 0x74a   : > { %v8629_v12 = vld [vmem:[#allocation40_spill] sm:$0xff] }
 0x74b   : > { %v8160_v9 = vadd.f32 %v3979_v34, %v3978_v11  ;;  %v8631_v34 = vld [vmem:[#allocation42_spill] sm:$0xff]  ;;  %v8632_v11 = vld [vmem:[#allocation43_spill] sm:$0xff] }
 0x74d   : > { %6511 = vtanh.f32 %v8160_v9 }
 0x75a   : > { %v6512_v14 = vpop.eup %6511 }
 0x75b   : > { %v3982_v47 = vmul.f32 %v6512_v14, %v6510_v4 }
 0x75d   : > { %3985 = vst [vmem:[%s3984_s23] sm:$0xff] %v3982_v47  ;;  %v4023_v31 = vpack.c.bf16 %v3982_v47, %v3982_v47  ;;  %s6768_s23 = smov [#allocation11]  }
 0x75e   : > { %s6659_s8 = sshll.u32 %s6768_s23, 4  ;;  %s6660_s8 = int_to_ptr.vmem [resolvable:$false] %s6659_s8 }
 0x75f   : > { %4249 = vmatmul.mubr.bf16.vlgmr.msra.gmra.mxu0 %v4023_v31  ;;  %4290 = vmatmul.mubr.bf16.vlgmr.msra.gmra.mxu1 %v4023_v31  ;;  %s6661_s26 = scalar_lea.vmem %s6660_s8, 256 }
 0x760   : > { %4459 = vmatpush1.bf16.msra.mxu0 %v7992_v18  ;;  %4500 = vmatpush1.bf16.msra.mxu1 %v7995_v56 }
 0x761   : > { %4460 = vmatprep.subr.bf16.mxu0 %v7998_v53  ;;  %4501 = vmatprep.subr.bf16.mxu1 %v8001_v51 }
 0x762   : > { %4490 = vmatprep.mubr.bf16.mxu0 %v8502_v62  ;;  %4531 = vmatprep.mubr.bf16.mxu1 %v8502_v62 }
 0x764   : > { %4461 = vmatpush1.bf16.msra.mxu0 %v8006_v20  ;;  %4502 = vmatpush1.bf16.msra.mxu1 %v8009_v46 }
 0x765   : > { %4462 = vmatprep.subr.bf16.mxu0 %v8014_v23  ;;  %4503 = vmatprep.subr.bf16.mxu1 %v8017_v38 }
 0x768   : > { %4463 = vmatpush1.bf16.msra.mxu0 %v8024_v39  ;;  %4504 = vmatpush1.bf16.msra.mxu1 %v8027_v61 }
 0x769   : > { %4464 = vmatprep.subr.bf16.mxu0 %v8032_v42  ;;  %4505 = vmatprep.subr.bf16.mxu1 %v8035_v63 }
 0x76c   : > { %4465 = vmatpush1.bf16.msra.mxu0 %v8040_v54  ;;  %4506 = vmatpush1.bf16.msra.mxu1 %v8043_v43 }
 0x76d   : > { %4466 = vmatprep.subr.bf16.mxu0 %v8048_v25  ;;  %4507 = vmatprep.subr.bf16.mxu1 %v8051_v58 }
 0x770   : > { %4467 = vmatpush1.bf16.msra.mxu0 %v8056_v45  ;;  %4508 = vmatpush1.bf16.msra.mxu1 %v8059_v24 }
 0x771   : > { %4468 = vmatprep.subr.bf16.mxu0 %v8603_v50  ;;  %4509 = vmatprep.subr.bf16.mxu1 %v8604_v48 }
 0x774   : > { %4469 = vmatpush1.bf16.msra.mxu0 %v8605_v49  ;;  %4510 = vmatpush1.bf16.msra.mxu1 %v8606_v52 }
 0x775   : > { %4470 = vmatprep.subr.bf16.mxu0 %v8081_v44  ;;  %4511 = vmatprep.subr.bf16.mxu1 %v8607_v26 }
 0x778   : > { %4471 = vmatpush1.bf16.msra.mxu0 %v8092_v0  ;;  %4512 = vmatpush1.bf16.msra.mxu1 %v8095_v59 }
 0x779   : > { %4472 = vmatprep.subr.bf16.mxu0 %v8100_v40  ;;  %4513 = vmatprep.subr.bf16.mxu1 %v8103_v22 }
 0x77c   : > { %4473 = vmatpush1.bf16.msra.mxu0 %v8109_v60  ;;  %4514 = vmatpush1.bf16.msra.mxu1 %v8112_v41 }
 0x77d   : > { %4823 = vmatprep.subr.bf16.mxu0 %v7845_v21  ;;  %4864 = vmatprep.subr.bf16.mxu1 %v7848_v35  ;;  %v8608_v21 = vld [vmem:[#allocation49_spill] sm:$0xff]  ;;  %v8609_v35 = vld [vmem:[#allocation50_spill] sm:$0xff] }
 0x77f   : > { %4491 = vmatmul.mubr.bf16.vlgmr.msra.gmra.mxu0 %v3990_v29  ;;  %4532 = vmatmul.mubr.bf16.vlgmr.msra.gmra.mxu1 %v3990_v29 }
 0x780   : > { %4824 = vmatpush1.bf16.msra.mxu0 %v7851_v36  ;;  %4865 = vmatpush1.bf16.msra.mxu1 %v7854_v37  ;;  %v8610_v36 = vld [vmem:[#allocation51_spill] sm:$0xff]  ;;  %v8611_v37 = vld [vmem:[#allocation52_spill] sm:$0xff] }
 0x781   : > { %4825 = vmatprep.subr.bf16.mxu0 %v7861_v3  ;;  %4866 = vmatprep.subr.bf16.mxu1 %v7864_v5  ;;  %v8612_v3 = vld [vmem:[#allocation53_spill] sm:$0xff]  ;;  %v8613_v5 = vld [vmem:[#allocation22_spill] sm:$0xff] }
 0x782   : > { %4855 = vmatprep.mubr.bf16.mxu0 %v8502_v62  ;;  %4896 = vmatprep.mubr.bf16.mxu1 %v8502_v62 }
 0x784   : > { %4826 = vmatpush1.bf16.msra.mxu0 %v7867_v6  ;;  %4867 = vmatpush1.bf16.msra.mxu1 %v7870_v7  ;;  %v8616_v6 = vld [vmem:[#allocation29_spill] sm:$0xff]  ;;  %v8617_v7 = vld [vmem:[#allocation27_spill] sm:$0xff] }
 0x785   : > { %4827 = vmatprep.subr.bf16.mxu0 %v7877_v32  ;;  %4868 = vmatprep.subr.bf16.mxu1 %v8608_v21  ;;  %v8618_v32 = vld [vmem:[#allocation28_spill] sm:$0xff] }
 0x788   : > { %4828 = vmatpush1.bf16.msra.mxu0 %v8609_v35  ;;  %4869 = vmatpush1.bf16.msra.mxu1 %v8610_v36 }
 0x789   : > { %4829 = vmatprep.subr.bf16.mxu0 %v8611_v37  ;;  %4870 = vmatprep.subr.bf16.mxu1 %v8612_v3  ;;  %v4540_v37 = vld [vmem:[%s7029_s11] sm:$0xf]  ;;  %v8633_v3 = vld [vmem:[#allocation24_spill] sm:$0xff] }
 0x78c   : > { %4830 = vmatpush1.bf16.msra.mxu0 %v8613_v5  ;;  %4871 = vmatpush1.bf16.msra.mxu1 %v8614_v19  ;;  %v4545_v5 = vrot.slane %v4540_v37, %v8633_v3 }
 0x78d   : > { %4831 = vmatprep.subr.bf16.mxu0 %v8615_v13  ;;  %4872 = vmatprep.subr.bf16.mxu1 %v8616_v6 }
 0x790   : > { %4832 = vmatpush1.bf16.msra.mxu0 %v8617_v7  ;;  %4873 = vmatpush1.bf16.msra.mxu1 %v8618_v32  ;;  %v8634_v7 = vld [vmem:[#allocation25_spill] sm:$0xff] }
 0x791   : > { %4833 = vmatprep.subr.bf16.mxu0 %v8619_v30  ;;  %4874 = vmatprep.subr.bf16.mxu1 %v8620_v16  ;;  %v4549_v32 = vrot.slane %v4540_v37, %v8634_v7 }
 0x794   : > { %4834 = vmatpush1.bf16.msra.mxu0 %v8621_v57  ;;  %4875 = vmatpush1.bf16.msra.mxu1 %v8622_v8 }
 0x795   : > { %4835 = vmatprep.subr.bf16.mxu0 %v8623_v2  ;;  %4876 = vmatprep.subr.bf16.mxu1 %v8624_v1 }
 0x798   : > { %4836 = vmatpush1.bf16.msra.mxu0 %v8625_v15  ;;  %4877 = vmatpush1.bf16.msra.mxu1 %v8626_v55 }
 0x799   : > { %4837 = vmatprep.subr.bf16.mxu0 %v8627_v10  ;;  %4878 = vmatprep.subr.bf16.mxu1 %v8628_v17 }
 0x79c   : > { %4838 = vmatpush1.bf16.msra.mxu0 %v8629_v12  ;;  %4879 = vmatpush1.bf16.msra.mxu1 %v8630_v28 }
 0x79d   : > { %5065 = vmatprep.subr.bf16.mxu0 %v8631_v34  ;;  %5106 = vmatprep.subr.bf16.mxu1 %v8632_v11  ;;  %v4557_v34 = vrot.slane %v4540_v37, %v7341_v27 }
 0x81f   : > { %v4250_v4 = vpop.f32.mrf.mxu0  ;;  %v4291_v14 = vpop.f32.mrf.mxu1 }
 0x821   : > { %v4252_v47 = vpop.f32.mrf.mxu0  ;;  %v4293_v31 = vpop.f32.mrf.mxu1 }
 0x823   : > { %v4254_v29 = vpop.f32.mrf.mxu0  ;;  %v4295_v21 = vpop.f32.mrf.mxu1 }
 0x824   : > { %v4553_v29 = vrot.slane %v4540_v37, %v7344_v33 }
 0x825   : > { %v4255_v35 = vpop.f32.mrf.mxu0  ;;  %v4296_v36 = vpop.f32.mrf.mxu1 }
 0x83f   : > { %v4492_v19 = vpop.f32.mrf.mxu0  ;;  %v4533_v13 = vpop.f32.mrf.mxu1 }
 0x840   : > { %v4493_v6 = vadd.f32 %v4492_v19, %v4250_v4  ;;  %v4534_v4 = vadd.f32 %v4533_v13, %v4291_v14 }
 0x841   : > { %v4494_v30 = vpop.f32.mrf.mxu0  ;;  %v4535_v16 = vpop.f32.mrf.mxu1 }
 0x842   : > { %v4562_v57 = vadd.f32 %v4545_v5, %v4493_v6  ;;  %v4495_v8 = vadd.f32 %v4494_v30, %v4252_v47  ;;  %v4536_v28 = vadd.f32 %v4535_v16, %v4293_v31  ;;  %v4564_v36 = vadd.f32 %v4553_v29, %v4534_v4 }
 0x843   : > { %v4496_v2 = vpop.f32.mrf.mxu0  ;;  %v4537_v1 = vpop.f32.mrf.mxu1 }
 0x844   : > { %v5966_v15 = vmul.f32 -1.442695, %v4562_v57  ;;  %v4563_v55 = vadd.f32 %v4549_v32, %v4495_v8  ;;  %v4565_v11 = vadd.f32 %v4557_v34, %v4536_v28 }
 0x845   : > { %v4497_v10 = vpop.f32.mrf.mxu0  ;;  %v4538_v17 = vpop.f32.mrf.mxu1 }
 0x846   : > { %6513 = vpow2.f32 %v5966_v15  ;;  %v5967_v12 = vmul.f32 -1.442695, %v4563_v55  ;;  %v5968_v21 = vmul.f32 -1.442695, %v4565_v11 }
 0x848   : > { %6515 = vpow2.f32 %v5967_v12 }
 0x849   : > { %6517 = vpow2.f32 %v5968_v21 }
 0x853   : > { %v6514_v35 = vpop.eup %6513 }
 0x854   : > { %v4569_v47 = vadd.f32 1.0, %v6514_v35 }
 0x855   : > { %v6516_v5 = vpop.eup %6515 }
 0x856   : > { %6519 = vrcp.f32 %v4569_v47  ;;  %v4575_v19 = vadd.f32 1.0, %v6516_v5  ;;  %v6518_v6 = vpop.eup %6517 }
 0x857   : > { %6521 = vtanh.f32 %v4564_v36  ;;  %v4582_v16 = vadd.f32 1.0, %v6518_v6 }
 0x858   : > { %6523 = vrcp.f32 %v4575_v19 }
 0x859   : > { %6525 = vrcp.f32 %v4582_v16 }
 0x863   : > { %v6520_v31 = vpop.eup %6519 }
 0x864   : > { %v6522_v32 = vpop.eup %6521 }
 0x865   : > { %v6524_v30 = vpop.eup %6523  ;;  %v4586_v14 = vmul.f32 %v6522_v32, %v6520_v31 }
 0x866   : > { %v4585_v37 = vmul.f32 %v6524_v30, %v8160_v9  ;;  %v6526_v57 = vpop.eup %6525 }
 0x868   : > { %v8244_v13 = vadd.f32 %v4586_v14, %v4585_v37 }
 0x86a   : > { %6527 = vtanh.f32 %v8244_v13 }
 0x877   : > { %v6528_v8 = vpop.eup %6527 }
 0x878   : > { %v4589_v2 = vmul.f32 %v6528_v8, %v6526_v57 }
 0x87a   : > { %4592 = vst [vmem:[%s4591_s1] sm:$0xff] %v4589_v2  ;;  %v4630_v1 = vpack.c.bf16 %v4589_v2, %v4589_v2 }
 0x87c   : > { %4856 = vmatmul.mubr.bf16.vlgmr.msra.gmra.mxu0 %v4630_v1  ;;  %4897 = vmatmul.mubr.bf16.vlgmr.msra.gmra.mxu1 %v4630_v1 }
 0x87d   : > { %5066 = vmatpush1.bf16.msra.mxu0 %v7992_v18  ;;  %5107 = vmatpush1.bf16.msra.mxu1 %v7995_v56 }
 0x87e   : > { %5067 = vmatprep.subr.bf16.mxu0 %v7998_v53  ;;  %5108 = vmatprep.subr.bf16.mxu1 %v8001_v51 }
 0x87f   : > { %5097 = vmatprep.mubr.bf16.mxu0 %v8502_v62  ;;  %5138 = vmatprep.mubr.bf16.mxu1 %v8502_v62  ;;  %v4597_v62 = vld [vmem:[%s4596_s30] sm:$0xf] }
 0x881   : > { %5068 = vmatpush1.bf16.msra.mxu0 %v8006_v20  ;;  %5109 = vmatpush1.bf16.msra.mxu1 %v8009_v46 }
 0x882   : > { %5069 = vmatprep.subr.bf16.mxu0 %v8014_v23  ;;  %5110 = vmatprep.subr.bf16.mxu1 %v8017_v38 }
 0x885   : > { %5070 = vmatpush1.bf16.msra.mxu0 %v8024_v39  ;;  %5111 = vmatpush1.bf16.msra.mxu1 %v8027_v61  ;;  %v5147_v39 = vld [vmem:[%s7029_s11] sm:$0xf]  ;;  %s5483_s11 = sshll.u32 %s7016_s21, 3 }
 0x886   : > { %5071 = vmatprep.subr.bf16.mxu0 %v8032_v42  ;;  %5112 = vmatprep.subr.bf16.mxu1 %v8035_v63  ;;  %v5152_v61 = vrot.slane %v5147_v39, %v8633_v3  ;;  %s343_s9 = scalar_lea.vmem [#allocation11], %s5483_s11 }
 0x887   : > { %s5235_s25 = sshll.u32 %s343_s9, 4  ;;  %s8301_s25 = int_to_ptr.vmem [resolvable:$true] %s5235_s25 }
 0x888   : > { %s6655_s10 = scalar_lea.vmem %s8301_s25, 128  ;;  %p6662_p13 = scmp.lt.s32.totalorder %s8301_s25, %s6660_s8 }
 0x889   : > { %5072 = vmatpush1.bf16.msra.mxu0 %v8040_v54  ;;  %5113 = vmatpush1.bf16.msra.mxu1 %v8043_v43  ;;  %v5156_v43 = vrot.slane %v5147_v39, %v8634_v7  ;;  %p6656_p2 = scmp.ne.s32.totalorder %s8301_s25, %s6655_s10  ;;  %p6663_p5 = scmp.lt.s32.totalorder %s6661_s26, %s6655_s10 }
 0x88a   : > { %5073 = vmatprep.subr.bf16.mxu0 %v8048_v25  ;;  %5114 = vmatprep.subr.bf16.mxu1 %v8051_v58 }
 0x88b   : > { %p6657_p11 = pnand %p6656_p2, %p8635_p0  ;;  %p6664_p10 = por %p6663_p5, %p6662_p13 }
 0x88d   : > { %5074 = vmatpush1.bf16.msra.mxu0 %v8056_v45  ;;  %5115 = vmatpush1.bf16.msra.mxu1 %v8059_v24  ;;  %p6658_p4 = pneg %p6657_p11 }
 0x88e   : > { %5075 = vmatprep.subr.bf16.mxu0 %v8603_v50  ;;  %5116 = vmatprep.subr.bf16.mxu1 %v8604_v48  ;;  %v5164_v50 = vrot.slane %v5147_v39, %v7341_v27 }
 0x88f   : > { %p6665_p1 = pnand %p6664_p10, %p6658_p4 }
 0x891   : > { %5076 = vmatpush1.bf16.msra.mxu0 %v8605_v49  ;;  %5117 = vmatpush1.bf16.msra.mxu1 %v8606_v52  ;;  %v5160_v52 = vrot.slane %v5147_v39, %v7344_v33 }
 0x892   : > { %5077 = vmatprep.subr.bf16.mxu0 %v8081_v44  ;;  %5118 = vmatprep.subr.bf16.mxu1 %v8607_v26 }
 0x895   : > { %5078 = vmatpush1.bf16.msra.mxu0 %v8092_v0  ;;  %5119 = vmatpush1.bf16.msra.mxu1 %v8095_v59 }
 0x896   : > { %5079 = vmatprep.subr.bf16.mxu0 %v8100_v40  ;;  %5120 = vmatprep.subr.bf16.mxu1 %v8103_v22 }
 0x899   : > { %5080 = vmatpush1.bf16.msra.mxu0 %v8109_v60  ;;  %5121 = vmatpush1.bf16.msra.mxu1 %v8112_v41 }
 0x89c   : > { %5098 = vmatmul.mubr.bf16.vlgmr.msra.gmra.mxu0 %v4597_v62  ;;  %5139 = vmatmul.mubr.bf16.vlgmr.msra.gmra.mxu1 %v4597_v62 }
 0x93c   : > { %v4857_v18 = vpop.f32.mrf.mxu0  ;;  %v4898_v56 = vpop.f32.mrf.mxu1 }
 0x93e   : > { %v4859_v53 = vpop.f32.mrf.mxu0  ;;  %v4900_v51 = vpop.f32.mrf.mxu1 }
 0x940   : > { %v4861_v20 = vpop.f32.mrf.mxu0  ;;  %v4902_v46 = vpop.f32.mrf.mxu1 }
 0x942   : > { %v4862_v23 = vpop.f32.mrf.mxu0  ;;  %v4903_v38 = vpop.f32.mrf.mxu1 }
 0x95c   : > { %v5099_v42 = vpop.f32.mrf.mxu0  ;;  %v5140_v63 = vpop.f32.mrf.mxu1 }
 0x95d   : > { %v5100_v54 = vadd.f32 %v5099_v42, %v4857_v18  ;;  %v5141_v49 = vadd.f32 %v5140_v63, %v4898_v56 }
 0x95e   : > { %v5101_v25 = vpop.f32.mrf.mxu0  ;;  %v5142_v58 = vpop.f32.mrf.mxu1 }
 0x95f   : > { %v5169_v45 = vadd.f32 %v5152_v61, %v5100_v54  ;;  %v5102_v24 = vadd.f32 %v5101_v25, %v4859_v53  ;;  %v5143_v9 = vadd.f32 %v5142_v58, %v4900_v51  ;;  %v5171_v7 = vadd.f32 %v5160_v52, %v5141_v49 }
 0x960   : > { %v5103_v22 = vpop.f32.mrf.mxu0  ;;  %v5144_v40 = vpop.f32.mrf.mxu1 }
 0x961   : > { %v6035_v60 = vmul.f32 -1.442695, %v5169_v45  ;;  %v5170_v41 = vadd.f32 %v5156_v43, %v5102_v24  ;;  %v5172_v48 = vadd.f32 %v5164_v50, %v5143_v9 }
 0x962   : > { %v5104_v44 = vpop.f32.mrf.mxu0  ;;  %v5145_v0 = vpop.f32.mrf.mxu1 }
 0x963   : > { %6529 = vpow2.f32 %v6035_v60  ;;  %v6036_v59 = vmul.f32 -1.442695, %v5170_v41  ;;  %v6037_v26 = vmul.f32 -1.442695, %v5172_v48 }
 0x965   : > { %6531 = vpow2.f32 %v6036_v59 }
 0x966   : > { %6533 = vpow2.f32 %v6037_v26 }
 0x970   : > { %v6530_v3 = vpop.eup %6529 }
 0x971   : > { %v5176_v15 = vadd.f32 1.0, %v6530_v3 }
 0x972   : > { %v6532_v55 = vpop.eup %6531 }
 0x973   : > { %6535 = vrcp.f32 %v5176_v15  ;;  %v5182_v10 = vadd.f32 1.0, %v6532_v55  ;;  %v6534_v17 = vpop.eup %6533 }
 0x974   : > { %6537 = vtanh.f32 %v5171_v7  ;;  %v5189_v33 = vadd.f32 1.0, %v6534_v17 }
 0x975   : > { %6539 = vrcp.f32 %v5182_v10 }
 0x976   : > { %6541 = vrcp.f32 %v5189_v33 }
 0x980   : > { %v6536_v27 = vpop.eup %6535 }
 0x981   : > { %v6538_v12 = vpop.eup %6537 }
 0x982   : > { %v6540_v28 = vpop.eup %6539  ;;  %v5193_v34 = vmul.f32 %v6538_v12, %v6536_v27 }
 0x983   : > { %v5192_v11 = vmul.f32 %v6540_v28, %v8244_v13 }
 0x985   : > { %v5194_v4 = vadd.f32 %v5193_v34, %v5192_v11 }
 0x987   : > { %6543 = vtanh.f32 %v5194_v4  ;;  %5200 = vst [vmem:[%s343_s9] sm:$0xff] %v5194_v4 }
 0x988   : > { %6668 = shalt.err (!%p6665_p1)
}
 0x989   : > { %s6669_s2 = scalar_lea.hbm %s8299_s28, 128  ;;  %s6673_s1 = scalar_lea.hbm %s8382_s5, 256 }
 0x98a   : > { %p6670_p3 = scmp.ne.s32.totalorder %s8299_s28, %s6669_s2  ;;  %p6674_p9 = scmp.lt.s32.totalorder %s8299_s28, %s8382_s5 }
 0x98b   : > { %p6675_p8 = scmp.lt.s32.totalorder %s6673_s1, %s6669_s2 }
 0x98c   : > { %p6671_p12 = pnand %p6670_p3, %p8635_p0 }
 0x98d   : > { %p6676_p6 = por %p6675_p8, %p6674_p9 }
 0x98e   : > { %p6672_p7 = pneg %p6671_p12 }
 0x990   : > { %p6677_p2 = pnand %p6676_p6, %p6672_p7 }
 0x992   : > { %6680 = shalt.err (!%p6677_p2)
}
 0x993   : > { %6060 = dma.vmem_to_hbm [thread:$0]  (%p8635_p0), %s8301_s25, 128, %s8299_s28, %s5207_s16   ;;  %v6542_v29 = vpop.eup %6541 }
 0x994   : > { %s6038_s30 = sshll.u32 %s8273_s20, 3  ;;  %s5219_s11 = sshll.u32 %s7352_s12, 4  ;;  %v6544_v21 = vpop.eup %6543  ;;  %s8334_s11 = int_to_ptr.vmem [resolvable:$true] %s5219_s11 }
 0x995   : > { %s5198_s9 = scalar_lea.vmem %s7352_s12, %s6038_s30 [#allocation10]  ;;  %s8332_s10 = scalar_lea.hbm %s8381_s4, %s6041_s22  ;;  %v5196_v35 = vmul.f32 %v6544_v21, %v6542_v29 }
 0x996   : > { %s5202_s23 = scalar_lea.sflag [#allocation4], %s7016_s21  ;;  %s6681_s25 = scalar_lea.vmem %s8334_s11, 1024 }
 0x997   : > { %5199 = vst [vmem:[%s5198_s9] sm:$0xff] %v5196_v35  ;;  %p6682_p11 = scmp.ne.s32.totalorder %s8334_s11, %s6681_s25  ;;  %s6769_s24 = smov [#allocation10]  }
 0x998   : > { %s6685_s12 = sshll.u32 %s6769_s24, 4  ;;  %s6686_s12 = int_to_ptr.vmem [resolvable:$false] %s6685_s12 }
 0x999   : > { %p6683_p4 = pnand %p6682_p11, %p8635_p0  ;;  %s6687_s20 = scalar_lea.vmem %s6686_s12, 2048 }
 0x99a   : > { %p6688_p5 = scmp.lt.s32.totalorder %s8334_s11, %s6686_s12  ;;  %p6689_p10 = scmp.lt.s32.totalorder %s6687_s20, %s6681_s25 }
 0x99b   : > { %p6684_p13 = pneg %p6683_p4 }
 0x99c   : > { %p6690_p1 = por %p6689_p10, %p6688_p5 }
 0x99e   : > { %p6691_p3 = pnand %p6690_p1, %p6684_p13 }
 0x9a0   : > { %6694 = shalt.err (!%p6691_p3)
}
 0x9a1   : > { %s6695_s22 = scalar_lea.hbm %s8332_s10, 1024  ;;  %s6699_s8 = scalar_lea.hbm %s8381_s4, 2048 }
 0x9a2   : > { %p6696_p12 = scmp.ne.s32.totalorder %s8332_s10, %s6695_s22  ;;  %p6700_p8 = scmp.lt.s32.totalorder %s8332_s10, %s8381_s4 }
 0x9a3   : > { %p6701_p6 = scmp.lt.s32.totalorder %s6699_s8, %s6695_s22 }
 0x9a4   : > { %p6697_p7 = pnand %p6696_p12, %p8635_p0 }
 0x9a5   : > { %p6702_p2 = por %p6701_p6, %p6700_p8 }
 0x9a6   : > { %p6698_p9 = pneg %p6697_p7 }
 0x9a8   : > { %p6703_p11 = pnand %p6702_p2, %p6698_p9 }
 0x9aa   : > { %6706 = shalt.err (!%p6703_p11)
}
 0x9ab   : > { %s6770_s6 = smov 128   ;;  %s6771_s27 = smov 256  }
 0x9ac   : > { %s6772_s1 = smov 8  }
 0x9ad   : > { %6059 = dma.vmem_to_hbm [thread:$0]  (%p8635_p0), %s8334_s11, 1024, %s8332_s10, %s5202_s23, %s6770_s6, %s6771_s27, %s6772_s1  }
 0x9ae PF: > { %s8636_s14 = sld [smem:[#allocation19_spill]]  ;;  %s5247_s15 = sand.u32 1, %s6745_s18  }
 0x9af   : > { %p8637_p4 = scmp.ne.s32.totalorder %s8488_s7, 0  ;;  %s5248_s30 = scalar_lea.sflag [#allocation4], %s5247_s15 }
 0x9b4   : > { %p8638_p13 = scmp.ge.s32.totalorder %s8636_s14, 2 }
 0x9b6   : > { %p6078_p5 = pnand %p8638_p13, %p8637_p4 }
 0x9b8   : > { %p6079_p10 = pneg %p6078_p5 }
 0x9ba   : > { %6736 = dma.done.wait (%p6079_p10), %s5248_s30, 1024  }
 0x9bb   : > { %6738 = vsyncadd (%p6079_p10), %s5248_s30, 4294966272  ;;  %s5257_s9 = scalar_lea.sflag [#allocation12], %s5247_s15 }
 0x9bc   : > { %6740 = dma.done.wait (%p6079_p10), %s5257_s9, 128  }
 0x9bd   : > { %6742 = vsyncadd (%p6079_p10), %s5257_s9, 4294967168  ;;  %s8639_s21 = sld [smem:[#allocation20_spill]]  ;;  %s8642_s18 = smov %s6749_s19 }
 0x9be   : > { %s8640_s29 = sld [smem:[#allocation18_spill]] }
 0x9bf   : > { %s8641_s20 = sld [smem:[#allocation21_spill]] }
 0x9c3   : > { %p26_p0 = scmp.ge.s32.totalorder %s8639_s21, 4  }
 0x9c4   : > { %s8643_s19 = smov %s8640_s29 }
 0x9c5   :  { %28 = sbr.rel (!%p26_p0) target bundleno = 13 (0xd), region = 143 }
 0x9ca   :  { %5262 = vsyncpa [#allocation3], 1 }
 0x9cb   :  { %5264 = vsyncpa [#allocation3 + $0x1], 1 }
 0x9cc   :  { %5265 = vsyncpa [#allocation6], 1 }
 0x9cd   :  { %5267 = vsyncpa [#allocation6 + $0x1], 1 }
 0x9ce   :  { %5268 = vsyncpa [#allocation9], 1 }
 0x9cf   :  { %5270 = vsyncpa [#allocation9 + $0x1], 1 }
 0x9d0   :  { %5271 = vsyncpa [#allocation4], 1 }
 0x9d1   :  { %5273 = vsyncpa [#allocation4 + $0x1], 1 }
 0x9d2   :  { %5274 = vsyncpa [#allocation12], 1 }
 0x9d3   :  { %5276 = vsyncpa [#allocation12 + $0x1], 1 }

</bundles_post_ra>
